<compile_context>
chip_gen: v5e
topology: v5e:2x2
jax: 0.10.0
libtpu: 0.0.40
codegen_flags: <defaults>
</compile_context>

<pallas_src>
import functools
import math

import jax
import jax.numpy as jnp
from jax.experimental import pallas as pl
from jax.experimental.pallas import tpu as pltpu

_MAX_BLOCK_OUT_BYTES = 2 * 1024 * 1024   # cap on the per-grid-step output tile


# --------------------------- Pallas kernel -----------------------------------

def _make_conv_gelu_stats_kernel(nb, kw):
    """Kernel factory: nb = images per grid step, kw = conv kernel width (both static)."""

    def kernel(x_ref, c_ref, d_ref, y_ref, s_ref, ss_ref):
        """Fused bilinear-upsample + conv + GELU + partial BN stats for `nb` images.

        x_ref : (nb, Cin*H, W)         raw input images (channel-row axis flattened)
        c_ref : (kw, Cout*Ho, Cin*H)   fused {H-interp, conv i-taps, Cin contraction} operators
        d_ref : (kw, W, Wo)            fused {W-interp, conv j-tap, stride, padding} operators
        y_ref : (nb, Cout*Ho, Wo)      conv+GELU output (row-major == NCHW flat, no transpose later)
        s_ref/ss_ref : (1, Cout*Ho, 1) per-block per-row partial sum / sum-of-squares
        """
        cout_ho = c_ref.shape[1]
        wo = d_ref.shape[2]
        s_acc = jnp.zeros((cout_ho, 1), jnp.float32)
        ss_acc = jnp.zeros((cout_ho, 1), jnp.float32)
        for b in range(nb):                               # static unroll, nb is small
            xb = x_ref[b]                                 # (Cin*H, W)
            acc = jnp.zeros((cout_ho, wo), jnp.float32)
            for j in range(kw):                           # static unroll over conv width taps
                t = jnp.dot(xb, d_ref[j], preferred_element_type=jnp.float32)        # (Cin*H, Wo)
                acc = acc + jnp.dot(c_ref[j], t, preferred_element_type=jnp.float32)  # (Cout*Ho, Wo)
            # exact GELU (erf form), matching nn.GELU() default approximate='none'
            g = 0.5 * acc * (1.0 + jax.lax.erf(acc * (1.0 / math.sqrt(2.0))))
            y_ref[b] = g
            # zero-padded images contribute gelu(0)=0 -> nothing to the stats
            s_acc = s_acc + jnp.sum(g, axis=1, keepdims=True)
            ss_acc = ss_acc + jnp.sum(g * g, axis=1, keepdims=True)
        s_ref[0] = s_acc
        ss_ref[0] = ss_acc

    return kernel


# --------------------------- JAX glue -----------------------------------------

def _linear_interp_matrix(in_size, scale):
    """1-D operator of F.interpolate(mode='bilinear', align_corners=False), integer scale."""
    out_size = in_size * scale
    d = jnp.arange(out_size, dtype=jnp.float32)
    src = jnp.maximum((d + 0.5) / float(scale) - 0.5, 0.0)      # PyTorch clamps negative src to 0
    i0 = jnp.minimum(jnp.floor(src).astype(jnp.int32), in_size - 1)
    i1 = jnp.minimum(i0 + 1, in_size - 1)
    w1 = src - i0.astype(jnp.float32)
    u = jnp.zeros((out_size, in_size), jnp.float32)
    u = u.at[jnp.arange(out_size), i0].add(1.0 - w1)
    u = u.at[jnp.arange(out_size), i1].add(w1)
    return u


def _bilinear_upsample_nchw(x, scale):
    """Pure-JAX reference for F.interpolate(x, scale_factor=scale, mode='bilinear')."""
    N, C, H, W = x.shape
    Ho, Wo = H * scale, W * scale

    def coords(out_size, in_size):
        d = jnp.arange(out_size, dtype=jnp.float32)
        src = jnp.maximum((d + 0.5) / float(scale) - 0.5, 0.0)
        i0 = jnp.minimum(jnp.floor(src).astype(jnp.int32), in_size - 1)
        i1 = jnp.minimum(i0 + 1, in_size - 1)
        w1 = src - i0.astype(jnp.float32)
        return i0, i1, 1.0 - w1, w1

    h0, h1, wh0, wh1 = coords(Ho, H)
    v0, v1, wv0, wv1 = coords(Wo, W)
    xh = (jnp.take(x, h0, axis=2) * wh0[None, None, :, None]
          + jnp.take(x, h1, axis=2) * wh1[None, None, :, None])
    xw = (jnp.take(xh, v0, axis=3) * wv0[None, None, None, :]
          + jnp.take(xh, v1, axis=3) * wv1[None, None, None, :])
    return xw


# --------------------------- forward -------------------------------------------

@functools.partial(jax.jit, static_argnames=("kernel_size", "stride", "padding", "eps"))
def conv_upsampling_forward(x, conv_weight, bn_gamma, bn_beta, *,
                            kernel_size, stride=1, padding=0, eps=1e-5):
    N, Cin, H, W = x.shape
    Cout, _, kh, kw = conv_weight.shape
    scale = kernel_size
    f32 = jnp.float32

    Hu, Wu = H * scale, W * scale
    Ho = (Hu + 2 * padding - kh) // stride + 1
    Wo = (Wu + 2 * padding - kw) // stride + 1

    # --- fused operators (tiny glue, computed once per call, exact f32) ------------------------
    # bilinear interp matrices with the conv's zero padding folded in as zero rows
    uh = jnp.pad(_linear_interp_matrix(H, scale), ((padding, padding), (0, 0)))   # (Hu+2p, H)
    uw = jnp.pad(_linear_interp_matrix(W, scale), ((padding, padding), (0, 0)))   # (Wu+2p, W)

    hi = jnp.arange(Ho) * stride
    a = jnp.stack([uh[hi + i] for i in range(kh)], axis=0)                        # (kh, Ho, H)
    wgt = conv_weight.astype(f32)
    # C[j, (co,ho), (ci,h)] = sum_i W[co,ci,i,j] * Uh_pad[ho*stride + i, h]
    c_op = jnp.einsum("ocij,iph->jopch", wgt, a,
                      precision=jax.lax.Precision.HIGHEST).reshape(kw, Cout * Ho, Cin * H)
    wi = jnp.arange(Wo) * stride
    # D[j, w, wo] = Uw_pad[wo*stride + j, w]
    d_op = jnp.stack([uw[wi + j].T for j in range(kw)], axis=0)                   # (kw, W, Wo)

    # --- batch tiling ---------------------------------------------------------------------------
    per_img_out_bytes = Cout * Ho * Wo * 4
    nb = max(1, min(N, _MAX_BLOCK_OUT_BYTES // max(per_img_out_bytes, 1)))
    if N >= 2:
        nb = min(nb, max(1, N // 2))       # keep >= 2 grid blocks -> both TensorCores on v7x
    n_blocks = (N + nb - 1) // nb
    n_pad = n_blocks * nb

    x2 = x.astype(f32).reshape(N, Cin * H, W)
    x2 = jnp.pad(x2, ((0, n_pad - N), (0, 0), (0, 0)))     # zero images contribute 0 to stats

    kernel = _make_conv_gelu_stats_kernel(nb, kw)
    y_flat, s_part, ss_part = pl.pallas_call(
        kernel,
        grid=(n_blocks,),
        in_specs=[pl.BlockSpec((nb, Cin * H, W), lambda i: (i, 0, 0)),
                  pl.BlockSpec((kw, Cout * Ho, Cin * H), lambda i: (0, 0, 0)),   # resident
                  pl.BlockSpec((kw, W, Wo), lambda i: (0, 0, 0))],               # resident
        out_specs=[pl.BlockSpec((nb, Cout * Ho, Wo), lambda i: (i, 0, 0)),
                   pl.BlockSpec((1, Cout * Ho, 1), lambda i: (i, 0, 0)),
                   pl.BlockSpec((1, Cout * Ho, 1), lambda i: (i, 0, 0))],
        out_shape=[jax.ShapeDtypeStruct((n_pad, Cout * Ho, Wo), f32),
                   jax.ShapeDtypeStruct((n_blocks, Cout * Ho, 1), f32),
                   jax.ShapeDtypeStruct((n_blocks, Cout * Ho, 1), f32)],
        compiler_params=pltpu.CompilerParams(dimension_semantics=("parallel",)),
    )(x2, c_op, d_op)

    # --- BN scale/shift from partial stats (tiny glue, computed once) ---------------------------
    count = float(N * Ho * Wo)
    s = jnp.sum(s_part, axis=0).reshape(Cout, Ho).sum(axis=1)       # (Cout,)
    ss = jnp.sum(ss_part, axis=0).reshape(Cout, Ho).sum(axis=1)
    mean = s / count
    var = jnp.maximum(ss / count - mean * mean, 0.0)                # biased var, clamped >= 0
    inv = jax.lax.rsqrt(var + eps)
    scale_c = bn_gamma.astype(f32) * inv
    shift_c = bn_beta.astype(f32) - mean * scale_c

    # --- epilogue: batch de-pad + FREE reshape to NCHW + BN FMA, fused by XLA into ONE pass -----
    y = y_flat[:N].reshape(N, Cout, Ho, Wo)
    return y * scale_c.reshape(1, Cout, 1, 1) + shift_c.reshape(1, Cout, 1, 1)


# --------------------------- main ----------------------------------------------

if __name__ == "__main__":
    key = jax.random.PRNGKey(0)
    k_x, k_w = jax.random.split(key)

    # module config: ConvUpsampling(in_channels=4, out_channels=8, kernel_size=2)
    N, Cin, H, W = 2, 4, 16, 16
    Cout, ksize, stride, padding = 8, 2, 1, 0
    eps = 1e-5

    x = jax.random.normal(k_x, (N, Cin, H, W), dtype=jnp.float32)

    # deterministic Conv2d weight init (kaiming-uniform-like bound), no bias
    fan_in = Cin * ksize * ksize
    bound = 1.0 / math.sqrt(fan_in)
    conv_weight = jax.random.uniform(k_w, (Cout, Cin, ksize, ksize),
                                     minval=-bound, maxval=bound, dtype=jnp.float32)
    bn_gamma = jnp.ones((Cout,), jnp.float32)    # nn.BatchNorm2d default weight
    bn_beta = jnp.zeros((Cout,), jnp.float32)    # nn.BatchNorm2d default bias

    out = conv_upsampling_forward(x, conv_weight, bn_gamma, bn_beta,
                                  kernel_size=ksize, stride=stride, padding=padding, eps=eps)
    out = jax.block_until_ready(out)

    Hu, Wu = H * ksize, W * ksize
    Ho = (Hu + 2 * padding - ksize) // stride + 1
    Wo = (Wu + 2 * padding - ksize) // stride + 1
    assert out.shape == (N, Cout, Ho, Wo), out.shape
    assert bool(jnp.all(jnp.isfinite(out)))

    # pure-JAX reference: upsample -> conv -> exact GELU -> BatchNorm2d (training-mode stats)
    x_up = _bilinear_upsample_nchw(x, ksize)
    y_ref = jax.lax.conv_general_dilated(
        x_up, conv_weight, window_strides=(stride, stride),
        padding=[(padding, padding), (padding, padding)],
        dimension_numbers=("NCHW", "OIHW", "NCHW"),
        precision=jax.lax.Precision.HIGHEST)
    g_ref = 0.5 * y_ref * (1.0 + jax.lax.erf(y_ref * (1.0 / math.sqrt(2.0))))
    m_ref = jnp.mean(g_ref, axis=(0, 2, 3), keepdims=True)
    v_ref = jnp.mean((g_ref - m_ref) ** 2, axis=(0, 2, 3), keepdims=True)
    ref = ((g_ref - m_ref) * jax.lax.rsqrt(v_ref + eps)
           * bn_gamma.reshape(1, -1, 1, 1) + bn_beta.reshape(1, -1, 1, 1))
    assert bool(jnp.allclose(out, ref, atol=1e-3, rtol=1e-3)), \
        float(jnp.max(jnp.abs(out - ref)))

    print("KERNEL_OK")
</pallas_src>

<mosaic_0001>
module attributes {stable_mosaic.version = 11 : i64} {
  func.func @kernel(%arg0: i32, %arg1: memref<1x64x16xf32, #tpu.memory_space<vmem>>, %arg2: memref<2x248x64xf32, #tpu.memory_space<vmem>>, %arg3: memref<2x16x31xf32, #tpu.memory_space<vmem>>, %arg4: memref<1x248x31xf32, #tpu.memory_space<vmem>>, %arg5: memref<1x248x1xf32, #tpu.memory_space<vmem>>, %arg6: memref<1x248x1xf32, #tpu.memory_space<vmem>>) attributes {dimension_semantics = [#tpu.dimension_semantics<parallel>], iteration_bounds = array<i64: 2>, scalar_prefetch = 0 : i64, scratch_operands = 0 : i64, tpu.core_type = #tpu.core_type<tc>, window_params = [{transform_indices = @transform_0, window_bounds = array<i64: 1, 64, 16>}, {pipeline_mode = #tpu.pipeline_mode<synchronous>, transform_indices = @transform_1, window_bounds = array<i64: 2, 248, 64>}, {pipeline_mode = #tpu.pipeline_mode<synchronous>, transform_indices = @transform_2, window_bounds = array<i64: 2, 16, 31>}, {transform_indices = @transform_3, window_bounds = array<i64: 1, 248, 31>}, {transform_indices = @transform_4, window_bounds = array<i64: 1, 248, 1>}, {transform_indices = @transform_5, window_bounds = array<i64: 1, 248, 1>}]} {
    %cst = arith.constant 0.000000e+00 : f32
    %0 = vector.broadcast %cst : f32 to vector<248x1xf32>
    %cst_0 = arith.constant 0.000000e+00 : f32
    %1 = vector.broadcast %cst_0 : f32 to vector<248x1xf32>
    %c0 = arith.constant 0 : index
    %c0_1 = arith.constant 0 : index
    %c0_2 = arith.constant 0 : index
    %2 = vector.load %arg1[%c0, %c0_1, %c0_2] : memref<1x64x16xf32, #tpu.memory_space<vmem>>, vector<1x64x16xf32>
    %3 = vector.shape_cast %2 : vector<1x64x16xf32> to vector<64x16xf32>
    %cst_3 = arith.constant 0.000000e+00 : f32
    %4 = vector.broadcast %cst_3 : f32 to vector<248x31xf32>
    %c0_4 = arith.constant 0 : index
    %c0_5 = arith.constant 0 : index
    %c0_6 = arith.constant 0 : index
    %5 = vector.load %arg3[%c0_4, %c0_5, %c0_6] : memref<2x16x31xf32, #tpu.memory_space<vmem>>, vector<1x16x31xf32>
    %6 = vector.shape_cast %5 : vector<1x16x31xf32> to vector<16x31xf32>
    %cst_7 = arith.constant dense<0.000000e+00> : vector<64x31xf32>
    %7 = tpu.matmul %3, %6, %cst_7 {dimension_numbers = #tpu.dot_dimension_numbers<[1], [0], [0], [1], [0, 0, 1, 1], [], []>} : vector<64x16xf32>, vector<16x31xf32>, vector<64x31xf32> -> vector<64x31xf32>
    %c0_8 = arith.constant 0 : index
    %c0_9 = arith.constant 0 : index
    %c0_10 = arith.constant 0 : index
    %8 = vector.load %arg2[%c0_8, %c0_9, %c0_10] : memref<2x248x64xf32, #tpu.memory_space<vmem>>, vector<1x248x64xf32>
    %9 = vector.shape_cast %8 : vector<1x248x64xf32> to vector<248x64xf32>
    %cst_11 = arith.constant dense<0.000000e+00> : vector<248x31xf32>
    %10 = tpu.matmul %9, %7, %cst_11 {dimension_numbers = #tpu.dot_dimension_numbers<[1], [0], [0], [1], [0, 0, 1, 1], [], []>} : vector<248x64xf32>, vector<64x31xf32>, vector<248x31xf32> -> vector<248x31xf32>
    %11 = arith.addf %4, %10 : vector<248x31xf32>
    %c1 = arith.constant 1 : index
    %c0_12 = arith.constant 0 : index
    %c0_13 = arith.constant 0 : index
    %12 = vector.load %arg3[%c1, %c0_12, %c0_13] : memref<2x16x31xf32, #tpu.memory_space<vmem>>, vector<1x16x31xf32>
    %13 = vector.shape_cast %12 : vector<1x16x31xf32> to vector<16x31xf32>
    %cst_14 = arith.constant dense<0.000000e+00> : vector<64x31xf32>
    %14 = tpu.matmul %3, %13, %cst_14 {dimension_numbers = #tpu.dot_dimension_numbers<[1], [0], [0], [1], [0, 0, 1, 1], [], []>} : vector<64x16xf32>, vector<16x31xf32>, vector<64x31xf32> -> vector<64x31xf32>
    %c1_15 = arith.constant 1 : index
    %c0_16 = arith.constant 0 : index
    %c0_17 = arith.constant 0 : index
    %15 = vector.load %arg2[%c1_15, %c0_16, %c0_17] : memref<2x248x64xf32, #tpu.memory_space<vmem>>, vector<1x248x64xf32>
    %16 = vector.shape_cast %15 : vector<1x248x64xf32> to vector<248x64xf32>
    %cst_18 = arith.constant dense<0.000000e+00> : vector<248x31xf32>
    %17 = tpu.matmul %16, %14, %cst_18 {dimension_numbers = #tpu.dot_dimension_numbers<[1], [0], [0], [1], [0, 0, 1, 1], [], []>} : vector<248x64xf32>, vector<64x31xf32>, vector<248x31xf32> -> vector<248x31xf32>
    %18 = arith.addf %11, %17 : vector<248x31xf32>
    %cst_19 = arith.constant 5.000000e-01 : f32
    %19 = vector.broadcast %cst_19 : f32 to vector<248x31xf32>
    %20 = arith.mulf %19, %18 : vector<248x31xf32>
    %cst_20 = arith.constant 0.707106769 : f32
    %21 = vector.broadcast %cst_20 : f32 to vector<248x31xf32>
    %22 = arith.mulf %18, %21 : vector<248x31xf32>
    %23 = math.erf %22 : vector<248x31xf32>
    %cst_21 = arith.constant 1.000000e+00 : f32
    %24 = vector.broadcast %cst_21 : f32 to vector<248x31xf32>
    %25 = arith.addf %24, %23 : vector<248x31xf32>
    %26 = arith.mulf %20, %25 : vector<248x31xf32>
    %c0_22 = arith.constant 0 : index
    %c0_23 = arith.constant 0 : index
    %c0_24 = arith.constant 0 : index
    %27 = vector.load %arg4[%c0_22, %c0_23, %c0_24] : memref<1x248x31xf32, #tpu.memory_space<vmem>>, vector<1x248x31xf32>
    %28 = vector.shape_cast %27 : vector<1x248x31xf32> to vector<248x31xf32>
    %29 = vector.shape_cast %26 : vector<248x31xf32> to vector<1x248x31xf32>
    tpu.vector_store %arg4[%c0_22, %c0_23, %c0_24], %29 {strides = array<i32>} : memref<1x248x31xf32, #tpu.memory_space<vmem>>, vector<1x248x31xf32>,
    %cst_25 = arith.constant dense<0.000000e+00> : vector<248xf32>
    %30 = vector.multi_reduction <add>, %26, %cst_25 [1] : vector<248x31xf32> to vector<248xf32>
    %31 = vector.shape_cast %30 : vector<248xf32> to vector<248x1xf32>
    %32 = arith.addf %0, %31 : vector<248x1xf32>
    %33 = arith.mulf %26, %26 : vector<248x31xf32>
    %cst_26 = arith.constant dense<0.000000e+00> : vector<248xf32>
    %34 = vector.multi_reduction <add>, %33, %cst_26 [1] : vector<248x31xf32> to vector<248xf32>
    %35 = vector.shape_cast %34 : vector<248xf32> to vector<248x1xf32>
    %36 = arith.addf %1, %35 : vector<248x1xf32>
    %c0_27 = arith.constant 0 : index
    %c0_28 = arith.constant 0 : index
    %c0_29 = arith.constant 0 : index
    %37 = vector.load %arg5[%c0_27, %c0_28, %c0_29] : memref<1x248x1xf32, #tpu.memory_space<vmem>>, vector<1x248x1xf32>
    %38 = vector.shape_cast %37 : vector<1x248x1xf32> to vector<248x1xf32>
    %39 = vector.shape_cast %32 : vector<248x1xf32> to vector<1x248x1xf32>
    tpu.vector_store %arg5[%c0_27, %c0_28, %c0_29], %39 {strides = array<i32>} : memref<1x248x1xf32, #tpu.memory_space<vmem>>, vector<1x248x1xf32>,
    %c0_30 = arith.constant 0 : index
    %c0_31 = arith.constant 0 : index
    %c0_32 = arith.constant 0 : index
    %40 = vector.load %arg6[%c0_30, %c0_31, %c0_32] : memref<1x248x1xf32, #tpu.memory_space<vmem>>, vector<1x248x1xf32>
    %41 = vector.shape_cast %40 : vector<1x248x1xf32> to vector<248x1xf32>
    %42 = vector.shape_cast %36 : vector<248x1xf32> to vector<1x248x1xf32>
    tpu.vector_store %arg6[%c0_30, %c0_31, %c0_32], %42 {strides = array<i32>} : memref<1x248x1xf32, #tpu.memory_space<vmem>>, vector<1x248x1xf32>,
    return
  }
  func.func @transform_0(%arg0: i32) -> (i32, i32, i32) {
    %c0_i32 = arith.constant 0 : i32
    %c0_i32_0 = arith.constant 0 : i32
    %c0_i32_1 = arith.constant 0 : i32
    return %arg0, %c0_i32, %c0_i32_0 : i32, i32, i32
  }
  func.func @transform_1(%arg0: i32) -> (i32, i32, i32) {
    %c0_i32 = arith.constant 0 : i32
    %c0_i32_0 = arith.constant 0 : i32
    %c0_i32_1 = arith.constant 0 : i32
    %c0_i32_2 = arith.constant 0 : i32
    return %c0_i32, %c0_i32_0, %c0_i32_1 : i32, i32, i32
  }
  func.func @transform_2(%arg0: i32) -> (i32, i32, i32) {
    %c0_i32 = arith.constant 0 : i32
    %c0_i32_0 = arith.constant 0 : i32
    %c0_i32_1 = arith.constant 0 : i32
    %c0_i32_2 = arith.constant 0 : i32
    return %c0_i32, %c0_i32_0, %c0_i32_1 : i32, i32, i32
  }
  func.func @transform_3(%arg0: i32) -> (i32, i32, i32) {
    %c0_i32 = arith.constant 0 : i32
    %c0_i32_0 = arith.constant 0 : i32
    %c0_i32_1 = arith.constant 0 : i32
    return %arg0, %c0_i32, %c0_i32_0 : i32, i32, i32
  }
  func.func @transform_4(%arg0: i32) -> (i32, i32, i32) {
    %c0_i32 = arith.constant 0 : i32
    %c0_i32_0 = arith.constant 0 : i32
    %c0_i32_1 = arith.constant 0 : i32
    return %arg0, %c0_i32, %c0_i32_0 : i32, i32, i32
  }
  func.func @transform_5(%arg0: i32) -> (i32, i32, i32) {
    %c0_i32 = arith.constant 0 : i32
    %c0_i32_0 = arith.constant 0 : i32
    %c0_i32_1 = arith.constant 0 : i32
    return %arg0, %c0_i32, %c0_i32_0 : i32, i32, i32
  }
}

</mosaic_0001>

<bundles_post_ra>
// kernel: conv_upsampling_forward.1
= control target key start
LH: loop header
LB: loop body
LE: loop exit
PB: predicated region body
PF: predicated region fallthrough
CT: control target
= control target key end

     0   :  { %s2979_s18 = smov 0   ;;  %s4896_s0 = inlined_call_operand.vmem [shape: f32[2,64,16], index: 0, kind: input, shape index: {}]   ;;  %s4897_s1 = inlined_call_operand.vmem [shape: f32[2,248,64], index: 1, kind: input, shape index: {}]   ;;  %s4898_s2 = inlined_call_operand.vmem [shape: f32[2,16,31], index: 2, kind: input, shape index: {}]   ;;  %s4899_s3 = inlined_call_operand.vmem [shape: f32[2,248,31], index: 3, kind: output, shape index: {0}]   ;;  %s4900_s4 = inlined_call_operand.vmem [shape: f32[2,248,1], index: 4, kind: output, shape index: {1}]   ;;  %s4901_s5 = inlined_call_operand.vmem [shape: f32[2,248,1], index: 5, kind: output, shape index: {2}]  }
   0x1 LB: > { %s2699_s19 = sadd.s32 4294967295, %s2947_s18   ;;  %p2703_p0 = scmp.ge.s32.totalorder %s2947_s18, 1  ;;  %s2947_s18 = sphi %s2979_s18, %s16_s18  }
   0x2   : > { %p192_p1 = scmp.lt.s32.totalorder %s2947_s18, 3 }
   0x4   : > { %p193_p2 = pnand %p2703_p0, %p192_p1 }
   0x5   : > { %p230_p3 = scmp.lt.s32.totalorder (!%p193_p2), %s2699_s19, 1 }
   0x6   : > { %196 = sbr.rel (%p193_p2) target bundleno = 855 (0x357), region = 32 }
   0xb   : > { %v259_v0 = vld [vmem:[%s4898_s2 + $0x8] sm:$0xff]  ;;  %v2718_v1 = vld [vmem:[%s4898_s2 + $0x18] sm:$0xff]  ;;  %v258_v2 = vld [vmem:[%s4898_s2] sm:$0xff]  ;;  %s4949_s19 = smov (!%p230_p3, %s2699_s19), 1  ;;  %vm260_vm0 = vcmask 130048   ;;  %vm433_vm1 = vcmask 523264  }
   0xc   : > { %299 = vmatpush.msra.mxu0 %v259_v0  ;;  %374 = vmatpush.msra.mxu1 %v2718_v1  ;;  %v2717_v3 = vld [vmem:[%s4898_s2 + $0x10] sm:$0xff]  ;;  %s2853_s28 = sshll.u32 %s4949_s19, 6  ;;  %v2727_v28 = vld [vmem:[%s4897_s1 + $0xf8] sm:$0xff]  ;;  %v326_v29 = vld [vmem:[%s4897_s1] sm:$0xff]  ;;  %vm2204_vm12 = vcmask 252928   ;;  %s3467_s16 = smul.u32 248, %s4949_s19 }
   0xd   : > { %s234_s6 = scalar_lea.vmem %s4896_s0, %s2853_s28  ;;  %v2739_v30 = vld [vmem:[%s4897_s1 + $0x158] sm:$0xff]  ;;  %v338_v31 = vld [vmem:[%s4897_s1 + $0x60] sm:$0xff]  ;;  %v327_v33 = vld [vmem:[%s4897_s1 + $0x8] sm:$0xff] }
   0xe   : > { %300 = vmatpush.msra.mxu0 %v258_v2  ;;  %375 = vmatpush.msra.mxu1 %v2717_v3  ;;  %v250_v4 = vld [vmem:[%s234_s6] sm:$0xff]  ;;  %v251_v5 = vld [vmem:[%s234_s6 + $0x8] sm:$0xff]  ;;  %v252_v6 = vld [vmem:[%s234_s6 + $0x10] sm:$0xff]  ;;  %s3486_s20 = scalar_lea.vmem %s4899_s3, %s3467_s16  ;;  %s4692_s23 = scalar_lea.vmem %s4900_s4, %s3467_s16 }
   0xf   : > { %2709 = vmatmul.msk.f32.vlgmr.msra.gmra.mxu0 %vm260_vm0, %v250_v4  ;;  %2719 = vmatmul.msk.f32.vlgmr.msra.gmra.mxu1 %vm260_vm0, %v250_v4  ;;  %v253_v7 = vld [vmem:[%s234_s6 + $0x18] sm:$0xff]  ;;  %v254_v8 = vld [vmem:[%s234_s6 + $0x20] sm:$0xff]  ;;  %v255_v9 = vld [vmem:[%s234_s6 + $0x28] sm:$0xff]  ;;  %s4700_s26 = scalar_lea.vmem %s4901_s5, %s3467_s16 }
  0x10   : > { %v256_v10 = vld [vmem:[%s234_s6 + $0x30] sm:$0xff]  ;;  %v257_v11 = vld [vmem:[%s234_s6 + $0x38] sm:$0xff]  ;;  %v2728_v32 = vld [vmem:[%s4897_s1 + $0x100] sm:$0xff] }
  0x11   : > { %v2740_v34 = vld [vmem:[%s4897_s1 + $0x160] sm:$0xff]  ;;  %v339_v35 = vld [vmem:[%s4897_s1 + $0x68] sm:$0xff]  ;;  %v328_v37 = vld [vmem:[%s4897_s1 + $0x10] sm:$0xff] }
  0x12   : > { %v2729_v36 = vld [vmem:[%s4897_s1 + $0x108] sm:$0xff]  ;;  %v340_v39 = vld [vmem:[%s4897_s1 + $0x70] sm:$0xff]  ;;  %v329_v41 = vld [vmem:[%s4897_s1 + $0x18] sm:$0xff] }
  0x13   : > { %v2741_v38 = vld [vmem:[%s4897_s1 + $0x168] sm:$0xff]  ;;  %v2730_v40 = vld [vmem:[%s4897_s1 + $0x110] sm:$0xff]  ;;  %v341_v43 = vld [vmem:[%s4897_s1 + $0x78] sm:$0xff] }
  0x14   : > { %v2742_v42 = vld [vmem:[%s4897_s1 + $0x170] sm:$0xff]  ;;  %v2731_v44 = vld [vmem:[%s4897_s1 + $0x118] sm:$0xff]  ;;  %v330_v45 = vld [vmem:[%s4897_s1 + $0x20] sm:$0xff] }
  0x15   : > { %v2743_v46 = vld [vmem:[%s4897_s1 + $0x178] sm:$0xff]  ;;  %v342_v47 = vld [vmem:[%s4897_s1 + $0x80] sm:$0xff]  ;;  %v331_v49 = vld [vmem:[%s4897_s1 + $0x28] sm:$0xff] }
  0x16   : > { %v2732_v48 = vld [vmem:[%s4897_s1 + $0x120] sm:$0xff]  ;;  %v343_v51 = vld [vmem:[%s4897_s1 + $0x88] sm:$0xff]  ;;  %v332_v53 = vld [vmem:[%s4897_s1 + $0x30] sm:$0xff] }
  0x17   : > { %2710 = vmatmul.msk.f32.gmra.mxu0 %vm260_vm0, %v251_v5  ;;  %2720 = vmatmul.msk.f32.gmra.mxu1 %vm260_vm0, %v251_v5  ;;  %v2744_v50 = vld [vmem:[%s4897_s1 + $0x180] sm:$0xff]  ;;  %v2733_v52 = vld [vmem:[%s4897_s1 + $0x128] sm:$0xff]  ;;  %v344_v55 = vld [vmem:[%s4897_s1 + $0x90] sm:$0xff] }
  0x18   : > { %v2745_v54 = vld [vmem:[%s4897_s1 + $0x188] sm:$0xff]  ;;  %v2734_v56 = vld [vmem:[%s4897_s1 + $0x130] sm:$0xff]  ;;  %v333_v57 = vld [vmem:[%s4897_s1 + $0x38] sm:$0xff] }
  0x19   : > { %v2746_v58 = vld [vmem:[%s4897_s1 + $0x190] sm:$0xff]  ;;  %v345_v59 = vld [vmem:[%s4897_s1 + $0x98] sm:$0xff]  ;;  %v334_v61 = vld [vmem:[%s4897_s1 + $0x40] sm:$0xff] }
  0x1a   : > { %v2735_v60 = vld [vmem:[%s4897_s1 + $0x138] sm:$0xff]  ;;  %v346_v63 = vld [vmem:[%s4897_s1 + $0xa0] sm:$0xff]  ;;  %v335_v1 = vld [vmem:[%s4897_s1 + $0x48] sm:$0xff] }
  0x1b   : > { %v2747_v62 = vld [vmem:[%s4897_s1 + $0x198] sm:$0xff]  ;;  %v2736_v0 = vld [vmem:[%s4897_s1 + $0x140] sm:$0xff]  ;;  %v347_v3 = vld [vmem:[%s4897_s1 + $0xa8] sm:$0xff] }
  0x1c   : > { %v2748_v2 = vld [vmem:[%s4897_s1 + $0x1a0] sm:$0xff]  ;;  %v2737_v4 = vld [vmem:[%s4897_s1 + $0x148] sm:$0xff]  ;;  %v336_v5 = vld [vmem:[%s4897_s1 + $0x50] sm:$0xff] }
  0x1f   : > { %2711 = vmatmul.msk.f32.gmra.mxu0 %vm260_vm0, %v252_v6  ;;  %2721 = vmatmul.msk.f32.gmra.mxu1 %vm260_vm0, %v252_v6  ;;  %v2749_v6 = vld [vmem:[%s4897_s1 + $0x1a8] sm:$0xff] }
  0x27   : > { %2712 = vmatmul.msk.f32.gmra.mxu0 %vm260_vm0, %v253_v7  ;;  %2722 = vmatmul.msk.f32.gmra.mxu1 %vm260_vm0, %v253_v7  ;;  %v348_v7 = vld [vmem:[%s4897_s1 + $0xb0] sm:$0xff] }
  0x2f   : > { %2713 = vmatmul.msk.f32.gmra.mxu0 %vm260_vm0, %v254_v8  ;;  %2723 = vmatmul.msk.f32.gmra.mxu1 %vm260_vm0, %v254_v8  ;;  %v2738_v8 = vld [vmem:[%s4897_s1 + $0x150] sm:$0xff] }
  0x37   : > { %2714 = vmatmul.msk.f32.gmra.mxu0 %vm260_vm0, %v255_v9  ;;  %2724 = vmatmul.msk.f32.gmra.mxu1 %vm260_vm0, %v255_v9  ;;  %v337_v9 = vld [vmem:[%s4897_s1 + $0x58] sm:$0xff] }
  0x3f   : > { %2715 = vmatmul.msk.f32.gmra.mxu0 %vm260_vm0, %v256_v10  ;;  %2725 = vmatmul.msk.f32.gmra.mxu1 %vm260_vm0, %v256_v10  ;;  %v2750_v10 = vld [vmem:[%s4897_s1 + $0x1b0] sm:$0xff] }
  0x47   : > { %2716 = vmatmul.msk.f32.gmra.mxu0 %vm260_vm0, %v257_v11  ;;  %2726 = vmatmul.msk.f32.gmra.mxu1 %vm260_vm0, %v257_v11  ;;  %v349_v11 = vld [vmem:[%s4897_s1 + $0xb8] sm:$0xff] }
  0x8c   : > { %v302_v12 = vpop.f32.mrf.mxu0  ;;  %v377_v13 = vpop.f32.mrf.mxu1 }
  0x94   : > { %v305_v14 = vpop.f32.mrf.mxu0  ;;  %v380_v15 = vpop.f32.mrf.mxu1 }
  0x9c   : > { %v308_v16 = vpop.f32.mrf.mxu0  ;;  %v383_v17 = vpop.f32.mrf.mxu1 }
  0xa4   : > { %v311_v18 = vpop.f32.mrf.mxu0  ;;  %v386_v19 = vpop.f32.mrf.mxu1 }
  0xac   : > { %v314_v20 = vpop.f32.mrf.mxu0  ;;  %v389_v21 = vpop.f32.mrf.mxu1 }
  0xb4   : > { %v317_v22 = vpop.f32.mrf.mxu0  ;;  %v392_v23 = vpop.f32.mrf.mxu1 }
  0xbc   : > { %v320_v24 = vpop.f32.mrf.mxu0  ;;  %v395_v25 = vpop.f32.mrf.mxu1 }
  0xc4   : > { %v323_v26 = vpop.f32.mrf.mxu0  ;;  %v398_v27 = vpop.f32.mrf.mxu1 }
  0xc5   : > { %535 = vmatpush.msrb.mxu0 %v398_v27  ;;  %2854 = vmatpush.msra.mxu2 %v398_v27 }
  0xc6   : > { %738 = vmatpush.msrb.mxu1 %v323_v26  ;;  %2862 = vmatpush.msra.mxu3 %v323_v26 }
  0xc7   : > { %536 = vmatpush.msrb.mxu0 %v395_v25  ;;  %2855 = vmatpush.msra.mxu2 %v395_v25 }
  0xc8   : > { %739 = vmatpush.msrb.mxu1 %v320_v24  ;;  %2863 = vmatpush.msra.mxu3 %v320_v24  ;;  %v354_v24 = vld [vmem:[%s4897_s1 + $0xe0] sm:$0xff] }
  0xc9   : > { %537 = vmatpush.msrb.mxu0 %v392_v23  ;;  %2856 = vmatpush.msra.mxu2 %v392_v23  ;;  %v2755_v23 = vld [vmem:[%s4897_s1 + $0x1d8] sm:$0xff] }
  0xca   : > { %740 = vmatpush.msrb.mxu1 %v317_v22  ;;  %2864 = vmatpush.msra.mxu3 %v317_v22 }
  0xcb   : > { %538 = vmatpush.msrb.mxu0 %v389_v21  ;;  %2857 = vmatpush.msra.mxu2 %v389_v21 }
  0xcc   : > { %741 = vmatpush.msrb.mxu1 %v314_v20  ;;  %2865 = vmatpush.msra.mxu3 %v314_v20 }
  0xcd   : > { %539 = vmatpush.msrb.mxu0 %v386_v19  ;;  %2858 = vmatpush.msra.mxu2 %v386_v19  ;;  %v353_v19 = vld [vmem:[%s4897_s1 + $0xd8] sm:$0xff] }
  0xce   : > { %742 = vmatpush.msrb.mxu1 %v311_v18  ;;  %2866 = vmatpush.msra.mxu3 %v311_v18  ;;  %v2754_v18 = vld [vmem:[%s4897_s1 + $0x1d0] sm:$0xff] }
  0xcf   : > { %540 = vmatpush.msrb.mxu0 %v383_v17  ;;  %2859 = vmatpush.msra.mxu2 %v383_v17  ;;  %v352_v17 = vld [vmem:[%s4897_s1 + $0xd0] sm:$0xff] }
  0xd0   : > { %743 = vmatpush.msrb.mxu1 %v308_v16  ;;  %2867 = vmatpush.msra.mxu3 %v308_v16  ;;  %v2753_v16 = vld [vmem:[%s4897_s1 + $0x1c8] sm:$0xff] }
  0xd1   : > { %541 = vmatpush.msrb.mxu0 %v380_v15  ;;  %2860 = vmatpush.msra.mxu2 %v380_v15  ;;  %v351_v15 = vld [vmem:[%s4897_s1 + $0xc8] sm:$0xff] }
  0xd2   : > { %744 = vmatpush.msrb.mxu1 %v305_v14  ;;  %2868 = vmatpush.msra.mxu3 %v305_v14  ;;  %v2752_v14 = vld [vmem:[%s4897_s1 + $0x1c0] sm:$0xff] }
  0xd3   : > { %542 = vmatpush.msrb.mxu0 %v377_v13  ;;  %2861 = vmatpush.msra.mxu2 %v377_v13  ;;  %v350_v13 = vld [vmem:[%s4897_s1 + $0xc0] sm:$0xff] }
  0xd4   : > { %745 = vmatpush.msrb.mxu1 %v302_v12  ;;  %2869 = vmatpush.msra.mxu3 %v302_v12  ;;  %v2751_v12 = vld [vmem:[%s4897_s1 + $0x1b8] sm:$0xff] }
  0xd5   : > { %2758 = vmatmul.msk.f32.vlgmr.msrb.gmra.mxu0 %vm433_vm1, %v2727_v28  ;;  %2789 = vmatmul.msk.f32.vlgmr.msrb.gmra.mxu1 %vm433_vm1, %v326_v29 }
  0xd6   : > { %2770 = vmatmul.msk.f32.vlgmr.msra.gmra.mxu2 %vm433_vm1, %v2739_v30  ;;  %2801 = vmatmul.msk.f32.vlgmr.msra.gmra.mxu3 %vm433_vm1, %v338_v31 }
  0xdd   : > { %2759 = vmatmul.msk.f32.gmra.mxu0 %vm433_vm1, %v2728_v32  ;;  %2790 = vmatmul.msk.f32.gmra.mxu1 %vm433_vm1, %v327_v33 }
  0xde   : > { %2771 = vmatmul.msk.f32.gmra.mxu2 %vm433_vm1, %v2740_v34  ;;  %2802 = vmatmul.msk.f32.gmra.mxu3 %vm433_vm1, %v339_v35 }
  0xe5   : > { %2760 = vmatmul.msk.f32.gmra.mxu0 %vm433_vm1, %v2729_v36  ;;  %2791 = vmatmul.msk.f32.gmra.mxu1 %vm433_vm1, %v328_v37  ;;  %v2756_v36 = vld [vmem:[%s4897_s1 + $0x1e0] sm:$0xff]  ;;  %v355_v37 = vld [vmem:[%s4897_s1 + $0xe8] sm:$0xff] }
  0xe6   : > { %2772 = vmatmul.msk.f32.gmra.mxu2 %vm433_vm1, %v2741_v38  ;;  %2803 = vmatmul.msk.f32.gmra.mxu3 %vm433_vm1, %v340_v39 }
  0xed   : > { %2761 = vmatmul.msk.f32.gmra.mxu0 %vm433_vm1, %v2730_v40  ;;  %2792 = vmatmul.msk.f32.gmra.mxu1 %vm433_vm1, %v329_v41 }
  0xee   : > { %2773 = vmatmul.msk.f32.gmra.mxu2 %vm433_vm1, %v2742_v42  ;;  %2804 = vmatmul.msk.f32.gmra.mxu3 %vm433_vm1, %v341_v43 }
  0xf5   : > { %2762 = vmatmul.msk.f32.gmra.mxu0 %vm433_vm1, %v2731_v44  ;;  %2793 = vmatmul.msk.f32.gmra.mxu1 %vm433_vm1, %v330_v45 }
  0xf6   : > { %2774 = vmatmul.msk.f32.gmra.mxu2 %vm433_vm1, %v2743_v46  ;;  %2805 = vmatmul.msk.f32.gmra.mxu3 %vm433_vm1, %v342_v47 }
  0xfd   : > { %2763 = vmatmul.msk.f32.gmra.mxu0 %vm433_vm1, %v2732_v48  ;;  %2794 = vmatmul.msk.f32.gmra.mxu1 %vm433_vm1, %v331_v49 }
  0xfe   : > { %2775 = vmatmul.msk.f32.gmra.mxu2 %vm433_vm1, %v2744_v50  ;;  %2806 = vmatmul.msk.f32.gmra.mxu3 %vm433_vm1, %v343_v51 }
 0x105   : > { %2764 = vmatmul.msk.f32.gmra.mxu0 %vm433_vm1, %v2733_v52  ;;  %2795 = vmatmul.msk.f32.gmra.mxu1 %vm433_vm1, %v332_v53 }
 0x106   : > { %2776 = vmatmul.msk.f32.gmra.mxu2 %vm433_vm1, %v2745_v54  ;;  %2807 = vmatmul.msk.f32.gmra.mxu3 %vm433_vm1, %v344_v55 }
 0x10d   : > { %2765 = vmatmul.msk.f32.gmra.mxu0 %vm433_vm1, %v2734_v56  ;;  %2796 = vmatmul.msk.f32.gmra.mxu1 %vm433_vm1, %v333_v57 }
 0x10e   : > { %2777 = vmatmul.msk.f32.gmra.mxu2 %vm433_vm1, %v2746_v58  ;;  %2808 = vmatmul.msk.f32.gmra.mxu3 %vm433_vm1, %v345_v59  ;;  %v2757_v59 = vld [vmem:[%s4897_s1 + $0x1e8] sm:$0xff] }
 0x115   : > { %2766 = vmatmul.msk.f32.gmra.mxu0 %vm433_vm1, %v2735_v60  ;;  %2797 = vmatmul.msk.f32.gmra.mxu1 %vm433_vm1, %v334_v61  ;;  %v356_v60 = vld [vmem:[%s4897_s1 + $0xf0] sm:$0xff] }
 0x116   : > { %2778 = vmatmul.msk.f32.gmra.mxu2 %vm433_vm1, %v2747_v62  ;;  %2809 = vmatmul.msk.f32.gmra.mxu3 %vm433_vm1, %v346_v63 }
 0x11d   : > { %2767 = vmatmul.msk.f32.gmra.mxu0 %vm433_vm1, %v2736_v0  ;;  %2798 = vmatmul.msk.f32.gmra.mxu1 %vm433_vm1, %v335_v1 }
 0x11e   : > { %2779 = vmatmul.msk.f32.gmra.mxu2 %vm433_vm1, %v2748_v2  ;;  %2810 = vmatmul.msk.f32.gmra.mxu3 %vm433_vm1, %v347_v3 }
 0x125   : > { %2768 = vmatmul.msk.f32.gmra.mxu0 %vm433_vm1, %v2737_v4  ;;  %2799 = vmatmul.msk.f32.gmra.mxu1 %vm433_vm1, %v336_v5 }
 0x126   : > { %2780 = vmatmul.msk.f32.gmra.mxu2 %vm433_vm1, %v2749_v6  ;;  %2811 = vmatmul.msk.f32.gmra.mxu3 %vm433_vm1, %v348_v7 }
 0x12d   : > { %2769 = vmatmul.msk.f32.gmra.mxu0 %vm433_vm1, %v2738_v8  ;;  %2800 = vmatmul.msk.f32.gmra.mxu1 %vm433_vm1, %v337_v9 }
 0x12e   : > { %2781 = vmatmul.msk.f32.gmra.mxu2 %vm433_vm1, %v2750_v10  ;;  %2812 = vmatmul.msk.f32.gmra.mxu3 %vm433_vm1, %v349_v11 }
 0x136   : > { %2782 = vmatmul.msk.f32.gmra.mxu2 %vm433_vm1, %v2751_v12  ;;  %2813 = vmatmul.msk.f32.gmra.mxu3 %vm433_vm1, %v350_v13 }
 0x13e   : > { %2783 = vmatmul.msk.f32.gmra.mxu2 %vm433_vm1, %v2752_v14  ;;  %2814 = vmatmul.msk.f32.gmra.mxu3 %vm433_vm1, %v351_v15 }
 0x146   : > { %2784 = vmatmul.msk.f32.gmra.mxu2 %vm433_vm1, %v2753_v16  ;;  %2815 = vmatmul.msk.f32.gmra.mxu3 %vm433_vm1, %v352_v17 }
 0x14e   : > { %2785 = vmatmul.msk.f32.gmra.mxu2 %vm433_vm1, %v2754_v18  ;;  %2816 = vmatmul.msk.f32.gmra.mxu3 %vm433_vm1, %v353_v19 }
 0x152   : > { %v544_v20 = vpop.f32.mrf.mxu0  ;;  %v747_v21 = vpop.f32.mrf.mxu1 }
 0x153   : > { %v3245_v22 = vadd.f32 %v747_v21, %v544_v20 }
 0x155   : > { %v3254_v25 = vmul.f32 0.70710677, %v3245_v22 }
 0x156   : > { %2786 = vmatmul.msk.f32.gmra.mxu2 %vm433_vm1, %v2755_v23  ;;  %2817 = vmatmul.msk.f32.gmra.mxu3 %vm433_vm1, %v354_v24 }
 0x157   : > { %v902_v26 = vmul.f32 %v3254_v25, %v3254_v25 }
 0x159   : > { %v3260_v27 = vmin.f32 %v902_v26, 16.0  ;;  %v580_v28 = vpop.f32.mrf.mxu2  ;;  %v783_v29 = vpop.f32.mrf.mxu3 }
 0x15a   : > { %v547_v30 = vpop.f32.mrf.mxu0  ;;  %v750_v31 = vpop.f32.mrf.mxu1  ;;  %v3262_v32 = vadd.f32 %v783_v29, %v580_v28 }
 0x15b   : > { %v904_v33 = vmul.f32 2.1237322e-06, %v3260_v27  ;;  %v915_v34 = vmul.f32 3.8918573e-05, %v3260_v27  ;;  %v3266_v35 = vadd.f32 %v750_v31, %v547_v30 }
 0x15c   : > { %v3275_v38 = vmul.f32 0.70710677, %v3262_v32 }
 0x15d   : > { %v905_v39 = vadd.f32 0.00028619796, %v904_v33  ;;  %v916_v40 = vadd.f32 0.001143296, %v915_v34  ;;  %v3278_v41 = vmul.f32 0.70710677, %v3266_v35 }
 0x15e   : > { %v1382_v42 = vmul.f32 %v3275_v38, %v3275_v38  ;;  %2787 = vmatmul.msk.f32.gmra.mxu2 %vm433_vm1, %v2756_v36  ;;  %2818 = vmatmul.msk.f32.gmra.mxu3 %vm433_vm1, %v355_v37 }
 0x15f   : > { %v906_v43 = vmul.f32 %v905_v39, %v3260_v27  ;;  %v917_v44 = vmul.f32 %v916_v40, %v3260_v27  ;;  %v942_v45 = vmul.f32 %v3278_v41, %v3278_v41 }
 0x160   : > { %v3288_v46 = vmin.f32 %v1382_v42, 16.0 }
 0x161   : > { %v907_v47 = vadd.f32 0.0036580483, %v906_v43  ;;  %v918_v48 = vadd.f32 0.014752088, %v917_v44  ;;  %v583_v49 = vpop.f32.mrf.mxu2  ;;  %v786_v50 = vpop.f32.mrf.mxu3  ;;  %v3290_v51 = vmin.f32 %v942_v45, 16.0 }
 0x162   : > { %v1384_v52 = vmul.f32 2.1237322e-06, %v3288_v46  ;;  %v1395_v53 = vmul.f32 3.8918573e-05, %v3288_v46  ;;  %v3296_v56 = vadd.f32 %v786_v50, %v583_v49  ;;  %v550_v57 = vpop.f32.mrf.mxu0  ;;  %v753_v58 = vpop.f32.mrf.mxu1 }
 0x163   : > { %v908_v54 = vmul.f32 %v907_v47, %v3260_v27  ;;  %v919_v55 = vmul.f32 %v918_v48, %v3260_v27  ;;  %v944_v61 = vmul.f32 2.1237322e-06, %v3290_v51  ;;  %v955_v62 = vmul.f32 3.8918573e-05, %v3290_v51 }
 0x164   : > { %v1385_v63 = vadd.f32 0.00028619796, %v1384_v52  ;;  %v1396_v2 = vadd.f32 0.001143296, %v1395_v53  ;;  %v3307_v6 = vadd.f32 %v753_v58, %v550_v57  ;;  %v3315_v10 = vmul.f32 0.70710677, %v3296_v56 }
 0x165   : > { %v909_v0 = vadd.f32 0.05243302, %v908_v54  ;;  %v920_v1 = vadd.f32 0.112945676, %v919_v55  ;;  %v945_v3 = vadd.f32 0.00028619796, %v944_v61 }
 0x166   : > { %v956_v4 = vadd.f32 0.001143296, %v955_v62  ;;  %v1386_v5 = vmul.f32 %v1385_v63, %v3288_v46  ;;  %2788 = vmatmul.msk.f32.gmra.mxu2 %vm433_vm1, %v2757_v59  ;;  %2819 = vmatmul.msk.f32.gmra.mxu3 %vm433_vm1, %v356_v60  ;;  %v1397_v9 = vmul.f32 %v1396_v2, %v3288_v46  ;;  %v1422_v15 = vmul.f32 %v3315_v10, %v3315_v10 }
 0x167   : > { %v910_v7 = vmul.f32 %v909_v0, %v3260_v27  ;;  %v921_v8 = vmul.f32 %v920_v1, %v3260_v27  ;;  %v946_v11 = vmul.f32 %v945_v3, %v3290_v51  ;;  %v3326_v24 = vmul.f32 0.70710677, %v3307_v6 }
 0x168   : > { %v957_v12 = vmul.f32 %v956_v4, %v3290_v51  ;;  %v1387_v13 = vadd.f32 0.0036580483, %v1386_v5  ;;  %v1398_v19 = vadd.f32 0.014752088, %v1397_v9  ;;  %v3323_v23 = vmin.f32 %v1422_v15, 16.0 }
 0x169   : > { %v922_v14 = vadd.f32 0.4994258, %v921_v8  ;;  %v947_v16 = vadd.f32 0.0036580483, %v946_v11  ;;  %v911_v20 = vadd.f32 0.18741608, %v910_v7  ;;  %v982_v40 = vmul.f32 %v3326_v24, %v3326_v24  ;;  %v789_v11 = vpop.f32.mrf.mxu3 }
 0x16a   : > { %v958_v17 = vadd.f32 0.014752088, %v957_v12  ;;  %v1388_v18 = vmul.f32 %v1387_v13, %v3288_v46  ;;  %v1399_v30 = vmul.f32 %v1398_v19, %v3288_v46  ;;  %v1424_v33 = vmul.f32 2.1237322e-06, %v3323_v23 }
 0x16b   : > { %v923_v21 = vmul.f32 %v922_v14, %v3260_v27  ;;  %v948_v26 = vmul.f32 %v947_v16, %v3290_v51  ;;  %v912_v42 = vmul.f32 %v911_v20, %v3260_v27  ;;  %v3342_v47 = vmul.f32 0.5, %v3245_v22 }
 0x16c   : > { %v959_v28 = vmul.f32 %v958_v17, %v3290_v51  ;;  %v1389_v29 = vadd.f32 0.05243302, %v1388_v18  ;;  %v1400_v39 = vadd.f32 0.112945676, %v1399_v30  ;;  %v1425_v49 = vadd.f32 0.00028619796, %v1424_v33 }
 0x16d   : > { %v3331_v31 = vadd.f32 1.0, %v923_v21  ;;  %v949_v34 = vadd.f32 0.05243302, %v948_v26  ;;  %v1435_v50 = vmul.f32 3.8918573e-05, %v3323_v23  ;;  %v3347_v54 = vmul.f32 0.5, %v3262_v32 }
 0x16e   : > { %v960_v36 = vadd.f32 0.112945676, %v959_v28  ;;  %v1390_v37 = vmul.f32 %v1389_v29, %v3288_v46  ;;  %v1401_v48 = vmul.f32 %v1400_v39, %v3288_v46  ;;  %v1426_v57 = vmul.f32 %v1425_v49, %v3323_v23 }
 0x16f   : > { %2879 = vrcp.f32 %v3331_v31  ;;  %v950_v43 = vmul.f32 %v949_v34, %v3290_v51  ;;  %v1436_v58 = vadd.f32 0.001143296, %v1435_v50  ;;  %v3351_v59 = vmin.f32 %v982_v40, 16.0 }
 0x170   : > { %v961_v44 = vmul.f32 %v960_v36, %v3290_v51  ;;  %v1391_v45 = vadd.f32 0.18741608, %v1390_v37  ;;  %v1402_v55 = vadd.f32 0.4994258, %v1401_v48  ;;  %v913_v22 = vadd.f32 1.1283791, %v912_v42  ;;  %v553_v36 = vpop.f32.mrf.mxu0  ;;  %v756_v37 = vpop.f32.mrf.mxu1 }
 0x171   : > { %v951_v52 = vadd.f32 0.18741608, %v950_v43  ;;  %v3354_v60 = vmul.f32 0.5, %v3266_v35  ;;  %v936_v32 = vand.u32 2147483648, %v3331_v31  ;;  %v1427_v1 = vadd.f32 0.0036580483, %v1426_v57 }
 0x172   : > { %v962_v53 = vadd.f32 0.4994258, %v961_v44  ;;  %v1392_v27 = vmul.f32 %v1391_v45, %v3288_v46  ;;  %v1403_v0 = vmul.f32 %v1402_v55, %v3288_v46  ;;  %v1437_v2 = vmul.f32 %v1436_v58, %v3323_v23  ;;  %v586_v46 = vpop.f32.mrf.mxu2 }
 0x173   : > { %v952_v61 = vmul.f32 %v951_v52, %v3290_v51  ;;  %v3368_v5 = vmul.f32 0.5, %v3296_v56  ;;  %v984_v9 = vmul.f32 2.1237322e-06, %v3351_v59  ;;  %v3376_v14 = vmul.f32 0.5, %v3307_v6 }
 0x174   : > { %v963_v62 = vmul.f32 %v962_v53, %v3290_v51  ;;  %v1393_v35 = vadd.f32 1.1283791, %v1392_v27  ;;  %v3370_v7 = vadd.f32 1.0, %v1403_v0  ;;  %v1428_v51 = vmul.f32 %v1427_v1, %v3323_v23 }
 0x175   : > { %v3358_v63 = vpop.eup %2879  ;;  %v1438_v8 = vadd.f32 0.014752088, %v1437_v2  ;;  %v953_v13 = vadd.f32 1.1283791, %v952_v61  ;;  %v3379_v15 = vmul.f32 %v913_v22, %v3254_v25  ;;  %v934_v56 = vand.u32 2147483647, %v3331_v31 }
 0x176   : > { %v926_v3 = vmul.f32 %v3358_v63, %v3331_v31  ;;  %v3365_v4 = vadd.f32 1.0, %v963_v62  ;;  %v3382_v16 = vor.u32 1.1754944e-38, %v936_v32  ;;  %vm931_vm2 = vweird.f32 %v3358_v63 }
 0x177   : > { %v3387_v17 = vmul.f32 %v1393_v35, %v3275_v38  ;;  %v1429_v18 = vadd.f32 0.05243302, %v1428_v51  ;;  %v3389_v19 = vadd.f32 %v789_v11, %v586_v46  ;;  %vm930_vm3 = vweird.f32 %v3331_v31 }
 0x178   : > { %v927_v12 = vsub.f32 1.0, %v926_v3  ;;  %2881 = vrcp.f32 %v3365_v4  ;;  %v974_v6 = vand.u32 2147483647, %v3365_v4  ;;  %v976_v25 = vand.u32 2147483648, %v3365_v4  ;;  %vm3428_vm8 = vmor %vm930_vm3, %vm931_vm2 }
 0x179   : > { %2883 = vrcp.f32 %v3370_v7  ;;  %v1439_v20 = vmul.f32 %v1438_v8, %v3323_v23  ;;  %v985_v21 = vadd.f32 0.00028619796, %v984_v9  ;;  %v954_v28 = vmul.f32 %v953_v13, %v3278_v41 }
 0x17a   : > { %v928_v26 = vmul.f32 %v3358_v63, %v927_v12  ;;  %v1416_v29 = vand.u32 2147483648, %v3370_v7  ;;  %v1430_v38 = vmul.f32 %v1429_v18, %v3323_v23  ;;  %vm970_vm4 = vweird.f32 %v3365_v4  ;;  %v589_v31 = vpop.f32.mrf.mxu2 }
 0x17b   : > { %v1414_v30 = vand.u32 2147483647, %v3370_v7  ;;  %v1440_v33 = vadd.f32 0.112945676, %v1439_v20  ;;  %v986_v34 = vmul.f32 %v985_v21, %v3351_v59  ;;  %vm1410_vm5 = vweird.f32 %v3370_v7 }
 0x17c   : > { %v1431_v40 = vadd.f32 0.18741608, %v1430_v38  ;;  %v995_v42 = vmul.f32 3.8918573e-05, %v3351_v59  ;;  %v3405_v41 = vmul.f32 0.70710677, %v3389_v19  ;;  %v929_v50 = vadd.f32 %v3358_v63, %v928_v26 }
 0x17d   : > { %vm3408_vm6 = vcmp.eq.f32.partialorder %v974_v6, 8.507059e+37  ;;  %v977_v48 = vor.u32 1.1754944e-38, %v976_v25  ;;  %v1441_v49 = vmul.f32 %v1440_v33, %v3323_v23  ;;  %v1417_v53 = vor.u32 1.1754944e-38, %v1416_v29 }
 0x17e   : > { %v2882_v39 = vpop.eup %2881  ;;  %v3415_v27 = vadd.f32 %v756_v37, %v553_v36  ;;  %v987_v58 = vadd.f32 0.0036580483, %v986_v34  ;;  %v1462_v22 = vmul.f32 %v3405_v41, %v3405_v41  ;;  %v1432_v62 = vmul.f32 %v1431_v40, %v3323_v23 }
 0x17f   : > { %v2884_v43 = vpop.eup %2883  ;;  %v966_v44 = vmul.f32 %v2882_v39, %v3365_v4  ;;  %v1442_v57 = vadd.f32 0.4994258, %v1441_v49  ;;  %vm971_vm7 = vweird.f32 %v2882_v39  ;;  %v996_v32 = vadd.f32 0.001143296, %v995_v42 }
 0x180   : > { %v1406_v52 = vmul.f32 %v2884_v43, %v3370_v7  ;;  %v988_v2 = vmul.f32 %v987_v58, %v3351_v59  ;;  %v3422_v3 = vmin.f32 %v1462_v22, 16.0  ;;  %vm1411_vm9 = vweird.f32 %v2884_v43  ;;  %vm972_vm10 = vmor %vm970_vm4, %vm971_vm7 }
 0x181   : > { %v967_v55 = vsub.f32 1.0, %v966_v44  ;;  %v1443_v1 = vmul.f32 %v1442_v57, %v3323_v23  ;;  %v997_v8 = vmul.f32 %v996_v32, %v3351_v59  ;;  %v3434_v9 = vmul.f32 0.70710677, %v3415_v27  ;;  %vm1412_vm11 = vmor %vm1410_vm5, %vm1411_vm9 }
 0x182   : > { %v1407_v61 = vsub.f32 1.0, %v1406_v52  ;;  %v933_v23 = vsel %vm3428_vm8, %v3358_v63, %v929_v50  ;;  %v989_v12 = vadd.f32 0.05243302, %v988_v2  ;;  %v1433_v18 = vadd.f32 1.1283791, %v1432_v62 }
 0x183   : > { %v968_v0 = vmul.f32 %v2882_v39, %v967_v55  ;;  %v3439_v11 = vadd.f32 1.0, %v1443_v1  ;;  %v998_v6 = vadd.f32 0.014752088, %v997_v8  ;;  %v1464_v25 = vmul.f32 2.1237322e-06, %v3422_v3 }
 0x184   : > { %v1408_v51 = vmul.f32 %v2884_v43, %v1407_v61  ;;  %v1475_v63 = vmul.f32 3.8918573e-05, %v3422_v3  ;;  %v1022_v21 = vmul.f32 %v3434_v9, %v3434_v9  ;;  %vm1415_vm13 = vcmp.eq.f32.partialorder %v1414_v30, 8.507059e+37 }
 0x185   : > { %v969_v46 = vadd.f32 %v2882_v39, %v968_v0  ;;  %2885 = vrcp.f32 %v3439_v11  ;;  %v990_v29 = vmul.f32 %v989_v12, %v3351_v59  ;;  %vm935_vm14 = vcmp.eq.f32.partialorder %v934_v56, 8.507059e+37  ;;  %v792_v56 = vpop.f32.mrf.mxu3  ;;  %v556_v12 = vpop.f32.mrf.mxu0 }
 0x186   : > { %v1409_v13 = vadd.f32 %v2884_v43, %v1408_v51  ;;  %v999_v33 = vmul.f32 %v998_v6, %v3351_v59  ;;  %v3458_v34 = vsel %vm935_vm14, %v3382_v16, %v933_v23  ;;  %v3462_v37 = vmul.f32 %v1433_v18, %v3315_v10 }
 0x187   : > { %v973_v20 = vsel %vm972_vm10, %v2882_v39, %v969_v46  ;;  %v1465_v39 = vadd.f32 0.00028619796, %v1464_v25  ;;  %v1476_v42 = vadd.f32 0.001143296, %v1475_v63  ;;  %vm1450_vm15 = vweird.f32 %v3439_v11 }
 0x188   : > { %v978_v4 = vsel %vm3408_vm6, %v977_v48, %v973_v20  ;;  %v1413_v26 = vsel %vm1412_vm11, %v2884_v43, %v1409_v13  ;;  %v1000_v40 = vadd.f32 0.112945676, %v999_v33  ;;  %v3464_v43 = vmin.f32 %v1022_v21, 16.0  ;;  %v759_v13 = vpop.f32.mrf.mxu1 }
 0x189   : > { %v979_v7 = vmul.f32 %v978_v4, %v954_v28  ;;  %v1418_v38 = vsel %vm1415_vm13, %v1417_v53, %v1413_v26  ;;  %v1454_v16 = vand.u32 2147483647, %v3439_v11  ;;  %v1466_v10 = vmul.f32 %v1465_v39, %v3422_v3 }
 0x18a   : > { %v1419_v36 = vmul.f32 %v1418_v38, %v3387_v17  ;;  %v991_v17 = vadd.f32 0.18741608, %v990_v29  ;;  %v1001_v48 = vmul.f32 %v1000_v40, %v3351_v59  ;;  %v1477_v49 = vmul.f32 %v1476_v42, %v3422_v3 }
 0x18b   : > { %v2821_v30 = vclamps-f32 %v979_v7, 1.0  ;;  %v2886_v44 = vpop.eup %2885  ;;  %v1024_v50 = vmul.f32 2.1237322e-06, %v3464_v43  ;;  %v1456_v55 = vand.u32 2147483648, %v3439_v11  ;;  %v3477_v57 = vadd.f32 %v792_v56, %v589_v31 }
 0x18c   : > { %v2832_v28 = vclamps-f32 %v1419_v36, 1.0  ;;  %v1446_v53 = vmul.f32 %v2886_v44, %v3439_v11  ;;  %v1002_v22 = vadd.f32 0.4994258, %v1001_v48  ;;  %v1467_v61 = vadd.f32 0.0036580483, %v1466_v10 }
 0x18d   : > { %v2143_v45 = vadd.f32 1.0, %v2821_v30  ;;  %v1478_v62 = vadd.f32 0.014752088, %v1477_v49  ;;  %v992_v1 = vmul.f32 %v991_v17, %v3351_v59  ;;  %v1025_v2 = vadd.f32 0.00028619796, %v1024_v50 }
 0x18e   : > { %v2154_v52 = vadd.f32 1.0, %v2832_v28  ;;  %v1447_v0 = vsub.f32 1.0, %v1446_v53  ;;  %v1468_v35 = vmul.f32 %v1467_v61, %v3422_v3  ;;  %v1035_v8 = vmul.f32 3.8918573e-05, %v3464_v43 }
 0x18f   : > { %v3480_v58 = vmul.f32 %v2143_v45, %v3354_v60  ;;  %v1003_v60 = vmul.f32 %v1002_v22, %v3351_v59  ;;  %v1479_v51 = vmul.f32 %v1478_v62, %v3422_v3  ;;  %vm1451_vm0 = vweird.f32 %v2886_v44 }
 0x190   : > { %v3489_v32 = vmul.f32 %v2154_v52, %v3347_v54  ;;  %v1448_v54 = vmul.f32 %v2886_v44, %v1447_v0  ;;  %v1026_v23 = vmul.f32 %v1025_v2, %v3464_v43  ;;  %v3504_v46 = vmul.f32 0.70710677, %v3477_v57  ;;  %vm1452_vm2 = vmor %vm1450_vm15, %vm1451_vm0 }
 0x191   : > { %2206 = vst.msk [vmem:[%s3486_s20 + $0x8] sm:$0xff] %vm2204_vm12, %v3480_v58  ;;  %vm3506_vm1 = vcmp.eq.f32.partialorder %v1454_v16, 8.507059e+37  ;;  %v3510_v18 = vadd.f32 1.0, %v1003_v60  ;;  %v1469_v6 = vadd.f32 0.05243302, %v1468_v35  ;;  %v1457_v63 = vor.u32 1.1754944e-38, %v1456_v55 }
 0x192   : > { %2217 = vst.msk [vmem:[%s3486_s20 + $0x60] sm:$0xff] %vm2204_vm12, %v3489_v32  ;;  %v1480_v25 = vadd.f32 0.112945676, %v1479_v51  ;;  %v1449_v20 = vadd.f32 %v2886_v44, %v1448_v54  ;;  %v1027_v21 = vadd.f32 0.0036580483, %v1026_v23  ;;  %v1502_v29 = vmul.f32 %v3504_v46, %v3504_v46 }
 0x193   : > { %v1036_v4 = vadd.f32 0.001143296, %v1035_v8  ;;  %v993_v26 = vadd.f32 1.1283791, %v992_v1  ;;  %2887 = vrcp.f32 %v3510_v18  ;;  %v3517_v7 = vadd.f32 %v759_v13, %v556_v12  ;;  %v559_v12 = vpop.f32.mrf.mxu0 }
 0x194   : > { %v1453_v38 = vsel %vm1452_vm2, %v2886_v44, %v1449_v20  ;;  %v1470_v33 = vmul.f32 %v1469_v6, %v3422_v3  ;;  %v1481_v36 = vmul.f32 %v1480_v25, %v3422_v3  ;;  %v1028_v39 = vmul.f32 %v1027_v21, %v3464_v43 }
 0x195   : > { %v3524_v30 = vmul.f32 %v3458_v34, %v3379_v15  ;;  %v1458_v11 = vsel %vm3506_vm1, %v1457_v63, %v1453_v38  ;;  %v3529_v40 = vmul.f32 0.5, %v3389_v19  ;;  %v1037_v42 = vmul.f32 %v1036_v4, %v3464_v43 }
 0x196   : > { %v1459_v31 = vmul.f32 %v1458_v11, %v3462_v37  ;;  %v1471_v56 = vadd.f32 0.18741608, %v1470_v33  ;;  %v1482_v28 = vadd.f32 0.4994258, %v1481_v36  ;;  %v1029_v16 = vadd.f32 0.05243302, %v1028_v39 }
 0x197   : > { %v3534_v17 = vmul.f32 0.5, %v3415_v27  ;;  %v1038_v10 = vadd.f32 0.014752088, %v1037_v42  ;;  %v3536_v44 = vmin.f32 %v1502_v29, 16.0  ;;  %v3539_v15 = vmul.f32 0.70710677, %v3517_v7 }
 0x198   : > { %v2833_v34 = vclamps-f32 %v1459_v31, 1.0  ;;  %v994_v19 = vmul.f32 %v993_v26, %v3326_v24  ;;  %v1472_v45 = vmul.f32 %v1471_v56, %v3422_v3  ;;  %v1483_v48 = vmul.f32 %v1482_v28, %v3422_v3 }
 0x199   : > { %v2888_v37 = vpop.eup %2887  ;;  %v1014_v49 = vand.u32 2147483647, %v3510_v18  ;;  %v1039_v50 = vmul.f32 %v1038_v10, %v3464_v43  ;;  %v1504_v27 = vmul.f32 2.1237322e-06, %v3536_v44  ;;  %v1062_v52 = vmul.f32 %v3539_v15, %v3539_v15 }
 0x19a   : > { %v2155_v53 = vadd.f32 1.0, %v2833_v34  ;;  %v1006_v55 = vmul.f32 %v2888_v37, %v3510_v18  ;;  %v1016_v24 = vand.u32 2147483648, %v3510_v18  ;;  %v1030_v22 = vmul.f32 %v1029_v16, %v3464_v43  ;;  %v592_v34 = vpop.f32.mrf.mxu2 }
 0x19b   : > { %v3552_v61 = vadd.f32 1.0, %v1483_v48  ;;  %v1040_v3 = vadd.f32 0.112945676, %v1039_v50  ;;  %v1515_v62 = vmul.f32 3.8918573e-05, %v3536_v44  ;;  %v3555_v0 = vmin.f32 %v1062_v52, 16.0 }
 0x19c   : > { %v3558_v1 = vmul.f32 %v2155_v53, %v3368_v5  ;;  %v1007_v2 = vsub.f32 1.0, %v1006_v55  ;;  %v1473_v60 = vadd.f32 1.1283791, %v1472_v45  ;;  %v1505_v35 = vadd.f32 0.00028619796, %v1504_v27  ;;  %v795_v45 = vpop.f32.mrf.mxu3 }
 0x19d   : > { %vm1010_vm3 = vweird.f32 %v3510_v18  ;;  %vm1011_vm4 = vweird.f32 %v2888_v37  ;;  %2889 = vrcp.f32 %v3552_v61  ;;  %v3563_v51 = vmul.f32 0.5, %v3477_v57 }
 0x19e   : > { %2218 = vst.msk [vmem:[%s3486_s20 + $0x68] sm:$0xff] %vm2204_vm12, %v3558_v1  ;;  %v1008_v8 = vmul.f32 %v2888_v37, %v1007_v2  ;;  %v1031_v54 = vadd.f32 0.18741608, %v1030_v22  ;;  %v1041_v23 = vmul.f32 %v1040_v3, %v3464_v43  ;;  %v1506_v5 = vmul.f32 %v1505_v35, %v3536_v44  ;;  %vm1012_vm6 = vmor %vm1010_vm3, %vm1011_vm4 }
 0x19f   : > { %vm3570_vm5 = vcmp.eq.f32.partialorder %v1014_v49, 8.507059e+37  ;;  %v1017_v13 = vor.u32 1.1754944e-38, %v1016_v24  ;;  %v1516_v59 = vadd.f32 0.001143296, %v1515_v62  ;;  %v1064_v6 = vmul.f32 2.1237322e-06, %v3555_v0 }
 0x1a0   : > { %v1009_v25 = vadd.f32 %v2888_v37, %v1008_v8  ;;  %v3576_v57 = vmul.f32 %v1473_v60, %v3405_v41  ;;  %v1042_v20 = vadd.f32 0.4994258, %v1041_v23  ;;  %v1507_v63 = vadd.f32 0.0036580483, %v1506_v5 }
 0x1a1   : > { %v1494_v21 = vand.u32 2147483647, %v3552_v61  ;;  %v1517_v4 = vmul.f32 %v1516_v59, %v3536_v44  ;;  %v1065_v26 = vadd.f32 0.00028619796, %v1064_v6  ;;  %v1075_v29 = vmul.f32 3.8918573e-05, %v3555_v0 }
 0x1a2   : > { %v1013_v38 = vsel %vm1012_vm6, %v2888_v37, %v1009_v25  ;;  %v1032_v33 = vmul.f32 %v1031_v54, %v3464_v43  ;;  %v1043_v36 = vmul.f32 %v1042_v20, %v3464_v43  ;;  %v1508_v41 = vmul.f32 %v1507_v63, %v3536_v44 }
 0x1a3   : > { %v2890_v39 = vpop.eup %2889  ;;  %v1018_v11 = vsel %vm3570_vm5, %v1017_v13, %v1013_v38  ;;  %v1518_v18 = vadd.f32 0.014752088, %v1517_v4  ;;  %v1066_v42 = vmul.f32 %v1065_v26, %v3555_v0  ;;  %v1076_v31 = vadd.f32 0.001143296, %v1075_v29  ;;  %v762_v13 = vpop.f32.mrf.mxu1 }
 0x1a4   : > { %v1019_v56 = vmul.f32 %v1018_v11, %v994_v19  ;;  %v1486_v28 = vmul.f32 %v2890_v39, %v3552_v61  ;;  %v1496_v16 = vand.u32 2147483648, %v3552_v61  ;;  %v3592_v10 = vadd.f32 1.0, %v1043_v36 }
 0x1a5   : > { %v1509_v43 = vadd.f32 0.05243302, %v1508_v41  ;;  %v1519_v48 = vmul.f32 %v1518_v18, %v3536_v44  ;;  %v1067_v37 = vadd.f32 0.0036580483, %v1066_v42  ;;  %v1077_v49 = vmul.f32 %v1076_v31, %v3555_v0 }
 0x1a6   : > { %v2822_v50 = vclamps-f32 %v1019_v56, 1.0  ;;  %v1487_v27 = vsub.f32 1.0, %v1486_v28  ;;  %v1033_v52 = vadd.f32 1.1283791, %v1032_v33  ;;  %2891 = vrcp.f32 %v3592_v10 }
 0x1a7   : > { %vm1491_vm7 = vweird.f32 %v2890_v39  ;;  %v1510_v19 = vmul.f32 %v1509_v43, %v3536_v44  ;;  %v1520_v53 = vadd.f32 0.112945676, %v1519_v48  ;;  %v3598_v55 = vadd.f32 %v795_v45, %v592_v34 }
 0x1a8   : > { %v2144_v24 = vadd.f32 1.0, %v2822_v50  ;;  %v1488_v22 = vmul.f32 %v2890_v39, %v1487_v27  ;;  %v1068_v3 = vmul.f32 %v1067_v37, %v3555_v0  ;;  %v1078_v62 = vadd.f32 0.014752088, %v1077_v49 }
 0x1a9   : > { %vm1490_vm8 = vweird.f32 %v3552_v61  ;;  %vm3602_vm9 = vcmp.eq.f32.partialorder %v1494_v21, 8.507059e+37  ;;  %v1511_v60 = vadd.f32 0.18741608, %v1510_v19  ;;  %v1521_v35 = vmul.f32 %v1520_v53, %v3536_v44 }
 0x1aa   : > { %v3608_v8 = vmul.f32 %v2144_v24, %v3376_v14  ;;  %v1489_v54 = vadd.f32 %v2890_v39, %v1488_v22  ;;  %v1069_v23 = vadd.f32 0.05243302, %v1068_v3  ;;  %v1079_v5 = vmul.f32 %v1078_v62, %v3555_v0  ;;  %vm1492_vm10 = vmor %vm1490_vm8, %vm1491_vm7  ;;  %v595_v22 = vpop.f32.mrf.mxu2  ;;  %v798_v3 = vpop.f32.mrf.mxu3 }
 0x1ab   : > { %v1497_v61 = vor.u32 1.1754944e-38, %v1496_v16  ;;  %v1512_v59 = vmul.f32 %v1511_v60, %v3536_v44  ;;  %v1522_v6 = vadd.f32 0.4994258, %v1521_v35  ;;  %v3614_v25 = vmul.f32 0.70710677, %v3598_v55 }
 0x1ac   : > { %v2892_v20 = vpop.eup %2891  ;;  %2207 = vst.msk [vmem:[%s3486_s20 + $0x10] sm:$0xff] %vm2204_vm12, %v3608_v8  ;;  %v1493_v14 = vsel %vm1492_vm10, %v2890_v39, %v1489_v54  ;;  %v1034_v63 = vmul.f32 %v1033_v52, %v3434_v9  ;;  %v1070_v21 = vmul.f32 %v1069_v23, %v3555_v0  ;;  %v1080_v4 = vadd.f32 0.112945676, %v1079_v5 }
 0x1ad   : > { %v1498_v26 = vsel %vm3602_vm9, %v1497_v61, %v1493_v14  ;;  %v1046_v29 = vmul.f32 %v2892_v20, %v3592_v10  ;;  %v1054_v38 = vand.u32 2147483647, %v3592_v10  ;;  %v3625_v33 = vadd.f32 %v762_v13, %v559_v12 }
 0x1ae   : > { %v1499_v36 = vmul.f32 %v1498_v26, %v3576_v57  ;;  %v1523_v41 = vmul.f32 %v1522_v6, %v3536_v44  ;;  %v1071_v11 = vadd.f32 0.18741608, %v1070_v21  ;;  %v1081_v39 = vmul.f32 %v1080_v4, %v3555_v0 }
 0x1af   : > { %v1047_v9 = vsub.f32 1.0, %v1046_v29  ;;  %v1056_v18 = vand.u32 2147483648, %v3592_v10  ;;  %v1513_v42 = vadd.f32 1.1283791, %v1512_v59  ;;  %v1542_v31 = vmul.f32 %v3614_v25, %v3614_v25 }
 0x1b0   : > { %v2834_v56 = vclamps-f32 %v1499_v36, 1.0  ;;  %vm1050_vm11 = vweird.f32 %v3592_v10  ;;  %v3634_v28 = vadd.f32 1.0, %v1523_v41  ;;  %v1082_v16 = vadd.f32 0.4994258, %v1081_v39 }
 0x1b1   : > { %v1048_v34 = vmul.f32 %v2892_v20, %v1047_v9  ;;  %vm1051_vm13 = vweird.f32 %v2892_v20  ;;  %v1072_v44 = vmul.f32 %v1071_v11, %v3555_v0  ;;  %v3637_v57 = vmin.f32 %v1542_v31, 16.0 }
 0x1b2   : > { %v2156_v45 = vadd.f32 1.0, %v2834_v56  ;;  %vm3639_vm14 = vcmp.eq.f32.partialorder %v1054_v38, 8.507059e+37  ;;  %2893 = vrcp.f32 %v3634_v28  ;;  %v3645_v48 = vmul.f32 0.70710677, %v3625_v33  ;;  %vm1052_vm15 = vmor %vm1050_vm11, %vm1051_vm13 }
 0x1b3   : > { %v1049_v37 = vadd.f32 %v2892_v20, %v1048_v34  ;;  %v1057_v49 = vor.u32 1.1754944e-38, %v1056_v18  ;;  %v3648_v50 = vmul.f32 %v1513_v42, %v3504_v46  ;;  %v1083_v27 = vmul.f32 %v1082_v16, %v3555_v0 }
 0x1b4   : > { %v3652_v52 = vmul.f32 %v2156_v45, %v3529_v40  ;;  %v1536_v19 = vand.u32 2147483648, %v3634_v28  ;;  %v1544_v53 = vmul.f32 2.1237322e-06, %v3637_v57  ;;  %v1555_v24 = vmul.f32 3.8918573e-05, %v3637_v57 }
 0x1b5   : > { %v1053_v62 = vsel %vm1052_vm15, %v2892_v20, %v1049_v37  ;;  %v1534_v46 = vand.u32 2147483647, %v3634_v28  ;;  %v1073_v2 = vadd.f32 1.1283791, %v1072_v44  ;;  %v3660_v60 = vadd.f32 1.0, %v1083_v27 }
 0x1b6   : > { %2219 = vst.msk [vmem:[%s3486_s20 + $0x70] sm:$0xff] %vm2204_vm12, %v3652_v52  ;;  %v1058_v40 = vsel %vm3639_vm14, %v1057_v49, %v1053_v62  ;;  %v1545_v0 = vadd.f32 0.00028619796, %v1544_v53  ;;  %v1556_v10 = vadd.f32 0.001143296, %v1555_v24  ;;  %v1102_v35 = vmul.f32 %v3645_v48, %v3645_v48 }
 0x1b7   : > { %v1059_v54 = vmul.f32 %v1058_v40, %v1034_v63  ;;  %vm1530_vm0 = vweird.f32 %v3634_v28  ;;  %2895 = vrcp.f32 %v3660_v60  ;;  %v3671_v23 = vadd.f32 %v798_v3, %v595_v22 }
 0x1b8   : > { %v2894_v5 = vpop.eup %2893  ;;  %v1537_v12 = vor.u32 1.1754944e-38, %v1536_v19  ;;  %v1546_v13 = vmul.f32 %v1545_v0, %v3637_v57  ;;  %v1557_v61 = vmul.f32 %v1556_v10, %v3637_v57  ;;  %v3675_v59 = vmin.f32 %v1102_v35, 16.0 }
 0x1b9   : > { %v2823_v6 = vclamps-f32 %v1059_v54, 1.0  ;;  %v1526_v20 = vmul.f32 %v2894_v5, %v3634_v28  ;;  %vm3678_vm1 = vcmp.eq.f32.partialorder %v1534_v46, 8.507059e+37  ;;  %v3683_v63 = vmul.f32 %v1073_v2, %v3539_v15 }
 0x1ba   : > { %v1094_v21 = vand.u32 2147483647, %v3660_v60  ;;  %vm1531_vm2 = vweird.f32 %v2894_v5  ;;  %v1096_v4 = vand.u32 2147483648, %v3660_v60  ;;  %v1547_v26 = vadd.f32 0.0036580483, %v1546_v13 }
 0x1bb   : > { %v1558_v29 = vadd.f32 0.014752088, %v1557_v61  ;;  %v2145_v38 = vadd.f32 1.0, %v2823_v6  ;;  %v1527_v36 = vsub.f32 1.0, %v1526_v20  ;;  %v1104_v41 = vmul.f32 2.1237322e-06, %v3675_v59  ;;  %vm1532_vm6 = vmor %vm1530_vm0, %vm1531_vm2 }
 0x1bc   : > { %v1115_v11 = vmul.f32 3.8918573e-05, %v3675_v59  ;;  %vm1090_vm3 = vweird.f32 %v3660_v60  ;;  %v1548_v39 = vmul.f32 %v1547_v26, %v3637_v57  ;;  %v3693_v9 = vmul.f32 0.70710677, %v3671_v23 }
 0x1bd   : > { %v1559_v15 = vmul.f32 %v1558_v29, %v3637_v57  ;;  %v2820_v18 = vclamps-f32 %v3524_v30, 1.0  ;;  %v2896_v42 = vpop.eup %2895  ;;  %v3697_v31 = vmul.f32 %v2145_v38, %v3534_v17  ;;  %v1528_v56 = vmul.f32 %v2894_v5, %v1527_v36 }
 0x1be   : > { %v1105_v16 = vadd.f32 0.00028619796, %v1104_v41  ;;  %v1116_v34 = vadd.f32 0.001143296, %v1115_v11  ;;  %v1086_v44 = vmul.f32 %v2896_v42, %v3660_v60  ;;  %vm1091_vm4 = vweird.f32 %v2896_v42 }
 0x1bf   : > { %vm3700_vm5 = vcmp.eq.f32.partialorder %v1094_v21, 8.507059e+37  ;;  %v1549_v43 = vadd.f32 0.05243302, %v1548_v39  ;;  %v1560_v37 = vadd.f32 0.112945676, %v1559_v15  ;;  %2208 = vst.msk [vmem:[%s3486_s20 + $0x18] sm:$0xff] %vm2204_vm12, %v3697_v31  ;;  %v1529_v30 = vadd.f32 %v2894_v5, %v1528_v56  ;;  %vm1092_vm7 = vmor %vm1090_vm3, %vm1091_vm4  ;;  %v598_v39 = vpop.f32.mrf.mxu2  ;;  %v801_v15 = vpop.f32.mrf.mxu3 }
 0x1c0   : > { %v1106_v49 = vmul.f32 %v1105_v16, %v3675_v59  ;;  %v1117_v17 = vmul.f32 %v1116_v34, %v3675_v59  ;;  %v1582_v27 = vmul.f32 %v3693_v9, %v3693_v9  ;;  %v1087_v19 = vsub.f32 1.0, %v1086_v44 }
 0x1c1   : > { %v1550_v53 = vmul.f32 %v1549_v43, %v3637_v57  ;;  %v1561_v24 = vmul.f32 %v1560_v37, %v3637_v57  ;;  %v2142_v22 = vadd.f32 1.0, %v2820_v18  ;;  %v1533_v3 = vsel %vm1532_vm6, %v2894_v5, %v1529_v30  ;;  %v562_v43 = vpop.f32.mrf.mxu0  ;;  %v765_v37 = vpop.f32.mrf.mxu1 }
 0x1c2   : > { %v1107_v62 = vadd.f32 0.0036580483, %v1106_v49  ;;  %v1118_v46 = vadd.f32 0.014752088, %v1117_v17  ;;  %v3716_v2 = vmin.f32 %v1582_v27, 16.0  ;;  %v1538_v40 = vsel %vm3678_vm1, %v1537_v12, %v1533_v3 }
 0x1c3   : > { %v1088_v0 = vmul.f32 %v2896_v42, %v1087_v19  ;;  %v1551_v10 = vadd.f32 0.18741608, %v1550_v53  ;;  %v1562_v35 = vadd.f32 0.4994258, %v1561_v24  ;;  %v1539_v28 = vmul.f32 %v1538_v40, %v3648_v50 }
 0x1c4   : > { %v1108_v54 = vmul.f32 %v1107_v62, %v3675_v59  ;;  %v1119_v13 = vmul.f32 %v1118_v46, %v3675_v59  ;;  %v1584_v61 = vmul.f32 2.1237322e-06, %v3716_v2  ;;  %v1097_v5 = vor.u32 1.1754944e-38, %v1096_v4 }
 0x1c5   : > { %v1089_v6 = vadd.f32 %v2896_v42, %v1088_v0  ;;  %v1552_v20 = vmul.f32 %v1551_v10, %v3637_v57  ;;  %v1563_v21 = vmul.f32 %v1562_v35, %v3637_v57  ;;  %v2835_v14 = vclamps-f32 %v1539_v28, 1.0 }
 0x1c6   : > { %v1109_v12 = vadd.f32 0.05243302, %v1108_v54  ;;  %v1120_v50 = vadd.f32 0.112945676, %v1119_v13  ;;  %v2173_v26 = vmul.f32 %v2142_v22, %v3342_v47  ;;  %v1585_v36 = vadd.f32 0.00028619796, %v1584_v61 }
 0x1c7   : > { %v1093_v29 = vsel %vm1092_vm7, %v2896_v42, %v1089_v6  ;;  %v3730_v38 = vadd.f32 1.0, %v1563_v21  ;;  %v1595_v4 = vmul.f32 3.8918573e-05, %v3716_v2  ;;  %v2157_v41 = vadd.f32 1.0, %v2835_v14 }
 0x1c8   : > { %v1098_v11 = vsel %vm3700_vm5, %v1097_v5, %v1093_v29  ;;  %v1110_v57 = vmul.f32 %v1109_v12, %v3675_v59  ;;  %v1121_v60 = vmul.f32 %v1120_v50, %v3675_v59  ;;  %2205 = vst.msk [vmem:[%s3486_s20] sm:$0xff] %vm2204_vm12, %v2173_v26  ;;  %v1553_v42 = vadd.f32 1.1283791, %v1552_v20  ;;  %v804_v20 = vpop.f32.mrf.mxu3 }
 0x1c9   : > { %v1099_v47 = vmul.f32 %v1098_v11, %v3683_v63  ;;  %2897 = vrcp.f32 %v3730_v38  ;;  %v3742_v18 = vmul.f32 %v2157_v41, %v3563_v51  ;;  %v1586_v44 = vmul.f32 %v1585_v36, %v3716_v2 }
 0x1ca   : > { %v1111_v56 = vadd.f32 0.18741608, %v1110_v57  ;;  %v1122_v34 = vadd.f32 0.4994258, %v1121_v60  ;;  %v1596_v45 = vadd.f32 0.001143296, %v1595_v4  ;;  %v3760_v3 = vadd.f32 %v801_v15, %v598_v39 }
 0x1cb   : > { %v2824_v16 = vclamps-f32 %v1099_v47, 1.0  ;;  %2220 = vst.msk [vmem:[%s3486_s20 + $0x78] sm:$0xff] %vm2204_vm12, %v3742_v18  ;;  %v844_v30 = vmul.f32 0.5, %v3517_v7  ;;  %v1574_v63 = vand.u32 2147483647, %v3730_v38  ;;  %v1576_v49 = vand.u32 2147483648, %v3730_v38 }
 0x1cc   : > { %v2236_v51 = vsel %vm2204_vm12, %v2173_v26, 0.0  ;;  %v1123_v27 = vmul.f32 %v1122_v34, %v3675_v59  ;;  %v1587_v19 = vadd.f32 0.0036580483, %v1586_v44  ;;  %v1597_v53 = vmul.f32 %v1596_v45, %v3716_v2 }
 0x1cd   : > { %v2146_v17 = vadd.f32 1.0, %v2824_v16  ;;  %2237 = vadd.xlane.f32.xlu0 %v2236_v51  ;;  %v3755_v24 = vmul.f32 0.5, %v3598_v55  ;;  %v1112_v22 = vmul.f32 %v1111_v56, %v3675_v59  ;;  %v3758_v7 = vadd.f32 %v765_v37, %v562_v43 }
 0x1ce   : > { %v3764_v40 = vadd.f32 1.0, %v1123_v27  ;;  %v1588_v0 = vmul.f32 %v1587_v19, %v3716_v2  ;;  %v1598_v10 = vadd.f32 0.014752088, %v1597_v53  ;;  %v1554_v35 = vmul.f32 %v1553_v42, %v3614_v25 }
 0x1cf   : > { %v2898_v62 = vpop.eup %2897  ;;  %v3762_v46 = vmul.f32 %v2146_v17, %v844_v30  ;;  %vm1570_vm8 = vweird.f32 %v3730_v38  ;;  %v3771_v55 = vmul.f32 0.5, %v3625_v33  ;;  %vm3776_vm9 = vcmp.eq.f32.partialorder %v1574_v63, 8.507059e+37  ;;  %v601_v33 = vpop.f32.mrf.mxu2 }
 0x1d0   : > { %v1566_v28 = vmul.f32 %v2898_v62, %v3730_v38  ;;  %v1577_v54 = vor.u32 1.1754944e-38, %v1576_v49  ;;  %2899 = vrcp.f32 %v3764_v40  ;;  %v2360_v13 = vmul.f32 %v2173_v26, %v2173_v26 }
 0x1d1   : > { %2209 = vst.msk [vmem:[%s3486_s20 + $0x20] sm:$0xff] %vm2204_vm12, %v3762_v46  ;;  %v1589_v25 = vadd.f32 0.05243302, %v1588_v0  ;;  %v1599_v6 = vmul.f32 %v1598_v10, %v3716_v2  ;;  %v3783_v5 = vmul.f32 0.70710677, %v3758_v7  ;;  %vm1571_vm10 = vweird.f32 %v2898_v62 }
 0x1d2   : > { %v1567_v61 = vsub.f32 1.0, %v1566_v28  ;;  %v1113_v21 = vadd.f32 1.1283791, %v1112_v22  ;;  %v1134_v14 = vand.u32 2147483647, %v3764_v40  ;;  %v2391_v41 = vsel %vm2204_vm12, %v2360_v13, 0.0  ;;  %vm1572_vm11 = vmor %vm1570_vm8, %vm1571_vm10 }
 0x1d3   : > { %v3787_v12 = vmul.f32 0.70710677, %v3760_v3  ;;  %v1590_v29 = vmul.f32 %v1589_v25, %v3716_v2  ;;  %v1600_v26 = vadd.f32 0.112945676, %v1599_v6  ;;  %v1142_v36 = vmul.f32 %v3783_v5, %v3783_v5  ;;  %2392 = vadd.xlane.f32.xlu1 %v2391_v41 }
 0x1d4   : > { %v1568_v50 = vmul.f32 %v2898_v62, %v1567_v61  ;;  %v2272_v11 = vsel %vm2204_vm12, %v3489_v32, 0.0  ;;  %v3797_v57 = vadd.f32 %v804_v20, %v601_v33  ;;  %v1114_v56 = vmul.f32 %v1113_v21, %v3645_v48 }
 0x1d5   : > { %v1622_v4 = vmul.f32 %v3787_v12, %v3787_v12  ;;  %v1591_v39 = vadd.f32 0.18741608, %v1590_v29  ;;  %v1601_v15 = vmul.f32 %v1600_v26, %v3716_v2  ;;  %v3800_v47 = vmin.f32 %v1142_v36, 16.0  ;;  %2273 = vadd.xlane.f32.xlu0 %v2272_v11 }
 0x1d6   : > { %v1569_v60 = vadd.f32 %v2898_v62, %v1568_v50  ;;  %v2900_v42 = vpop.eup %2899  ;;  %vm1130_vm13 = vweird.f32 %v3764_v40  ;;  %v1136_v16 = vand.u32 2147483648, %v3764_v40  ;;  %vm3811_vm14 = vcmp.eq.f32.partialorder %v1134_v14, 8.507059e+37 }
 0x1d7   : > { %v3808_v34 = vmin.f32 %v1622_v4, 16.0  ;;  %v1126_v45 = vmul.f32 %v2900_v42, %v3764_v40  ;;  %v1592_v37 = vmul.f32 %v1591_v39, %v3716_v2  ;;  %v1602_v30 = vadd.f32 0.4994258, %v1601_v15 }
 0x1d8   : > { %v1573_v44 = vsel %vm1572_vm11, %v2898_v62, %v1569_v60  ;;  %v1144_v48 = vmul.f32 2.1237322e-06, %v3800_v47  ;;  %v1155_v63 = vmul.f32 3.8918573e-05, %v3800_v47  ;;  %v3822_v27 = vmul.f32 0.70710677, %v3797_v57 }
 0x1d9   : > { %v1578_v38 = vsel %vm3776_vm9, %v1577_v54, %v1573_v44  ;;  %v1127_v51 = vsub.f32 1.0, %v1126_v45  ;;  %v1624_v17 = vmul.f32 2.1237322e-06, %v3808_v34  ;;  %v1603_v19 = vmul.f32 %v1602_v30, %v3716_v2 }
 0x1da   : > { %v1579_v49 = vmul.f32 %v1578_v38, %v1554_v35  ;;  %v1145_v53 = vadd.f32 0.00028619796, %v1144_v48  ;;  %v1156_v22 = vadd.f32 0.001143296, %v1155_v63  ;;  %v1635_v62 = vmul.f32 3.8918573e-05, %v3808_v34 }
 0x1db   : > { %v1128_v10 = vmul.f32 %v2900_v42, %v1127_v51  ;;  %vm1131_vm15 = vweird.f32 %v2900_v42  ;;  %v1625_v28 = vadd.f32 0.00028619796, %v1624_v17  ;;  %v1593_v59 = vadd.f32 1.1283791, %v1592_v37 }
 0x1dc   : > { %v2836_v0 = vclamps-f32 %v1579_v49, 1.0  ;;  %v3826_v54 = vadd.f32 1.0, %v1603_v19  ;;  %v1146_v35 = vmul.f32 %v1145_v53, %v3800_v47  ;;  %v1157_v13 = vmul.f32 %v1156_v22, %v3800_v47  ;;  %vm1132_vm0 = vmor %vm1130_vm13, %vm1131_vm15 }
 0x1dd   : > { %v1129_v25 = vadd.f32 %v2900_v42, %v1128_v10  ;;  %v1626_v2 = vmul.f32 %v1625_v28, %v3808_v34  ;;  %v1636_v6 = vadd.f32 0.001143296, %v1635_v62  ;;  %v1137_v33 = vor.u32 1.1754944e-38, %v1136_v16  ;;  %v768_v16 = vpop.f32.mrf.mxu1 }
 0x1de   : > { %v2158_v61 = vadd.f32 1.0, %v2836_v0  ;;  %2901 = vrcp.f32 %v3826_v54  ;;  %v1662_v20 = vmul.f32 %v3822_v27, %v3822_v27  ;;  %v2372_v21 = vmul.f32 %v3489_v32, %v3489_v32 }
 0x1df   : > { %v1133_v50 = vsel %vm1132_vm0, %v2900_v42, %v1129_v25  ;;  %v1147_v29 = vadd.f32 0.0036580483, %v1146_v35  ;;  %v1158_v26 = vadd.f32 0.014752088, %v1157_v13  ;;  %v3844_v40 = vmul.f32 0.5, %v3671_v23  ;;  %v565_v42 = vpop.f32.mrf.mxu0 }
 0x1e0   : > { %v3839_v14 = vmul.f32 %v2158_v61, %v3755_v24  ;;  %v1138_v36 = vsel %vm3811_vm14, %v1137_v33, %v1133_v50  ;;  %v3847_v4 = vmul.f32 %v1593_v59, %v3693_v9  ;;  %v1627_v41 = vadd.f32 0.0036580483, %v1626_v2 }
 0x1e1   : > { %v1139_v32 = vmul.f32 %v1138_v36, %v1114_v56  ;;  %v1148_v24 = vmul.f32 %v1147_v29, %v3800_v47  ;;  %v1159_v11 = vmul.f32 %v1158_v26, %v3800_v47  ;;  %v1637_v60 = vmul.f32 %v1636_v6, %v3808_v34 }
 0x1e2   : > { %2221 = vst.msk [vmem:[%s3486_s20 + $0x80] sm:$0xff] %vm2204_vm12, %v3839_v14  ;;  %v1614_v39 = vand.u32 2147483647, %v3826_v54  ;;  %v1628_v15 = vmul.f32 %v1627_v41, %v3808_v34  ;;  %v3857_v23 = vmin.f32 %v1662_v20, 16.0  ;;  %v2427_v9 = vsel %vm2204_vm12, %v2372_v21, 0.0 }
 0x1e3   : > { %v2825_v44 = vclamps-f32 %v1139_v32, 1.0  ;;  %v1616_v45 = vand.u32 2147483648, %v3826_v54  ;;  %v1149_v56 = vadd.f32 0.05243302, %v1148_v24  ;;  %v1160_v43 = vadd.f32 0.112945676, %v1159_v11  ;;  %2428 = vadd.xlane.f32.xlu1 %v2427_v9 }
 0x1e4   : > { %v2902_v37 = vpop.eup %2901  ;;  %v1629_v38 = vadd.f32 0.05243302, %v1628_v15  ;;  %v1638_v30 = vadd.f32 0.014752088, %v1637_v60  ;;  %v1664_v48 = vmul.f32 2.1237322e-06, %v3857_v23  ;;  %v2361_v63 = vmul.f32 %v3480_v58, %v3480_v58  ;;  %v604_v15 = vpop.f32.mrf.mxu2 }
 0x1e5   : > { %v2147_v49 = vadd.f32 1.0, %v2825_v44  ;;  %v1606_v51 = vmul.f32 %v2902_v37, %v3826_v54  ;;  %v1150_v17 = vmul.f32 %v1149_v56, %v3800_v47  ;;  %v3866_v19 = vadd.f32 %v768_v16, %v565_v42 }
 0x1e6   : > { %v1161_v53 = vmul.f32 %v1160_v43, %v3800_v47  ;;  %v1630_v22 = vmul.f32 %v1629_v38, %v3808_v34  ;;  %v1639_v62 = vmul.f32 %v1638_v30, %v3808_v34  ;;  %v1665_v0 = vadd.f32 0.00028619796, %v1664_v48 }
 0x1e7   : > { %v3872_v10 = vmul.f32 %v2147_v49, %v3771_v55  ;;  %v1607_v28 = vsub.f32 1.0, %v1606_v51  ;;  %v1151_v59 = vadd.f32 0.18741608, %v1150_v17  ;;  %v1675_v35 = vmul.f32 3.8918573e-05, %v3857_v23 }
 0x1e8   : > { %v1162_v13 = vadd.f32 0.4994258, %v1161_v53  ;;  %v1631_v61 = vadd.f32 0.18741608, %v1630_v22  ;;  %v1640_v25 = vadd.f32 0.112945676, %v1639_v62  ;;  %v1666_v2 = vmul.f32 %v1665_v0, %v3857_v23 }
 0x1e9   : > { %2210 = vst.msk [vmem:[%s3486_s20 + $0x28] sm:$0xff] %vm2204_vm12, %v3872_v10  ;;  %v1608_v6 = vmul.f32 %v2902_v37, %v1607_v28  ;;  %vm1611_vm1 = vweird.f32 %v2902_v37  ;;  %v1676_v33 = vadd.f32 0.001143296, %v1675_v35  ;;  %v2394_v20 = vsel %vm2204_vm12, %v2361_v63, 0.0 }
 0x1ea   : > { %v1152_v55 = vmul.f32 %v1151_v59, %v3800_v47  ;;  %v1163_v21 = vmul.f32 %v1162_v13, %v3800_v47  ;;  %v1641_v50 = vmul.f32 %v1640_v25, %v3808_v34  ;;  %v1667_v29 = vadd.f32 0.0036580483, %v1666_v2  ;;  %2395 = vadd.xlane.f32.xlu2 %v2394_v20  ;;  %v807_v47 = vpop.f32.mrf.mxu3 }
 0x1eb   : > { %v1609_v26 = vadd.f32 %v2902_v37, %v1608_v6  ;;  %vm1610_vm2 = vweird.f32 %v3826_v54  ;;  %v1617_v36 = vor.u32 1.1754944e-38, %v1616_v45  ;;  %v1677_v41 = vmul.f32 %v1676_v33, %v3857_v23 }
 0x1ec   : > { %vm1612_vm3 = vmor %vm1610_vm2, %vm1611_vm1  ;;  %v3885_v32 = vadd.f32 1.0, %v1163_v21  ;;  %v1632_v24 = vmul.f32 %v1631_v61, %v3808_v34  ;;  %v1642_v11 = vadd.f32 0.4994258, %v1641_v50  ;;  %v1668_v60 = vmul.f32 %v1667_v29, %v3857_v23 }
 0x1ed   : > { %v1613_v9 = vsel %vm1612_vm3, %v2902_v37, %v1609_v26  ;;  %vm1615_vm4 = vcmp.eq.f32.partialorder %v1614_v39, 8.507059e+37  ;;  %v1678_v42 = vadd.f32 0.014752088, %v1677_v41  ;;  %v3890_v16 = vmul.f32 0.70710677, %v3866_v19 }
 0x1ee   : > { %v1618_v54 = vsel %vm1615_vm4, %v1617_v36, %v1613_v9  ;;  %v3893_v44 = vmul.f32 0.5, %v3758_v7  ;;  %v1153_v45 = vadd.f32 1.1283791, %v1152_v55  ;;  %2903 = vrcp.f32 %v3885_v32 }
 0x1ef   : > { %v1619_v56 = vmul.f32 %v1618_v54, %v3847_v4  ;;  %v3898_v43 = vmul.f32 0.5, %v3760_v3  ;;  %v1643_v38 = vmul.f32 %v1642_v11, %v3808_v34  ;;  %v3901_v37 = vadd.f32 %v807_v47, %v604_v15 }
 0x1f0   : > { %v1633_v39 = vadd.f32 1.1283791, %v1632_v24  ;;  %v1669_v30 = vadd.f32 0.05243302, %v1668_v60  ;;  %v1679_v48 = vmul.f32 %v1678_v42, %v3857_v23  ;;  %v1182_v7 = vmul.f32 %v3890_v16, %v3890_v16 }
 0x1f1   : > { %v2837_v63 = vclamps-f32 %v1619_v56, 1.0  ;;  %v1174_v49 = vand.u32 2147483647, %v3885_v32  ;;  %v3907_v51 = vadd.f32 1.0, %v1643_v38  ;;  %v2239_v3 = vsel %vm2204_vm12, %v3480_v58, 0.0 }
 0x1f2   : > { %v1154_v4 = vmul.f32 %v1153_v45, %v3783_v5  ;;  %v1670_v34 = vmul.f32 %v1669_v30, %v3857_v23  ;;  %v1680_v17 = vadd.f32 0.112945676, %v1679_v48  ;;  %v3913_v53 = vmin.f32 %v1182_v7, 16.0  ;;  %2240 = vadd.xlane.f32.xlu0 %v2239_v3  ;;  %v568_v3 = vpop.f32.mrf.mxu0 }
 0x1f3   : > { %v2159_v22 = vadd.f32 1.0, %v2837_v63  ;;  %vm1170_vm5 = vweird.f32 %v3885_v32  ;;  %v1176_v62 = vand.u32 2147483648, %v3885_v32  ;;  %2905 = vrcp.f32 %v3907_v51 }
 0x1f4   : > { %v2904_v0 = vpop.eup %2903  ;;  %v3919_v28 = vmul.f32 %v1633_v39, %v3787_v12  ;;  %v1671_v58 = vadd.f32 0.18741608, %v1670_v34  ;;  %v1681_v5 = vmul.f32 %v1680_v17, %v3857_v23  ;;  %v1184_v59 = vmul.f32 2.1237322e-06, %v3913_v53  ;;  %v771_v34 = vpop.f32.mrf.mxu1 }
 0x1f5   : > { %v3924_v35 = vmul.f32 %v2159_v22, %v3844_v40  ;;  %v1166_v13 = vmul.f32 %v2904_v0, %v3885_v32  ;;  %vm3927_vm6 = vcmp.eq.f32.partialorder %v1174_v49, 8.507059e+37  ;;  %v1654_v25 = vand.u32 2147483647, %v3907_v51 }
 0x1f6   : > { %v1656_v2 = vand.u32 2147483648, %v3907_v51  ;;  %v1672_v12 = vmul.f32 %v1671_v58, %v3857_v23  ;;  %v1682_v6 = vadd.f32 0.4994258, %v1681_v5  ;;  %v1185_v33 = vadd.f32 0.00028619796, %v1184_v59 }
 0x1f7   : > { %2222 = vst.msk [vmem:[%s3486_s20 + $0x88] sm:$0xff] %vm2204_vm12, %v3924_v35  ;;  %v1167_v20 = vsub.f32 1.0, %v1166_v13  ;;  %v1195_v40 = vmul.f32 3.8918573e-05, %v3913_v53  ;;  %v3939_v55 = vmul.f32 0.70710677, %v3901_v37  ;;  %v2373_v21 = vmul.f32 %v3558_v1, %v3558_v1 }
 0x1f8   : > { %vm1171_vm7 = vweird.f32 %v2904_v0  ;;  %v1683_v50 = vmul.f32 %v1682_v6, %v3857_v23  ;;  %v1186_v29 = vmul.f32 %v1185_v33, %v3913_v53  ;;  %v2275_v26 = vsel %vm2204_vm12, %v3558_v1, 0.0 }
 0x1f9   : > { %v2906_v36 = vpop.eup %2905  ;;  %v1168_v41 = vmul.f32 %v2904_v0, %v1167_v20  ;;  %v1196_v24 = vadd.f32 0.001143296, %v1195_v40  ;;  %v1702_v11 = vmul.f32 %v3939_v55, %v3939_v55  ;;  %2276 = vadd.xlane.f32.xlu1 %v2275_v26  ;;  %v2430_v60 = vsel %vm2204_vm12, %v2373_v21, 0.0  ;;  %vm1172_vm8 = vmor %vm1170_vm5, %vm1171_vm7 }
 0x1fa   : > { %v1177_v15 = vor.u32 1.1754944e-38, %v1176_v62  ;;  %v1646_v47 = vmul.f32 %v2906_v36, %v3907_v51  ;;  %v1673_v9 = vadd.f32 1.1283791, %v1672_v12  ;;  %v3951_v42 = vadd.f32 1.0, %v1683_v50  ;;  %2431 = vadd.xlane.f32.xlu2 %v2430_v60 }
 0x1fb   : > { %v1169_v23 = vadd.f32 %v2904_v0, %v1168_v41  ;;  %v1187_v54 = vadd.f32 0.0036580483, %v1186_v29  ;;  %v1197_v1 = vmul.f32 %v1196_v24, %v3913_v53  ;;  %v3954_v45 = vmin.f32 %v1702_v11, 16.0 }
 0x1fc   : > { %v1647_v56 = vsub.f32 1.0, %v1646_v47  ;;  %vm1650_vm9 = vweird.f32 %v3907_v51  ;;  %vm3960_vm10 = vcmp.eq.f32.partialorder %v1654_v25, 8.507059e+37  ;;  %2907 = vrcp.f32 %v3951_v42 }
 0x1fd   : > { %v1173_v39 = vsel %vm1172_vm8, %v2904_v0, %v1169_v23  ;;  %v1657_v30 = vor.u32 1.1754944e-38, %v1656_v2  ;;  %v1188_v48 = vmul.f32 %v1187_v54, %v3913_v53  ;;  %v1198_v7 = vadd.f32 0.014752088, %v1197_v1 }
 0x1fe   : > { %v1178_v63 = vsel %vm3927_vm6, %v1177_v15, %v1173_v39  ;;  %v1648_v49 = vmul.f32 %v2906_v36, %v1647_v56  ;;  %vm1651_vm11 = vweird.f32 %v2906_v36  ;;  %v1704_v32 = vmul.f32 2.1237322e-06, %v3954_v45 }
 0x1ff   : > { %v1179_v17 = vmul.f32 %v1178_v63, %v1154_v4  ;;  %v3970_v22 = vmul.f32 %v1673_v9, %v3822_v27  ;;  %v1189_v62 = vadd.f32 0.05243302, %v1188_v48  ;;  %v1199_v0 = vmul.f32 %v1198_v7, %v3913_v53  ;;  %vm1652_vm13 = vmor %vm1650_vm9, %vm1651_vm11 }
 0x200   : > { %v1649_v58 = vadd.f32 %v2906_v36, %v1648_v49  ;;  %v1694_v5 = vand.u32 2147483647, %v3951_v42  ;;  %v1705_v59 = vadd.f32 0.00028619796, %v1704_v32  ;;  %v1715_v13 = vmul.f32 3.8918573e-05, %v3954_v45  ;;  %v607_v32 = vpop.f32.mrf.mxu2 }
 0x201   : > { %v2826_v61 = vclamps-f32 %v1179_v17, 1.0  ;;  %vm1690_vm14 = vweird.f32 %v3951_v42  ;;  %v1696_v4 = vand.u32 2147483648, %v3951_v42  ;;  %v1200_v25 = vadd.f32 0.112945676, %v1199_v0 }
 0x202   : > { %v772_v27 = vadd.f32 %v771_v34, %v568_v3  ;;  %v2908_v2 = vpop.eup %2907  ;;  %v1653_v12 = vsel %vm1652_vm13, %v2906_v36, %v1649_v58  ;;  %v1190_v6 = vmul.f32 %v1189_v62, %v3913_v53  ;;  %v1706_v33 = vmul.f32 %v1705_v59, %v3954_v45  ;;  %v810_v3 = vpop.f32.mrf.mxu3 }
 0x203   : > { %v1716_v20 = vadd.f32 0.001143296, %v1715_v13  ;;  %v2148_v40 = vadd.f32 1.0, %v2826_v61  ;;  %v1658_v21 = vsel %vm3960_vm10, %v1657_v30, %v1653_v12  ;;  %v1686_v51 = vmul.f32 %v2908_v2, %v3951_v42 }
 0x204   : > { %v2362_v50 = vmul.f32 %v3608_v8, %v3608_v8  ;;  %v1659_v29 = vmul.f32 %v1658_v21, %v3919_v28  ;;  %vm1691_vm15 = vweird.f32 %v2908_v2  ;;  %v1201_v26 = vmul.f32 %v1200_v25, %v3913_v53 }
 0x205   : > { %v1707_v36 = vadd.f32 0.0036580483, %v1706_v33  ;;  %v3989_v41 = vmul.f32 %v2148_v40, %v3893_v44  ;;  %v1687_v24 = vsub.f32 1.0, %v1686_v51  ;;  %v1717_v11 = vmul.f32 %v1716_v20, %v3954_v45  ;;  %vm1692_vm1 = vmor %vm1690_vm14, %vm1691_vm15 }
 0x206   : > { %v3992_v60 = vmul.f32 0.70710677, %v772_v27  ;;  %v2838_v15 = vclamps-f32 %v1659_v29, 1.0  ;;  %v1191_v47 = vadd.f32 0.18741608, %v1190_v6  ;;  %v2397_v44 = vsel %vm2204_vm12, %v2362_v50, 0.0 }
 0x207   : > { %v1202_v9 = vadd.f32 0.4994258, %v1201_v26  ;;  %v1708_v23 = vmul.f32 %v1707_v36, %v3954_v45  ;;  %2211 = vst.msk [vmem:[%s3486_s20 + $0x30] sm:$0xff] %vm2204_vm12, %v3989_v41  ;;  %v1688_v28 = vmul.f32 %v2908_v2, %v1687_v24  ;;  %v1718_v54 = vadd.f32 0.014752088, %v1717_v11  ;;  %2398 = vadd.xlane.f32.xlu0 %v2397_v44 }
 0x208   : > { %v1222_v1 = vmul.f32 %v3992_v60, %v3992_v60  ;;  %v2160_v56 = vadd.f32 1.0, %v2838_v15  ;;  %vm4001_vm0 = vcmp.eq.f32.partialorder %v1694_v5, 8.507059e+37  ;;  %v1697_v7 = vor.u32 1.1754944e-38, %v1696_v4 }
 0x209   : > { %v1203_v39 = vmul.f32 %v1202_v9, %v3913_v53  ;;  %v1709_v30 = vadd.f32 0.05243302, %v1708_v23  ;;  %v1689_v48 = vadd.f32 %v2908_v2, %v1688_v28  ;;  %v1719_v63 = vmul.f32 %v1718_v54, %v3954_v45 }
 0x20a   : > { %v4007_v49 = vmin.f32 %v1222_v1, 16.0  ;;  %v4010_v34 = vmul.f32 %v2160_v56, %v3898_v43  ;;  %v1192_v17 = vmul.f32 %v1191_v47, %v3913_v53  ;;  %v859_v43 = vmul.f32 0.5, %v3797_v57  ;;  %v774_v1 = vpop.f32.mrf.mxu1 }
 0x20b   : > { %v4016_v62 = vadd.f32 1.0, %v1203_v39  ;;  %v1710_v0 = vmul.f32 %v1709_v30, %v3954_v45  ;;  %v1693_v58 = vsel %vm1692_vm1, %v2908_v2, %v1689_v48  ;;  %v1720_v5 = vadd.f32 0.112945676, %v1719_v63  ;;  %v610_v30 = vpop.f32.mrf.mxu2  ;;  %v813_v48 = vpop.f32.mrf.mxu3 }
 0x20c   : > { %v1224_v59 = vmul.f32 2.1237322e-06, %v4007_v49  ;;  %v1235_v13 = vmul.f32 3.8918573e-05, %v4007_v49  ;;  %2223 = vst.msk [vmem:[%s3486_s20 + $0x90] sm:$0xff] %vm2204_vm12, %v4010_v34  ;;  %v1698_v42 = vsel %vm4001_vm0, %v1697_v7, %v1693_v58  ;;  %v811_v53 = vadd.f32 %v810_v3, %v607_v32 }
 0x20d   : > { %2909 = vrcp.f32 %v4016_v62  ;;  %v1699_v61 = vmul.f32 %v1698_v42, %v3970_v22  ;;  %v4030_v4 = vmul.f32 0.5, %v3866_v19  ;;  %v4033_v25 = vmul.f32 0.5, %v3901_v37 }
 0x20e   : > { %v1721_v2 = vmul.f32 %v1720_v5, %v3954_v45  ;;  %v1193_v12 = vadd.f32 1.1283791, %v1192_v17  ;;  %v1225_v6 = vadd.f32 0.00028619796, %v1224_v59  ;;  %v1236_v33 = vadd.f32 0.001143296, %v1235_v13 }
 0x20f   : > { %v2839_v57 = vclamps-f32 %v1699_v61, 1.0  ;;  %v1711_v20 = vadd.f32 0.18741608, %v1710_v0  ;;  %v4036_v21 = vmul.f32 0.5, %v772_v27  ;;  %v4040_v50 = vmul.f32 0.70710677, %v811_v53 }
 0x210   : > { %v1722_v40 = vadd.f32 0.4994258, %v1721_v2  ;;  %v1226_v51 = vmul.f32 %v1225_v6, %v4007_v49  ;;  %v1237_v22 = vmul.f32 %v1236_v33, %v4007_v49  ;;  %v2278_v19 = vsel %vm2204_vm12, %v3652_v52, 0.0 }
 0x211   : > { %v2161_v37 = vadd.f32 1.0, %v2839_v57  ;;  %v1214_v29 = vand.u32 2147483647, %v4016_v62  ;;  %2279 = vadd.xlane.f32.xlu2 %v2278_v19  ;;  %v2242_v36 = vsel %vm2204_vm12, %v3608_v8, 0.0  ;;  %v1742_v15 = vmul.f32 %v4040_v50, %v4040_v50  ;;  %v571_v8 = vpop.f32.mrf.mxu0 }
 0x212   : > { %v1723_v26 = vmul.f32 %v1722_v40, %v3954_v45  ;;  %v1227_v24 = vadd.f32 0.0036580483, %v1226_v51  ;;  %v1238_v11 = vadd.f32 0.014752088, %v1237_v22  ;;  %2243 = vadd.xlane.f32.xlu1 %v2242_v36  ;;  %v2374_v47 = vmul.f32 %v3652_v52, %v3652_v52 }
 0x213   : > { %v2910_v27 = vpop.eup %2909  ;;  %v4052_v9 = vmul.f32 %v2161_v37, %v859_v43  ;;  %v1194_v23 = vmul.f32 %v1193_v12, %v3890_v16  ;;  %v1712_v54 = vmul.f32 %v1711_v20, %v3954_v45  ;;  %v4061_v39 = vmin.f32 %v1742_v15, 16.0 }
 0x214   : > { %v1206_v28 = vmul.f32 %v2910_v27, %v4016_v62  ;;  %v4057_v44 = vadd.f32 1.0, %v1723_v26  ;;  %v1228_v56 = vmul.f32 %v1227_v24, %v4007_v49  ;;  %v1239_v38 = vmul.f32 %v1238_v11, %v4007_v49 }
 0x215   : > { %2224 = vst.msk [vmem:[%s3486_s20 + $0x98] sm:$0xff] %vm2204_vm12, %v4052_v9  ;;  %vm1210_vm2 = vweird.f32 %v4016_v62  ;;  %v1216_v16 = vand.u32 2147483648, %v4016_v62  ;;  %v2433_v45 = vsel %vm2204_vm12, %v2374_v47, 0.0  ;;  %vm1211_vm3 = vweird.f32 %v2910_v27 }
 0x216   : > { %v1207_v52 = vsub.f32 1.0, %v1206_v28  ;;  %vm4069_vm4 = vcmp.eq.f32.partialorder %v1214_v29, 8.507059e+37  ;;  %2911 = vrcp.f32 %v4057_v44  ;;  %2434 = vadd.xlane.f32.xlu0 %v2433_v45  ;;  %v775_v63 = vadd.f32 %v774_v1, %v571_v8  ;;  %vm1212_vm5 = vmor %vm1210_vm2, %vm1211_vm3 }
 0x217   : > { %v1229_v3 = vadd.f32 0.05243302, %v1228_v56  ;;  %v1240_v17 = vadd.f32 0.112945676, %v1239_v38  ;;  %v1744_v0 = vmul.f32 2.1237322e-06, %v4061_v39  ;;  %v4078_v13 = vadd.f32 %v813_v48, %v610_v30 }
 0x218   : > { %v1208_v32 = vmul.f32 %v2910_v27, %v1207_v52  ;;  %v1713_v58 = vadd.f32 1.1283791, %v1712_v54  ;;  %v4075_v5 = vmul.f32 0.5, %v811_v53  ;;  %v1755_v59 = vmul.f32 3.8918573e-05, %v4061_v39 }
 0x219   : > { %v1230_v42 = vmul.f32 %v1229_v3, %v4007_v49  ;;  %v1241_v61 = vmul.f32 %v1240_v17, %v4007_v49  ;;  %v1745_v2 = vadd.f32 0.00028619796, %v1744_v0  ;;  %v1217_v12 = vor.u32 1.1754944e-38, %v1216_v16 }
 0x21a   : > { %v1209_v43 = vadd.f32 %v2910_v27, %v1208_v32  ;;  %v1756_v6 = vadd.f32 0.001143296, %v1755_v59  ;;  %v4085_v33 = vmul.f32 0.70710677, %v775_v63  ;;  %v2245_v53 = vsel %vm2204_vm12, %v3697_v31, 0.0 }
 0x21b   : > { %vm1730_vm6 = vweird.f32 %v4057_v44  ;;  %v1231_v20 = vadd.f32 0.18741608, %v1230_v42  ;;  %v1242_v40 = vadd.f32 0.4994258, %v1241_v61  ;;  %v1746_v51 = vmul.f32 %v1745_v2, %v4061_v39  ;;  %2246 = vadd.xlane.f32.xlu1 %v2245_v53 }
 0x21c   : > { %v1213_v57 = vsel %vm1212_vm5, %v2910_v27, %v1209_v43  ;;  %v2912_v22 = vpop.eup %2911  ;;  %v1734_v19 = vand.u32 2147483647, %v4057_v44  ;;  %v1757_v37 = vmul.f32 %v1756_v6, %v4061_v39  ;;  %v1262_v29 = vmul.f32 %v4085_v33, %v4085_v33 }
 0x21d   : > { %v1218_v62 = vsel %vm4069_vm4, %v1217_v12, %v1213_v57  ;;  %v1726_v36 = vmul.f32 %v2912_v22, %v4057_v44  ;;  %v1736_v27 = vand.u32 2147483648, %v4057_v44  ;;  %v4100_v24 = vmul.f32 0.70710677, %v4078_v13 }
 0x21e   : > { %v1219_v26 = vmul.f32 %v1218_v62, %v1194_v23  ;;  %v1243_v11 = vmul.f32 %v1242_v40, %v4007_v49  ;;  %v1747_v15 = vadd.f32 0.0036580483, %v1746_v51  ;;  %v1758_v47 = vadd.f32 0.014752088, %v1757_v37 }
 0x21f   : > { %v4103_v28 = vmin.f32 %v1262_v29, 16.0  ;;  %v1727_v8 = vsub.f32 1.0, %v1726_v36  ;;  %vm1731_vm7 = vweird.f32 %v2912_v22  ;;  %v1232_v1 = vmul.f32 %v1231_v20, %v4007_v49 }
 0x220   : > { %v2827_v54 = vclamps-f32 %v1219_v26, 1.0  ;;  %v4106_v56 = vadd.f32 1.0, %v1243_v11  ;;  %v1748_v23 = vmul.f32 %v1747_v15, %v4061_v39  ;;  %v1759_v38 = vmul.f32 %v1758_v47, %v4061_v39  ;;  %vm1732_vm9 = vmor %vm1730_vm6, %vm1731_vm7 }
 0x221   : > { %v1264_v52 = vmul.f32 2.1237322e-06, %v4103_v28  ;;  %v1728_v45 = vmul.f32 %v2912_v22, %v1727_v8  ;;  %v1275_v30 = vmul.f32 3.8918573e-05, %v4103_v28  ;;  %v1782_v48 = vmul.f32 %v4100_v24, %v4100_v24 }
 0x222   : > { %v2149_v16 = vadd.f32 1.0, %v2827_v54  ;;  %vm4114_vm8 = vcmp.eq.f32.partialorder %v1734_v19, 8.507059e+37  ;;  %v1737_v49 = vor.u32 1.1754944e-38, %v1736_v27  ;;  %2913 = vrcp.f32 %v4106_v56 }
 0x223   : > { %v4119_v32 = vmul.f32 0.5, %v775_v63  ;;  %v1729_v17 = vadd.f32 %v2912_v22, %v1728_v45  ;;  %v1749_v0 = vadd.f32 0.05243302, %v1748_v23  ;;  %v1760_v59 = vadd.f32 0.112945676, %v1759_v38 }
 0x224   : > { %v4122_v3 = vmul.f32 %v2149_v16, %v4030_v4  ;;  %v1714_v43 = vmul.f32 %v1713_v58, %v3939_v55  ;;  %v1233_v42 = vadd.f32 1.1283791, %v1232_v1  ;;  %v1265_v61 = vadd.f32 0.00028619796, %v1264_v52  ;;  %v613_v52 = vpop.f32.mrf.mxu2  ;;  %v816_v16 = vpop.f32.mrf.mxu3 }
 0x225   : > { %v1276_v2 = vadd.f32 0.001143296, %v1275_v30  ;;  %v1733_v63 = vsel %vm1732_vm9, %v2912_v22, %v1729_v17  ;;  %v1750_v12 = vmul.f32 %v1749_v0, %v4061_v39  ;;  %v1761_v4 = vmul.f32 %v1760_v59, %v4061_v39 }
 0x226   : > { %2212 = vst.msk [vmem:[%s3486_s20 + $0x38] sm:$0xff] %vm2204_vm12, %v4122_v3  ;;  %v4133_v6 = vmin.f32 %v1782_v48, 16.0  ;;  %v1738_v55 = vsel %vm4114_vm8, %v1737_v49, %v1733_v63  ;;  %v1266_v58 = vmul.f32 %v1265_v61, %v4103_v28  ;;  %v2248_v53 = vsel %vm2204_vm12, %v3762_v46, 0.0 }
 0x227   : > { %v1277_v44 = vmul.f32 %v1276_v2, %v4103_v28  ;;  %v1739_v57 = vmul.f32 %v1738_v55, %v1714_v43  ;;  %v1751_v20 = vadd.f32 0.18741608, %v1750_v12  ;;  %v1762_v40 = vadd.f32 0.4994258, %v1761_v4  ;;  %2249 = vadd.xlane.f32.xlu2 %v2248_v53 }
 0x228   : > { %v1784_v51 = vmul.f32 2.1237322e-06, %v4133_v6  ;;  %v2914_v22 = vpop.eup %2913  ;;  %v1234_v62 = vmul.f32 %v1233_v42, %v3992_v60  ;;  %v1267_v19 = vadd.f32 0.0036580483, %v1266_v58  ;;  %v1795_v29 = vmul.f32 3.8918573e-05, %v4133_v6 }
 0x229   : > { %v1278_v37 = vadd.f32 0.014752088, %v1277_v44  ;;  %v2840_v26 = vclamps-f32 %v1739_v57, 1.0  ;;  %v1246_v36 = vmul.f32 %v2914_v22, %v4106_v56  ;;  %v1254_v27 = vand.u32 2147483647, %v4106_v56 }
 0x22a   : > { %v1256_v11 = vand.u32 2147483648, %v4106_v56  ;;  %v1763_v15 = vmul.f32 %v1762_v40, %v4061_v39  ;;  %v1268_v47 = vmul.f32 %v1267_v19, %v4103_v28  ;;  %v1785_v8 = vadd.f32 0.00028619796, %v1784_v51 }
 0x22b   : > { %v1279_v54 = vmul.f32 %v1278_v37, %v4103_v28  ;;  %v2162_v1 = vadd.f32 1.0, %v2840_v26  ;;  %v1247_v60 = vsub.f32 1.0, %v1246_v36  ;;  %v1752_v23 = vmul.f32 %v1751_v20, %v4061_v39  ;;  %v574_v39 = vpop.f32.mrf.mxu0 }
 0x22c   : > { %v1796_v38 = vadd.f32 0.001143296, %v1795_v29  ;;  %v4151_v45 = vadd.f32 1.0, %v1763_v15  ;;  %v1269_v30 = vadd.f32 0.05243302, %v1268_v47  ;;  %v1786_v7 = vmul.f32 %v1785_v8, %v4133_v6 }
 0x22d   : > { %v1280_v48 = vadd.f32 0.112945676, %v1279_v54  ;;  %v4155_v49 = vmul.f32 %v2162_v1, %v4033_v25  ;;  %v1248_v17 = vmul.f32 %v2914_v22, %v1247_v60  ;;  %vm1251_vm10 = vweird.f32 %v2914_v22 }
 0x22e   : > { %v1797_v0 = vmul.f32 %v1796_v38, %v4133_v6  ;;  %vm1250_vm11 = vweird.f32 %v4106_v56  ;;  %vm4159_vm13 = vcmp.eq.f32.partialorder %v1254_v27, 8.507059e+37  ;;  %2915 = vrcp.f32 %v4151_v45 }
 0x22f   : > { %v4164_v59 = vadd.f32 %v816_v16, %v613_v52  ;;  %2225 = vst.msk [vmem:[%s3486_s20 + $0xa0] sm:$0xff] %vm2204_vm12, %v4155_v49  ;;  %v1249_v43 = vadd.f32 %v2914_v22, %v1248_v17  ;;  %v1270_v25 = vmul.f32 %v1269_v30, %v4103_v28  ;;  %v1281_v42 = vmul.f32 %v1280_v48, %v4103_v28  ;;  %vm1252_vm14 = vmor %vm1250_vm11, %vm1251_vm10 }
 0x230   : > { %v1787_v61 = vadd.f32 0.0036580483, %v1786_v7  ;;  %v1257_v2 = vor.u32 1.1754944e-38, %v1256_v11  ;;  %v1753_v56 = vadd.f32 1.1283791, %v1752_v23  ;;  %v2281_v12 = vsel %vm2204_vm12, %v3742_v18, 0.0 }
 0x231   : > { %v1798_v63 = vadd.f32 0.014752088, %v1797_v0  ;;  %v1253_v4 = vsel %vm1252_vm14, %v2914_v22, %v1249_v43  ;;  %v1271_v55 = vadd.f32 0.18741608, %v1270_v25  ;;  %v1282_v58 = vadd.f32 0.4994258, %v1281_v42  ;;  %2282 = vadd.xlane.f32.xlu0 %v2281_v12  ;;  %v777_v43 = vpop.f32.mrf.mxu1 }
 0x232   : > { %v1788_v44 = vmul.f32 %v1787_v61, %v4133_v6  ;;  %v1258_v53 = vsel %vm4159_vm13, %v1257_v2, %v1253_v4  ;;  %v4177_v57 = vmul.f32 0.5, %v4078_v13  ;;  %v4181_v40 = vmul.f32 0.70710677, %v4164_v59 }
 0x233   : > { %v1799_v20 = vmul.f32 %v1798_v63, %v4133_v6  ;;  %v1259_v51 = vmul.f32 %v1258_v53, %v1234_v62  ;;  %v1774_v19 = vand.u32 2147483647, %v4151_v45  ;;  %v1283_v22 = vmul.f32 %v1282_v58, %v4103_v28 }
 0x234   : > { %v1789_v37 = vadd.f32 0.05243302, %v1788_v44  ;;  %v2916_v29 = vpop.eup %2915  ;;  %v1272_v26 = vmul.f32 %v1271_v55, %v4103_v28  ;;  %v1822_v27 = vmul.f32 %v4181_v40, %v4181_v40  ;;  %v2363_v13 = vmul.f32 %v3697_v31, %v3697_v31  ;;  %v616_v44 = vpop.f32.mrf.mxu2 }
 0x235   : > { %v1800_v36 = vadd.f32 0.112945676, %v1799_v20  ;;  %v2828_v11 = vclamps-f32 %v1259_v51, 1.0  ;;  %v1754_v15 = vmul.f32 %v1753_v56, %v4040_v50  ;;  %v1766_v62 = vmul.f32 %v2916_v29, %v4151_v45 }
 0x236   : > { %v1776_v47 = vand.u32 2147483648, %v4151_v45  ;;  %v4193_v54 = vadd.f32 1.0, %v1283_v22  ;;  %v1790_v8 = vmul.f32 %v1789_v37, %v4133_v6  ;;  %v4197_v1 = vmin.f32 %v1822_v27, 16.0 }
 0x237   : > { %v1801_v28 = vmul.f32 %v1800_v36, %v4133_v6  ;;  %v2150_v60 = vadd.f32 1.0, %v2828_v11  ;;  %v1767_v23 = vsub.f32 1.0, %v1766_v62  ;;  %v2400_v38 = vsel %vm2204_vm12, %v2363_v13, 0.0 }
 0x238   : > { %v2364_v31 = vmul.f32 %v3762_v46, %v3762_v46  ;;  %vm1771_vm15 = vweird.f32 %v2916_v29  ;;  %vm4202_vm0 = vcmp.eq.f32.partialorder %v1774_v19, 8.507059e+37  ;;  %v1273_v52 = vadd.f32 1.1283791, %v1272_v26  ;;  %2401 = vadd.xlane.f32.xlu1 %v2400_v38 }
 0x239   : > { %2917 = vrcp.f32 %v4193_v54  ;;  %v4208_v16 = vmul.f32 %v2150_v60, %v4036_v21  ;;  %v1768_v30 = vmul.f32 %v2916_v29, %v1767_v23  ;;  %v1791_v48 = vadd.f32 0.18741608, %v1790_v8 }
 0x23a   : > { %v1802_v7 = vadd.f32 0.4994258, %v1801_v28  ;;  %vm1770_vm1 = vweird.f32 %v4151_v45  ;;  %v1294_v46 = vand.u32 2147483647, %v4193_v54  ;;  %v1824_v17 = vmul.f32 2.1237322e-06, %v4197_v1 }
 0x23b   : > { %v1835_v0 = vmul.f32 3.8918573e-05, %v4197_v1  ;;  %2213 = vst.msk [vmem:[%s3486_s20 + $0x40] sm:$0xff] %vm2204_vm12, %v4208_v16  ;;  %v1769_v25 = vadd.f32 %v2916_v29, %v1768_v30  ;;  %v1792_v21 = vmul.f32 %v1791_v48, %v4133_v6  ;;  %v2403_v61 = vsel %vm2204_vm12, %v2364_v31, 0.0  ;;  %vm1772_vm2 = vmor %vm1770_vm1, %vm1771_vm15 }
 0x23c   : > { %v1803_v42 = vmul.f32 %v1802_v7, %v4133_v6  ;;  %v1777_v45 = vor.u32 1.1754944e-38, %v1776_v47  ;;  %v1296_v2 = vand.u32 2147483648, %v4193_v54  ;;  %v1825_v56 = vadd.f32 0.00028619796, %v1824_v17  ;;  %2404 = vadd.xlane.f32.xlu2 %v2403_v61  ;;  %v819_v6 = vpop.f32.mrf.mxu3 }
 0x23d   : > { %v1836_v63 = vadd.f32 0.001143296, %v1835_v0  ;;  %v1773_v12 = vsel %vm1772_vm2, %v2916_v29, %v1769_v25  ;;  %v4224_v55 = vadd.f32 %v777_v43, %v574_v39  ;;  %v2365_v58 = vmul.f32 %v3872_v10, %v3872_v10 }
 0x23e   : > { %v4222_v4 = vadd.f32 1.0, %v1803_v42  ;;  %v1778_v20 = vsel %vm4202_vm0, %v1777_v45, %v1773_v12  ;;  %v1793_v51 = vadd.f32 1.1283791, %v1792_v21  ;;  %v1826_v19 = vmul.f32 %v1825_v56, %v4197_v1 }
 0x23f   : > { %v2918_v53 = vpop.eup %2917  ;;  %v1837_v22 = vmul.f32 %v1836_v63, %v4197_v1  ;;  %v1779_v37 = vmul.f32 %v1778_v20, %v1754_v15  ;;  %v1274_v29 = vmul.f32 %v1273_v52, %v4085_v33  ;;  %vm1290_vm3 = vweird.f32 %v4193_v54 }
 0x240   : > { %v1286_v26 = vmul.f32 %v2918_v53, %v4193_v54  ;;  %vm4235_vm4 = vcmp.eq.f32.partialorder %v1294_v46, 8.507059e+37  ;;  %v1297_v27 = vor.u32 1.1754944e-38, %v1296_v2  ;;  %2919 = vrcp.f32 %v4222_v4 }
 0x241   : > { %v4240_v13 = vadd.f32 %v819_v6, %v616_v44  ;;  %v2841_v11 = vclamps-f32 %v1779_v37, 1.0  ;;  %v1827_v47 = vadd.f32 0.0036580483, %v1826_v19  ;;  %v1838_v8 = vadd.f32 0.014752088, %v1837_v22 }
 0x242   : > { %v1287_v62 = vsub.f32 1.0, %v1286_v26  ;;  %vm1291_vm5 = vweird.f32 %v2918_v53  ;;  %v4243_v33 = vmul.f32 %v1793_v51, %v4100_v24  ;;  %v4246_v15 = vmul.f32 0.70710677, %v4224_v55 }
 0x243   : > { %v2406_v28 = vsel %vm2204_vm12, %v2365_v58, 0.0  ;;  %v2163_v60 = vadd.f32 1.0, %v2841_v11  ;;  %v1828_v38 = vmul.f32 %v1827_v47, %v4197_v1  ;;  %v1839_v31 = vmul.f32 %v1838_v8, %v4197_v1  ;;  %vm1292_vm6 = vmor %vm1290_vm3, %vm1291_vm5  ;;  %v577_v47 = vpop.f32.mrf.mxu0  ;;  %v780_v8 = vpop.f32.mrf.mxu1 }
 0x244   : > { %v1288_v23 = vmul.f32 %v2918_v53, %v1287_v62  ;;  %2407 = vadd.xlane.f32.xlu0 %v2406_v28  ;;  %v1814_v50 = vand.u32 2147483647, %v4222_v4  ;;  %v1302_v52 = vmul.f32 %v4246_v15, %v4246_v15  ;;  %v4255_v24 = vmul.f32 0.70710677, %v4240_v13 }
 0x245   : > { %v2375_v30 = vmul.f32 %v3742_v18, %v3742_v18  ;;  %v4260_v48 = vmul.f32 %v2163_v60, %v4075_v5  ;;  %v1829_v46 = vadd.f32 0.05243302, %v1828_v38  ;;  %v1840_v17 = vadd.f32 0.112945676, %v1839_v31 }
 0x246   : > { %v1289_v7 = vadd.f32 %v2918_v53, %v1288_v23  ;;  %v2920_v0 = vpop.eup %2919  ;;  %v1816_v39 = vand.u32 2147483648, %v4222_v4  ;;  %v4266_v43 = vmin.f32 %v1302_v52, 16.0  ;;  %v1862_v25 = vmul.f32 %v4255_v24, %v4255_v24 }
 0x247   : > { %v2436_v18 = vsel %vm2204_vm12, %v2375_v30, 0.0  ;;  %2226 = vst.msk [vmem:[%s3486_s20 + $0xa8] sm:$0xff] %vm2204_vm12, %v4260_v48  ;;  %v1806_v21 = vmul.f32 %v2920_v0, %v4222_v4  ;;  %v1830_v42 = vmul.f32 %v1829_v46, %v4197_v1  ;;  %v2251_v54 = vsel %vm2204_vm12, %v3872_v10, 0.0 }
 0x248   : > { %v1293_v5 = vsel %vm1292_vm6, %v2918_v53, %v1289_v7  ;;  %2437 = vadd.xlane.f32.xlu1 %v2436_v18  ;;  %v1841_v45 = vmul.f32 %v1840_v17, %v4197_v1  ;;  %v1304_v2 = vmul.f32 2.1237322e-06, %v4266_v43  ;;  %v1315_v56 = vmul.f32 3.8918573e-05, %v4266_v43  ;;  %2252 = vadd.xlane.f32.xlu2 %v2251_v54 }
 0x249   : > { %v1298_v61 = vsel %vm4235_vm4, %v1297_v27, %v1293_v5  ;;  %v1807_v12 = vsub.f32 1.0, %v1806_v21  ;;  %v1831_v58 = vadd.f32 0.18741608, %v1830_v42  ;;  %v4283_v44 = vmin.f32 %v1862_v25, 16.0 }
 0x24a   : > { %v1299_v63 = vmul.f32 %v1298_v61, %v1274_v29  ;;  %vm1810_vm7 = vweird.f32 %v4222_v4  ;;  %v1842_v6 = vadd.f32 0.4994258, %v1841_v45  ;;  %v1305_v53 = vadd.f32 0.00028619796, %v1304_v2 }
 0x24b   : > { %v1316_v10 = vadd.f32 0.001143296, %v1315_v56  ;;  %v1808_v51 = vmul.f32 %v2920_v0, %v1807_v12  ;;  %vm1811_vm8 = vweird.f32 %v2920_v0  ;;  %v1864_v19 = vmul.f32 2.1237322e-06, %v4283_v44 }
 0x24c   : > { %v2829_v20 = vclamps-f32 %v1299_v63, 1.0  ;;  %v1832_v22 = vmul.f32 %v1831_v58, %v4197_v1  ;;  %v1843_v37 = vmul.f32 %v1842_v6, %v4197_v1  ;;  %v1306_v29 = vmul.f32 %v1305_v53, %v4266_v43  ;;  %vm1812_vm9 = vmor %vm1810_vm7, %vm1811_vm8 }
 0x24d   : > { %v1317_v26 = vmul.f32 %v1316_v10, %v4266_v43  ;;  %v1809_v27 = vadd.f32 %v2920_v0, %v1808_v51  ;;  %v1865_v11 = vadd.f32 0.00028619796, %v1864_v19  ;;  %v1875_v62 = vmul.f32 3.8918573e-05, %v4283_v44 }
 0x24e   : > { %v2151_v36 = vadd.f32 1.0, %v2829_v20  ;;  %v1817_v28 = vor.u32 1.1754944e-38, %v1816_v39  ;;  %v4294_v60 = vadd.f32 1.0, %v1843_v37  ;;  %v1307_v23 = vadd.f32 0.0036580483, %v1306_v29  ;;  %v822_v39 = vpop.f32.mrf.mxu3 }
 0x24f   : > { %v1318_v1 = vadd.f32 0.014752088, %v1317_v26  ;;  %v1813_v31 = vsel %vm1812_vm9, %v2920_v0, %v1809_v27  ;;  %vm1815_vm10 = vcmp.eq.f32.partialorder %v1814_v50, 8.507059e+37  ;;  %v1866_v52 = vmul.f32 %v1865_v11, %v4283_v44  ;;  %v619_v0 = vpop.f32.mrf.mxu2 }
 0x250   : > { %v4297_v38 = vmul.f32 %v2151_v36, %v4119_v32  ;;  %v1818_v30 = vsel %vm1815_vm10, %v1817_v28, %v1813_v31  ;;  %v4301_v7 = vmul.f32 0.5, %v4164_v59  ;;  %2921 = vrcp.f32 %v4294_v60 }
 0x251   : > { %v4304_v4 = vadd.f32 %v780_v8, %v577_v47  ;;  %v1819_v46 = vmul.f32 %v1818_v30, %v4243_v33  ;;  %v1833_v17 = vadd.f32 1.1283791, %v1832_v22  ;;  %v1308_v32 = vmul.f32 %v1307_v23, %v4266_v43 }
 0x252   : > { %2214 = vst.msk [vmem:[%s3486_s20 + $0x48] sm:$0xff] %vm2204_vm12, %v4297_v38  ;;  %v1319_v50 = vmul.f32 %v1318_v1, %v4266_v43  ;;  %v4313_v25 = vmul.f32 0.5, %v4224_v55  ;;  %v1867_v59 = vadd.f32 0.0036580483, %v1866_v52  ;;  %v1876_v18 = vadd.f32 0.001143296, %v1875_v62 }
 0x253   : > { %v2254_v5 = vsel %vm2204_vm12, %v3989_v41, 0.0  ;;  %v2842_v21 = vclamps-f32 %v1819_v46, 1.0  ;;  %v1309_v42 = vadd.f32 0.05243302, %v1308_v32  ;;  %v4318_v33 = vmul.f32 0.5, %v4240_v13 }
 0x254   : > { %v1320_v54 = vadd.f32 0.112945676, %v1319_v50  ;;  %2255 = vadd.xlane.f32.xlu0 %v2254_v5  ;;  %v1868_v61 = vmul.f32 %v1867_v59, %v4283_v44  ;;  %v1877_v45 = vmul.f32 %v1876_v18, %v4283_v44  ;;  %v4323_v2 = vmul.f32 0.70710677, %v4304_v4 }
 0x255   : > { %v4325_v55 = vadd.f32 %v822_v39, %v619_v0  ;;  %v2164_v56 = vadd.f32 1.0, %v2842_v21  ;;  %v1310_v63 = vmul.f32 %v1309_v42, %v4266_v43  ;;  %v2284_v13 = vsel %vm2204_vm12, %v3839_v14, 0.0 }
 0x256   : > { %v1321_v12 = vmul.f32 %v1320_v54, %v4266_v43  ;;  %v2922_v58 = vpop.eup %2921  ;;  %v1834_v6 = vmul.f32 %v1833_v17, %v4181_v40  ;;  %v1869_v53 = vadd.f32 0.05243302, %v1868_v61  ;;  %v1878_v10 = vadd.f32 0.014752088, %v1877_v45  ;;  %2285 = vadd.xlane.f32.xlu1 %v2284_v13 }
 0x257   : > { %v1342_v20 = vmul.f32 %v4323_v2, %v4323_v2  ;;  %v4335_v51 = vmul.f32 %v2164_v56, %v4177_v57  ;;  %v1846_v19 = vmul.f32 %v2922_v58, %v4294_v60  ;;  %v1854_v22 = vand.u32 2147483647, %v4294_v60 }
 0x258   : > { %v1311_v37 = vadd.f32 0.18741608, %v1310_v63  ;;  %v1322_v29 = vadd.f32 0.4994258, %v1321_v12  ;;  %v1870_v26 = vmul.f32 %v1869_v53, %v4283_v44  ;;  %v1879_v36 = vmul.f32 %v1878_v10, %v4283_v44 }
 0x259   : > { %v4341_v40 = vmin.f32 %v1342_v20, 16.0  ;;  %2227 = vst.msk [vmem:[%s3486_s20 + $0xb0] sm:$0xff] %vm2204_vm12, %v4335_v51  ;;  %v1847_v27 = vsub.f32 1.0, %v1846_v19  ;;  %vm1851_vm11 = vweird.f32 %v2922_v58  ;;  %v1856_v57 = vand.u32 2147483648, %v4294_v60 }
 0x25a   : > { %v4348_v11 = vmul.f32 0.70710677, %v4325_v55  ;;  %v1323_v62 = vmul.f32 %v1322_v29, %v4266_v43  ;;  %v1871_v47 = vadd.f32 0.18741608, %v1870_v26  ;;  %v1880_v8 = vadd.f32 0.112945676, %v1879_v36 }
 0x25b   : > { %v1344_v28 = vmul.f32 2.1237322e-06, %v4341_v40  ;;  %v1848_v23 = vmul.f32 %v2922_v58, %v1847_v27  ;;  %v1312_v1 = vmul.f32 %v1311_v37, %v4266_v43  ;;  %v1355_v31 = vmul.f32 3.8918573e-05, %v4341_v40 }
 0x25c   : > { %v1902_v52 = vmul.f32 %v4348_v11, %v4348_v11  ;;  %vm1850_vm13 = vweird.f32 %v4294_v60  ;;  %v4357_v30 = vadd.f32 1.0, %v1323_v62  ;;  %v1881_v46 = vmul.f32 %v1880_v8, %v4283_v44 }
 0x25d   : > { %v1345_v17 = vadd.f32 0.00028619796, %v1344_v28  ;;  %v1849_v32 = vadd.f32 %v2922_v58, %v1848_v23  ;;  %vm1855_vm14 = vcmp.eq.f32.partialorder %v1854_v22, 8.507059e+37  ;;  %v1872_v50 = vmul.f32 %v1871_v47, %v4283_v44  ;;  %vm1852_vm15 = vmor %vm1850_vm13, %vm1851_vm11  ;;  %v622_v23 = vpop.f32.mrf.mxu2 }
 0x25e   : > { %v1356_v0 = vadd.f32 0.001143296, %v1355_v31  ;;  %v1857_v43 = vor.u32 1.1754944e-38, %v1856_v57  ;;  %2923 = vrcp.f32 %v4357_v30  ;;  %v4363_v39 = vmin.f32 %v1902_v52, 16.0 }
 0x25f   : > { %v2376_v60 = vmul.f32 %v3839_v14, %v3839_v14  ;;  %v1853_v59 = vsel %vm1852_vm15, %v2922_v58, %v1849_v32  ;;  %v1313_v18 = vadd.f32 1.1283791, %v1312_v1  ;;  %v1882_v5 = vadd.f32 0.4994258, %v1881_v46  ;;  %v825_v1 = vpop.f32.mrf.mxu3 }
 0x260   : > { %v1346_v21 = vmul.f32 %v1345_v17, %v4341_v40  ;;  %v1858_v42 = vsel %vm1855_vm14, %v1857_v43, %v1853_v59  ;;  %v1334_v54 = vand.u32 2147483647, %v4357_v30  ;;  %v1336_v61 = vand.u32 2147483648, %v4357_v30 }
 0x261   : > { %v1357_v45 = vmul.f32 %v1356_v0, %v4341_v40  ;;  %v1859_v56 = vmul.f32 %v1858_v42, %v1834_v6  ;;  %v1873_v63 = vadd.f32 1.1283791, %v1872_v50  ;;  %v1883_v12 = vmul.f32 %v1882_v5, %v4283_v44 }
 0x262   : > { %v1347_v13 = vadd.f32 0.0036580483, %v1346_v21  ;;  %v1904_v14 = vmul.f32 2.1237322e-06, %v4363_v39  ;;  %v1915_v58 = vmul.f32 3.8918573e-05, %v4363_v39  ;;  %v2377_v10 = vmul.f32 %v3924_v35, %v3924_v35 }
 0x263   : > { %v1358_v53 = vadd.f32 0.014752088, %v1357_v45  ;;  %v2843_v20 = vclamps-f32 %v1859_v56, 1.0  ;;  %v4376_v19 = vadd.f32 1.0, %v1883_v12  ;;  %v2439_v37 = vsel %vm2204_vm12, %v2376_v60, 0.0 }
 0x264   : > { %v1348_v22 = vmul.f32 %v1347_v13, %v4341_v40  ;;  %v2924_v6 = vpop.eup %2923  ;;  %v1905_v44 = vadd.f32 0.00028619796, %v1904_v14  ;;  %v1916_v26 = vadd.f32 0.001143296, %v1915_v58  ;;  %2440 = vadd.xlane.f32.xlu2 %v2439_v37  ;;  %v2442_v36 = vsel %vm2204_vm12, %v2377_v10, 0.0 }
 0x265   : > { %v1359_v29 = vmul.f32 %v1358_v53, %v4341_v40  ;;  %v2165_v27 = vadd.f32 1.0, %v2843_v20  ;;  %v1314_v57 = vmul.f32 %v1313_v18, %v4246_v15  ;;  %v1326_v62 = vmul.f32 %v2924_v6, %v4357_v30  ;;  %2443 = vadd.xlane.f32.xlu0 %v2442_v36  ;;  %v625_v36 = vpop.f32.mrf.mxu2 }
 0x266   : > { %2925 = vrcp.f32 %v4376_v19  ;;  %vm1330_vm0 = vweird.f32 %v4357_v30  ;;  %vm4386_vm1 = vcmp.eq.f32.partialorder %v1334_v54, 8.507059e+37  ;;  %v1337_v8 = vor.u32 1.1754944e-38, %v1336_v61 }
 0x267   : > { %v1349_v28 = vadd.f32 0.05243302, %v1348_v22  ;;  %v4391_v31 = vmul.f32 %v2165_v27, %v4301_v7  ;;  %v1327_v15 = vsub.f32 1.0, %v1326_v62  ;;  %v1360_v52 = vadd.f32 0.112945676, %v1359_v29  ;;  %v828_v27 = vpop.f32.mrf.mxu3 }
 0x268   : > { %v1906_v46 = vmul.f32 %v1905_v44, %v4363_v39  ;;  %vm1331_vm2 = vweird.f32 %v2924_v6  ;;  %v4395_v17 = vmul.f32 %v1873_v63, %v4255_v24  ;;  %v1917_v50 = vmul.f32 %v1916_v26, %v4363_v39 }
 0x269   : > { %v1350_v32 = vmul.f32 %v1349_v28, %v4341_v40  ;;  %2228 = vst.msk [vmem:[%s3486_s20 + $0xb8] sm:$0xff] %vm2204_vm12, %v4391_v31  ;;  %v1328_v0 = vmul.f32 %v2924_v6, %v1327_v15  ;;  %v1361_v43 = vmul.f32 %v1360_v52, %v4341_v40  ;;  %v4403_v60 = vadd.f32 %v825_v1, %v622_v23  ;;  %vm1332_vm4 = vmor %vm1330_vm0, %vm1331_vm2 }
 0x26a   : > { %v1907_v7 = vadd.f32 0.0036580483, %v1906_v46  ;;  %vm1890_vm3 = vweird.f32 %v4376_v19  ;;  %v1894_v59 = vand.u32 2147483647, %v4376_v19  ;;  %v1918_v24 = vadd.f32 0.014752088, %v1917_v50 }
 0x26b   : > { %v1351_v18 = vadd.f32 0.18741608, %v1350_v32  ;;  %v1329_v21 = vadd.f32 %v2924_v6, %v1328_v0  ;;  %v1362_v42 = vadd.f32 0.4994258, %v1361_v43  ;;  %v2287_v61 = vsel %vm2204_vm12, %v3924_v35, 0.0 }
 0x26c   : > { %v2926_v5 = vpop.eup %2925  ;;  %v1908_v54 = vmul.f32 %v1907_v7, %v4363_v39  ;;  %v1896_v56 = vand.u32 2147483648, %v4376_v19  ;;  %v1919_v63 = vmul.f32 %v1918_v24, %v4363_v39  ;;  %2288 = vadd.xlane.f32.xlu2 %v2287_v61  ;;  %v2366_v12 = vmul.f32 %v3989_v41, %v3989_v41 }
 0x26d   : > { %v1886_v45 = vmul.f32 %v2926_v5, %v4376_v19  ;;  %v1333_v13 = vsel %vm1332_vm4, %v2924_v6, %v1329_v21  ;;  %v1363_v53 = vmul.f32 %v1362_v42, %v4341_v40  ;;  %v4420_v35 = vmul.f32 0.70710677, %v4403_v60 }
 0x26e   : > { %v1909_v14 = vadd.f32 0.05243302, %v1908_v54  ;;  %v1338_v30 = vsel %vm4386_vm1, %v1337_v8, %v1333_v13  ;;  %v1352_v10 = vmul.f32 %v1351_v18, %v4341_v40  ;;  %v1920_v20 = vadd.f32 0.112945676, %v1919_v63 }
 0x26f   : > { %v1887_v58 = vsub.f32 1.0, %v1886_v45  ;;  %v1339_v22 = vmul.f32 %v1338_v30, %v1314_v57  ;;  %v4425_v37 = vadd.f32 1.0, %v1363_v53  ;;  %v1942_v41 = vmul.f32 %v4420_v35, %v4420_v35 }
 0x270   : > { %v1910_v29 = vmul.f32 %v1909_v14, %v4363_v39  ;;  %vm1891_vm5 = vweird.f32 %v2926_v5  ;;  %v1921_v44 = vmul.f32 %v1920_v20, %v4363_v39  ;;  %v2409_v26 = vsel %vm2204_vm12, %v2366_v12, 0.0 }
 0x271   : > { %v1888_v6 = vmul.f32 %v2926_v5, %v1887_v58  ;;  %v2830_v62 = vclamps-f32 %v1339_v22, 1.0  ;;  %vm4432_vm6 = vcmp.eq.f32.partialorder %v1894_v59, 8.507059e+37  ;;  %v1897_v57 = vor.u32 1.1754944e-38, %v1896_v56  ;;  %2410 = vadd.xlane.f32.xlu1 %v2409_v26  ;;  %vm1892_vm7 = vmor %vm1890_vm3, %vm1891_vm5  ;;  %v628_v58 = vpop.f32.mrf.mxu2 }
 0x272   : > { %2927 = vrcp.f32 %v4425_v37  ;;  %v1353_v8 = vadd.f32 1.1283791, %v1352_v10  ;;  %v1911_v28 = vadd.f32 0.18741608, %v1910_v29  ;;  %v1922_v23 = vadd.f32 0.4994258, %v1921_v44  ;;  %v831_v10 = vpop.f32.mrf.mxu3 }
 0x273   : > { %v1889_v47 = vadd.f32 %v2926_v5, %v1888_v6  ;;  %v2152_v1 = vadd.f32 1.0, %v2830_v62  ;;  %v1374_v15 = vand.u32 2147483647, %v4425_v37  ;;  %v4441_v52 = vmin.f32 %v1942_v41, 16.0 }
 0x274   : > { %v2290_v46 = vsel %vm2204_vm12, %v4010_v34, 0.0  ;;  %v1376_v50 = vand.u32 2147483648, %v4425_v37  ;;  %v1912_v0 = vmul.f32 %v1911_v28, %v4363_v39  ;;  %v1923_v43 = vmul.f32 %v1922_v23, %v4363_v39 }
 0x275   : > { %v1893_v32 = vsel %vm1892_vm7, %v2926_v5, %v1889_v47  ;;  %2291 = vadd.xlane.f32.xlu0 %v2290_v46  ;;  %v4449_v7 = vmul.f32 %v2152_v1, %v4313_v25  ;;  %v1944_v59 = vmul.f32 2.1237322e-06, %v4441_v52  ;;  %v1955_v18 = vmul.f32 3.8918573e-05, %v4441_v52 }
 0x276   : > { %v1898_v19 = vsel %vm4432_vm6, %v1897_v57, %v1893_v32  ;;  %v4457_v5 = vmul.f32 0.5, %v4304_v4  ;;  %v1913_v21 = vadd.f32 1.1283791, %v1912_v0  ;;  %v4459_v42 = vadd.f32 1.0, %v1923_v43 }
 0x277   : > { %v1899_v24 = vmul.f32 %v1898_v19, %v4395_v17  ;;  %2215 = vst.msk [vmem:[%s3486_s20 + $0x50] sm:$0xff] %vm2204_vm12, %v4449_v7  ;;  %v1354_v25 = vmul.f32 %v1353_v8, %v4323_v2  ;;  %v1945_v54 = vadd.f32 0.00028619796, %v1944_v59  ;;  %v1956_v61 = vadd.f32 0.001143296, %v1955_v18 }
 0x278   : > { %v2928_v39 = vpop.eup %2927  ;;  %v4465_v45 = vadd.f32 %v828_v27, %v625_v36  ;;  %vm1370_vm8 = vweird.f32 %v4425_v37  ;;  %v2257_v4 = vsel %vm2204_vm12, %v4122_v3, 0.0  ;;  %vm4471_vm9 = vcmp.eq.f32.partialorder %v1374_v15, 8.507059e+37 }
 0x279   : > { %v2844_v56 = vclamps-f32 %v1899_v24, 1.0  ;;  %v1366_v63 = vmul.f32 %v2928_v39, %v4425_v37  ;;  %v1377_v12 = vor.u32 1.1754944e-38, %v1376_v50  ;;  %2929 = vrcp.f32 %v4459_v42  ;;  %2258 = vadd.xlane.f32.xlu1 %v2257_v4 }
 0x27a   : > { %v2367_v2 = vmul.f32 %v4122_v3, %v4122_v3  ;;  %v1946_v14 = vmul.f32 %v1945_v54, %v4441_v52  ;;  %v1957_v30 = vmul.f32 %v1956_v61, %v4441_v52  ;;  %vm1371_vm10 = vweird.f32 %v2928_v39 }
 0x27b   : > { %v2166_v13 = vadd.f32 1.0, %v2844_v56  ;;  %v1367_v53 = vsub.f32 1.0, %v1366_v63  ;;  %v4481_v20 = vmul.f32 %v1913_v21, %v4348_v11  ;;  %v1934_v22 = vand.u32 2147483647, %v4459_v42  ;;  %vm1372_vm13 = vmor %vm1370_vm8, %vm1371_vm10 }
 0x27c   : > { %v4485_v29 = vmul.f32 0.70710677, %v4465_v45  ;;  %v1947_v6 = vadd.f32 0.0036580483, %v1946_v14  ;;  %v1958_v44 = vadd.f32 0.014752088, %v1957_v30  ;;  %v2368_v11 = vmul.f32 %v4208_v16, %v4208_v16 }
 0x27d   : > { %v4488_v3 = vmul.f32 %v2166_v13, %v4318_v33  ;;  %v1368_v41 = vmul.f32 %v2928_v39, %v1367_v53  ;;  %v2412_v36 = vsel %vm2204_vm12, %v2367_v2, 0.0  ;;  %v4495_v27 = vadd.f32 %v831_v10, %v628_v58 }
 0x27e   : > { %v1982_v26 = vmul.f32 %v4485_v29, %v4485_v29  ;;  %vm1930_vm11 = vweird.f32 %v4459_v42  ;;  %v1948_v33 = vmul.f32 %v1947_v6, %v4441_v52  ;;  %v1959_v40 = vmul.f32 %v1958_v44, %v4441_v52  ;;  %2413 = vadd.xlane.f32.xlu2 %v2412_v36 }
 0x27f   : > { %2229 = vst.msk [vmem:[%s3486_s20 + $0xc0] sm:$0xff] %vm2204_vm12, %v4488_v3  ;;  %v1369_v62 = vadd.f32 %v2928_v39, %v1368_v41  ;;  %v2930_v57 = vpop.eup %2929  ;;  %v1936_v47 = vand.u32 2147483648, %v4459_v42  ;;  %v2415_v28 = vsel %vm2204_vm12, %v2368_v11, 0.0  ;;  %v4511_v23 = vmul.f32 0.70710677, %v4495_v27 }
 0x280   : > { %v4507_v8 = vmin.f32 %v1982_v26, 16.0  ;;  %v1926_v15 = vmul.f32 %v2930_v57, %v4459_v42  ;;  %vm4514_vm14 = vcmp.eq.f32.partialorder %v1934_v22, 8.507059e+37  ;;  %v1949_v32 = vadd.f32 0.05243302, %v1948_v33  ;;  %2416 = vadd.xlane.f32.xlu0 %v2415_v28  ;;  %v631_v33 = vpop.f32.mrf.mxu2 }
 0x281   : > { %v1373_v1 = vsel %vm1372_vm13, %v2928_v39, %v1369_v62  ;;  %v2260_v37 = vsel %vm2204_vm12, %v4208_v16, 0.0  ;;  %v1960_v0 = vadd.f32 0.112945676, %v1959_v40  ;;  %vm1931_vm15 = vweird.f32 %v2930_v57  ;;  %v834_v40 = vpop.f32.mrf.mxu3 }
 0x282   : > { %v1378_v50 = vsel %vm4471_vm9, %v1377_v12, %v1373_v1  ;;  %v1984_v43 = vmul.f32 2.1237322e-06, %v4507_v8  ;;  %v1995_v19 = vmul.f32 3.8918573e-05, %v4507_v8  ;;  %v1927_v18 = vsub.f32 1.0, %v1926_v15  ;;  %vm1932_vm0 = vmor %vm1930_vm11, %vm1931_vm15 }
 0x283   : > { %v1379_v59 = vmul.f32 %v1378_v50, %v1354_v25  ;;  %v2022_v24 = vmul.f32 %v4511_v23, %v4511_v23  ;;  %v1961_v21 = vmul.f32 %v1960_v0, %v4441_v52  ;;  %v2378_v16 = vmul.f32 %v4010_v34, %v4010_v34 }
 0x284   : > { %v1985_v39 = vadd.f32 0.00028619796, %v1984_v43  ;;  %v1996_v54 = vadd.f32 0.001143296, %v1995_v19  ;;  %v1928_v56 = vmul.f32 %v2930_v57, %v1927_v18  ;;  %v1950_v63 = vmul.f32 %v1949_v32, %v4441_v52 }
 0x285   : > { %v2831_v61 = vclamps-f32 %v1379_v59, 1.0  ;;  %v4530_v4 = vmin.f32 %v2022_v24, 16.0  ;;  %v1962_v17 = vadd.f32 0.4994258, %v1961_v21  ;;  %v2445_v2 = vsel %vm2204_vm12, %v2378_v16, 0.0 }
 0x286   : > { %v1986_v25 = vmul.f32 %v1985_v39, %v4507_v8  ;;  %v1997_v12 = vmul.f32 %v1996_v54, %v4507_v8  ;;  %v1929_v53 = vadd.f32 %v2930_v57, %v1928_v56  ;;  %v1937_v14 = vor.u32 1.1754944e-38, %v1936_v47  ;;  %2446 = vadd.xlane.f32.xlu1 %v2445_v2  ;;  %2261 = vadd.xlane.f32.xlu2 %v2260_v37 }
 0x287   : > { %v2153_v13 = vadd.f32 1.0, %v2831_v61  ;;  %v2024_v30 = vmul.f32 2.1237322e-06, %v4530_v4  ;;  %v1963_v34 = vmul.f32 %v1962_v17, %v4441_v52  ;;  %v2035_v22 = vmul.f32 3.8918573e-05, %v4530_v4 }
 0x288   : > { %v1987_v58 = vadd.f32 0.0036580483, %v1986_v25  ;;  %v1998_v10 = vadd.f32 0.014752088, %v1997_v12  ;;  %v1933_v6 = vsel %vm1932_vm0, %v2930_v57, %v1929_v53  ;;  %v1951_v44 = vadd.f32 0.18741608, %v1950_v63 }
 0x289   : > { %v4542_v41 = vmul.f32 %v2153_v13, %v4457_v5  ;;  %v2025_v26 = vadd.f32 0.00028619796, %v2024_v30  ;;  %v1938_v36 = vsel %vm4514_vm14, %v1937_v14, %v1933_v6  ;;  %v4546_v11 = vadd.f32 1.0, %v1963_v34  ;;  %v634_v34 = vpop.f32.mrf.mxu2 }
 0x28a   : > { %v1988_v42 = vmul.f32 %v1987_v58, %v4507_v8  ;;  %v1999_v62 = vmul.f32 %v1998_v10, %v4507_v8  ;;  %v1939_v5 = vmul.f32 %v1938_v36, %v4481_v20  ;;  %v2036_v47 = vadd.f32 0.001143296, %v2035_v22  ;;  %v837_v58 = vpop.f32.mrf.mxu3 }
 0x28b   : > { %2216 = vst.msk [vmem:[%s3486_s20 + $0x58] sm:$0xff] %vm2204_vm12, %v4542_v41  ;;  %v2026_v57 = vmul.f32 %v2025_v26, %v4530_v4  ;;  %2931 = vrcp.f32 %v4546_v11  ;;  %v865_v32 = vmul.f32 0.5, %v4325_v55  ;;  %v1952_v37 = vmul.f32 %v1951_v44, %v4441_v52 }
 0x28c   : > { %v2845_v28 = vclamps-f32 %v1939_v5, 1.0  ;;  %v1989_v1 = vadd.f32 0.05243302, %v1988_v42  ;;  %v2000_v15 = vadd.f32 0.112945676, %v1999_v62  ;;  %v2037_v46 = vmul.f32 %v2036_v47, %v4530_v4 }
 0x28d   : > { %v2027_v50 = vadd.f32 0.0036580483, %v2026_v57  ;;  %v2263_v0 = vsel %vm2204_vm12, %v4297_v38, 0.0  ;;  %v4564_v24 = vadd.f32 %v834_v40, %v631_v33  ;;  %v2293_v55 = vsel %vm2204_vm12, %v4052_v9, 0.0 }
 0x28e   : > { %v2167_v43 = vadd.f32 1.0, %v2845_v28  ;;  %v1990_v20 = vmul.f32 %v1989_v1, %v4507_v8  ;;  %v2001_v19 = vmul.f32 %v2000_v15, %v4507_v8  ;;  %v2038_v59 = vadd.f32 0.014752088, %v2037_v46  ;;  %2264 = vadd.xlane.f32.xlu0 %v2263_v0  ;;  %2294 = vadd.xlane.f32.xlu1 %v2293_v55 }
 0x28f   : > { %v2028_v18 = vmul.f32 %v2027_v50, %v4530_v4  ;;  %v2379_v52 = vmul.f32 %v4052_v9, %v4052_v9  ;;  %v4574_v63 = vmul.f32 0.70710677, %v4564_v24  ;;  %v4581_v25 = vmul.f32 0.5, %v4403_v60 }
 0x290   : > { %v4570_v21 = vmul.f32 %v2167_v43, %v865_v32  ;;  %v1991_v39 = vadd.f32 0.18741608, %v1990_v20  ;;  %v2002_v54 = vadd.f32 0.4994258, %v2001_v19  ;;  %v2039_v16 = vmul.f32 %v2038_v59, %v4530_v4 }
 0x291   : > { %v2932_v61 = vpop.eup %2931  ;;  %v2029_v56 = vadd.f32 0.05243302, %v2028_v18  ;;  %v2448_v17 = vsel %vm2204_vm12, %v2379_v52, 0.0  ;;  %v1953_v9 = vadd.f32 1.1283791, %v1952_v37  ;;  %v2062_v14 = vmul.f32 %v4574_v63, %v4574_v63 }
 0x292   : > { %2230 = vst.msk [vmem:[%s3486_s20 + $0xc8] sm:$0xff] %vm2204_vm12, %v4570_v21  ;;  %v1966_v12 = vmul.f32 %v2932_v61, %v4546_v11  ;;  %v2003_v2 = vmul.f32 %v2002_v54, %v4507_v8  ;;  %2449 = vadd.xlane.f32.xlu2 %v2448_v17  ;;  %v1974_v13 = vand.u32 2147483647, %v4546_v11  ;;  %v2040_v53 = vadd.f32 0.112945676, %v2039_v16 }
 0x293   : > { %v2380_v30 = vmul.f32 %v4155_v49, %v4155_v49  ;;  %v1976_v60 = vand.u32 2147483648, %v4546_v11  ;;  %v1992_v22 = vmul.f32 %v1991_v39, %v4507_v8  ;;  %v2030_v44 = vmul.f32 %v2029_v56, %v4530_v4 }
 0x294   : > { %v1967_v10 = vsub.f32 1.0, %v1966_v12  ;;  %v4592_v6 = vadd.f32 1.0, %v2003_v2  ;;  %v2041_v26 = vmul.f32 %v2040_v53, %v4530_v4  ;;  %v4596_v36 = vmin.f32 %v2062_v14, 16.0 }
 0x295   : > { %v2451_v42 = vsel %vm2204_vm12, %v2380_v30, 0.0  ;;  %vm1971_vm1 = vweird.f32 %v2932_v61  ;;  %v4600_v33 = vadd.f32 %v837_v58, %v634_v34  ;;  %v1954_v40 = vmul.f32 %v1953_v9, %v4420_v35 }
 0x296   : > { %v1968_v62 = vmul.f32 %v2932_v61, %v1967_v10  ;;  %2933 = vrcp.f32 %v4592_v6  ;;  %2452 = vadd.xlane.f32.xlu0 %v2451_v42  ;;  %vm1970_vm2 = vweird.f32 %v4546_v11  ;;  %vm1975_vm3 = vcmp.eq.f32.partialorder %v1974_v13, 8.507059e+37 }
 0x297   : > { %v2042_v8 = vadd.f32 0.4994258, %v2041_v26  ;;  %v1977_v57 = vor.u32 1.1754944e-38, %v1976_v60  ;;  %v2064_v47 = vmul.f32 2.1237322e-06, %v4596_v36  ;;  %vm1972_vm4 = vmor %vm1970_vm2, %vm1971_vm1  ;;  %v2016_v43 = vand.u32 2147483648, %v4592_v6 }
 0x298   : > { %v1969_v5 = vadd.f32 %v2932_v61, %v1968_v62  ;;  %v2075_v28 = vmul.f32 3.8918573e-05, %v4596_v36  ;;  %v1993_v1 = vadd.f32 1.1283791, %v1992_v22  ;;  %v2014_v15 = vand.u32 2147483647, %v4592_v6 }
 0x299   : > { %v2031_v46 = vadd.f32 0.18741608, %v2030_v44  ;;  %v2043_v32 = vmul.f32 %v2042_v8, %v4530_v4  ;;  %v2065_v50 = vadd.f32 0.00028619796, %v2064_v47  ;;  %v4609_v11 = vmul.f32 0.70710677, %v4600_v33 }
 0x29a   : > { %v1973_v37 = vsel %vm1972_vm4, %v2932_v61, %v1969_v5  ;;  %v2076_v35 = vadd.f32 0.001143296, %v2075_v28  ;;  %v2296_v19 = vsel %vm2204_vm12, %v4155_v49, 0.0  ;;  %v4621_v54 = vmul.f32 0.5, %v4465_v45 }
 0x29b   : > { %v1978_v0 = vsel %vm1975_vm3, %v1977_v57, %v1973_v37  ;;  %v4612_v20 = vadd.f32 1.0, %v2043_v32  ;;  %v2066_v55 = vmul.f32 %v2065_v50, %v4596_v36  ;;  %v2102_v39 = vmul.f32 %v4609_v11, %v4609_v11  ;;  %2297 = vadd.xlane.f32.xlu2 %v2296_v19 }
 0x29c   : > { %v2934_v59 = vpop.eup %2933  ;;  %v1979_v18 = vmul.f32 %v1978_v0, %v1954_v40  ;;  %v2077_v52 = vmul.f32 %v2076_v35, %v4596_v36  ;;  %v1994_v16 = vmul.f32 %v1993_v1, %v4485_v29  ;;  %vm2010_vm5 = vweird.f32 %v4592_v6 }
 0x29d   : > { %v2006_v61 = vmul.f32 %v2934_v59, %v4592_v6  ;;  %2935 = vrcp.f32 %v4612_v20  ;;  %v2032_v56 = vmul.f32 %v2031_v46, %v4530_v4  ;;  %v2067_v17 = vadd.f32 0.0036580483, %v2066_v55 }
 0x29e   : > { %v2846_v49 = vclamps-f32 %v1979_v18, 1.0  ;;  %v2078_v12 = vadd.f32 0.014752088, %v2077_v52  ;;  %v4628_v2 = vmin.f32 %v2102_v39, 16.0  ;;  %v2369_v45 = vmul.f32 %v4297_v38, %v4297_v38 }
 0x29f   : > { %v2007_v9 = vsub.f32 1.0, %v2006_v61  ;;  %vm2011_vm6 = vweird.f32 %v2934_v59  ;;  %vm4632_vm7 = vcmp.eq.f32.partialorder %v2014_v15, 8.507059e+37  ;;  %v2017_v53 = vor.u32 1.1754944e-38, %v2016_v43 }
 0x2a0   : > { %v2168_v13 = vadd.f32 1.0, %v2846_v49  ;;  %v2079_v30 = vmul.f32 %v2078_v12, %v4596_v36  ;;  %v2104_v4 = vmul.f32 2.1237322e-06, %v4628_v2  ;;  %v2115_v34 = vmul.f32 3.8918573e-05, %v4628_v2  ;;  %vm2012_vm8 = vmor %vm2010_vm5, %vm2011_vm6 }
 0x2a1   : > { %v2008_v14 = vmul.f32 %v2934_v59, %v2007_v9  ;;  %v2068_v38 = vmul.f32 %v2067_v17, %v4596_v36  ;;  %v2418_v10 = vsel %vm2204_vm12, %v2369_v45, 0.0  ;;  %v2299_v60 = vsel %vm2204_vm12, %v4260_v48, 0.0 }
 0x2a2   : > { %v4640_v58 = vmul.f32 %v2168_v13, %v4581_v25  ;;  %v2080_v26 = vadd.f32 0.112945676, %v2079_v30  ;;  %v2105_v42 = vadd.f32 0.00028619796, %v2104_v4  ;;  %v2116_v62 = vadd.f32 0.001143296, %v2115_v34  ;;  %2419 = vadd.xlane.f32.xlu1 %v2418_v10  ;;  %2300 = vadd.xlane.f32.xlu0 %v2299_v60 }
 0x2a3   : > { %v2936_v22 = vpop.eup %2935  ;;  %v2009_v44 = vadd.f32 %v2934_v59, %v2008_v14  ;;  %v2033_v25 = vadd.f32 1.1283791, %v2032_v56  ;;  %v2054_v8 = vand.u32 2147483647, %v4612_v20  ;;  %v2370_v5 = vmul.f32 %v4449_v7, %v4449_v7 }
 0x2a4   : > { %2231 = vst.msk [vmem:[%s3486_s20 + $0xd0] sm:$0xff] %vm2204_vm12, %v4640_v58  ;;  %v2046_v40 = vmul.f32 %v2936_v22, %v4612_v20  ;;  %v2081_v47 = vmul.f32 %v2080_v26, %v4596_v36  ;;  %v2106_v28 = vmul.f32 %v2105_v42, %v4628_v2  ;;  %v2117_v1 = vmul.f32 %v2116_v62, %v4628_v2 }
 0x2a5   : > { %v2013_v57 = vsel %vm2012_vm8, %v2934_v59, %v2009_v44  ;;  %v2056_v46 = vand.u32 2147483648, %v4612_v20  ;;  %v2421_v32 = vsel %vm2204_vm12, %v2370_v5, 0.0  ;;  %v2069_v50 = vadd.f32 0.05243302, %v2068_v38  ;;  %v2238_v38 = vpop.xlane.xlu0 %2237 }
 0x2a6   : > { %v2018_v15 = vsel %vm4632_vm7, %v2017_v53, %v2013_v57  ;;  %v2047_v6 = vsub.f32 1.0, %v2046_v40  ;;  %v2082_v35 = vadd.f32 0.4994258, %v2081_v47  ;;  %v2118_v0 = vadd.f32 0.014752088, %v2117_v1  ;;  %2422 = vadd.xlane.f32.xlu2 %v2421_v32 }
 0x2a7   : > { %v2019_v37 = vmul.f32 %v2018_v15, %v1994_v16  ;;  %vm2051_vm9 = vweird.f32 %v2936_v22  ;;  %v2107_v19 = vadd.f32 0.0036580483, %v2106_v28  ;;  %v2371_v59 = vmul.f32 %v4542_v41, %v4542_v41 }
 0x2a8   : > { %v2048_v43 = vmul.f32 %v2936_v22, %v2047_v6  ;;  %vm2050_vm10 = vweird.f32 %v4612_v20  ;;  %v2083_v55 = vmul.f32 %v2082_v35, %v4596_v36  ;;  %v2119_v52 = vmul.f32 %v2118_v0, %v4628_v2 }
 0x2a9   : > { %v2847_v18 = vclamps-f32 %v2019_v37, 1.0  ;;  %v2057_v61 = vor.u32 1.1754944e-38, %v2056_v46  ;;  %v2266_v16 = vsel %vm2204_vm12, %v4449_v7, 0.0  ;;  %v2424_v49 = vsel %vm2204_vm12, %v2371_v59, 0.0  ;;  %vm2052_vm11 = vmor %vm2050_vm10, %vm2051_vm9 }
 0x2aa   : > { %v2049_v39 = vadd.f32 %v2936_v22, %v2048_v43  ;;  %v2070_v17 = vmul.f32 %v2069_v50, %v4596_v36  ;;  %v4672_v9 = vadd.f32 1.0, %v2083_v55  ;;  %v2120_v12 = vadd.f32 0.112945676, %v2119_v52  ;;  %2267 = vadd.xlane.f32.xlu1 %v2266_v16  ;;  %2425 = vadd.xlane.f32.xlu0 %v2424_v49 }
 0x2ab   : > { %v2169_v56 = vadd.f32 1.0, %v2847_v18  ;;  %v2034_v20 = vmul.f32 %v2033_v25, %v4511_v23  ;;  %vm2055_vm13 = vcmp.eq.f32.partialorder %v2054_v8, 8.507059e+37  ;;  %v2108_v13 = vmul.f32 %v2107_v19, %v4628_v2 }
 0x2ac   : > { %v2053_v45 = vsel %vm2052_vm11, %v2936_v22, %v2049_v39  ;;  %2937 = vrcp.f32 %v4672_v9  ;;  %v2381_v14 = vmul.f32 %v4260_v48, %v4260_v48  ;;  %v2269_v30 = vsel %vm2204_vm12, %v4542_v41, 0.0  ;;  %v2393_v41 = vpop.xlane.xlu1 %2392  ;;  %v2396_v22 = vpop.xlane.xlu2 %2395 }
 0x2ad   : > { %v4677_v7 = vmul.f32 %v2169_v56, %v4621_v54  ;;  %v2058_v29 = vsel %vm2055_vm13, %v2057_v61, %v2053_v45  ;;  %v2071_v23 = vadd.f32 0.18741608, %v2070_v17  ;;  %v2121_v4 = vmul.f32 %v2120_v12, %v4628_v2  ;;  %v2274_v37 = vpop.xlane.xlu0 %2273 }
 0x2ae   : > { %v2059_v53 = vmul.f32 %v2058_v29, %v2034_v20  ;;  %2270 = vadd.xlane.f32.xlu2 %v2269_v30  ;;  %v2383_v54 = vmul.f32 %v4391_v31, %v4391_v31  ;;  %v2109_v34 = vadd.f32 0.05243302, %v2108_v13  ;;  %v868_v10 = vmul.f32 0.5, %v4495_v27 }
 0x2af   : > { %2232 = vst.msk [vmem:[%s3486_s20 + $0xd8] sm:$0xff] %vm2204_vm12, %v4677_v7  ;;  %v2122_v60 = vadd.f32 0.4994258, %v2121_v4  ;;  %vm2515_vm14 = vcmask 7168   ;;  %v2454_v26 = vsel %vm2204_vm12, %v2381_v14, 0.0  ;;  %v2382_v62 = vmul.f32 %v4335_v51, %v4335_v51 }
 0x2b0   : > { %v2848_v48 = vclamps-f32 %v2059_v53, 1.0  ;;  %2516 = vst.msk [vmem:[%s4692_s23] sm:$0xff] %vm2515_vm14, %v2238_v38  ;;  %v2460_v42 = vsel %vm2204_vm12, %v2383_v54, 0.0  ;;  %v2072_v40 = vmul.f32 %v2071_v23, %v4596_v36  ;;  %v2110_v57 = vmul.f32 %v2109_v34, %v4628_v2 }
 0x2b1   : > { %v2123_v27 = vmul.f32 %v2122_v60, %v4628_v2  ;;  %2547 = vst.msk [vmem:[%s4700_s26] sm:$0xff] %vm2515_vm14, %v2393_v41  ;;  %v2457_v28 = vsel %vm2204_vm12, %v2382_v62, 0.0  ;;  %v2096_v15 = vand.u32 2147483648, %v4672_v9  ;;  %v2094_v46 = vand.u32 2147483647, %v4672_v9 }
 0x2b2   : > { %v2170_v44 = vadd.f32 1.0, %v2848_v48  ;;  %v2938_v25 = vpop.eup %2937  ;;  %2455 = vadd.xlane.f32.xlu1 %v2454_v26  ;;  %2461 = vadd.xlane.f32.xlu0 %v2460_v42  ;;  %2548 = vst.msk [vmem:[%s4700_s26 + $0x8] sm:$0xff] %vm2515_vm14, %v2396_v22  ;;  %v2073_v1 = vadd.f32 1.1283791, %v2072_v40  ;;  %v2111_v32 = vadd.f32 0.18741608, %v2110_v57  ;;  %vm2090_vm0 = vweird.f32 %v4672_v9 }
 0x2b3   : > { %v2086_v5 = vmul.f32 %v2938_v25, %v4672_v9  ;;  %v4719_v47 = vadd.f32 1.0, %v2123_v27  ;;  %vm2091_vm15 = vweird.f32 %v2938_v25  ;;  %2528 = vst.msk [vmem:[%s4692_s23 + $0x60] sm:$0xff] %vm2515_vm14, %v2274_v37  ;;  %v2302_v43 = vsel %vm2204_vm12, %v4335_v51, 0.0 }
 0x2b4   : > { %v4713_v8 = vmul.f32 %v2170_v44, %v868_v10  ;;  %v2429_v50 = vpop.xlane.xlu1 %2428  ;;  %v2432_v35 = vpop.xlane.xlu2 %2431  ;;  %v2308_v19 = vsel %vm2204_vm12, %v4488_v3, 0.0  ;;  %vm2092_vm1 = vmor %vm2090_vm0, %vm2091_vm15  ;;  %v2097_v59 = vor.u32 1.1754944e-38, %v2096_v15  ;;  %v2074_v18 = vmul.f32 %v2073_v1, %v4574_v63 }
 0x2b5   : > { %v2087_v36 = vsub.f32 1.0, %v2086_v5  ;;  %2939 = vrcp.f32 %v4719_v47  ;;  %2559 = vst.msk [vmem:[%s4700_s26 + $0x60] sm:$0xff] %vm2515_vm14, %v2429_v50  ;;  %vm2095_vm2 = vcmp.eq.f32.partialorder %v2094_v46, 8.507059e+37  ;;  %v2112_v52 = vmul.f32 %v2111_v32, %v4628_v2  ;;  %v2241_v20 = vpop.xlane.xlu0 %2240 }
 0x2b6   : > { %2233 = vst.msk [vmem:[%s3486_s20 + $0xe0] sm:$0xff] %vm2204_vm12, %v4713_v8  ;;  %2458 = vadd.xlane.f32.xlu2 %v2457_v28  ;;  %v2384_v61 = vmul.f32 %v4488_v3, %v4488_v3  ;;  %v2386_v16 = vmul.f32 %v4640_v58, %v4640_v58  ;;  %v2305_v17 = vsel %vm2204_vm12, %v4391_v31, 0.0  ;;  %v869_v63 = vmul.f32 0.5, %v4564_v24 }
 0x2b7   : > { %v2088_v6 = vmul.f32 %v2938_v25, %v2087_v36  ;;  %2560 = vst.msk [vmem:[%s4700_s26 + $0x68] sm:$0xff] %vm2515_vm14, %v2432_v35  ;;  %v2113_v9 = vadd.f32 1.1283791, %v2112_v52  ;;  %v2136_v3 = vand.u32 2147483648, %v4719_v47  ;;  %v2385_v31 = vmul.f32 %v4570_v21, %v4570_v21 }
 0x2b8   : > { %v2463_v13 = vsel %vm2204_vm12, %v2384_v61, 0.0  ;;  %2517 = vst.msk [vmem:[%s4692_s23 + $0x8] sm:$0xff] %vm2515_vm14, %v2241_v20  ;;  %v2469_v29 = vsel %vm2204_vm12, %v2386_v16, 0.0  ;;  %v2134_v30 = vand.u32 2147483647, %v4719_v47  ;;  %vm2130_vm4 = vweird.f32 %v4719_v47 }
 0x2b9   : > { %v2089_v0 = vadd.f32 %v2938_v25, %v2088_v6  ;;  %v2137_v54 = vor.u32 1.1754944e-38, %v2136_v3  ;;  %v2114_v48 = vmul.f32 %v2113_v9, %v4609_v11  ;;  %v2466_v38 = vsel %vm2204_vm12, %v2385_v31, 0.0 }
 0x2ba   : > { %2303 = vadd.xlane.f32.xlu1 %v2302_v43  ;;  %2309 = vadd.xlane.f32.xlu0 %v2308_v19  ;;  %vm2135_vm6 = vcmp.eq.f32.partialorder %v2134_v30, 8.507059e+37  ;;  %v2311_v42 = vsel %vm2204_vm12, %v4570_v21, 0.0  ;;  %v2317_v11 = vsel %vm2204_vm12, %v4677_v7, 0.0  ;;  %v870_v62 = vmul.f32 0.5, %v4600_v33 }
 0x2bb   : > { %v2093_v55 = vsel %vm2092_vm1, %v2938_v25, %v2089_v0  ;;  %v2940_v39 = vpop.eup %2939  ;;  %v2387_v27 = vmul.f32 %v4677_v7, %v4677_v7  ;;  %v2314_v21 = vsel %vm2204_vm12, %v4640_v58, 0.0  ;;  %v2320_v6 = vsel %vm2204_vm12, %v4713_v8, 0.0 }
 0x2bc   : > { %v2098_v51 = vsel %vm2095_vm2, %v2097_v59, %v2093_v55  ;;  %v2126_v56 = vmul.f32 %v2940_v39, %v4719_v47  ;;  %v2277_v45 = vpop.xlane.xlu1 %2276  ;;  %v2280_v24 = vpop.xlane.xlu2 %2279  ;;  %vm2131_vm3 = vweird.f32 %v2940_v39  ;;  %v2388_v32 = vmul.f32 %v4713_v8, %v4713_v8 }
 0x2bd   : > { %v2099_v49 = vmul.f32 %v2098_v51, %v2074_v18  ;;  %2529 = vst.msk [vmem:[%s4692_s23 + $0x68] sm:$0xff] %vm2515_vm14, %v2277_v45  ;;  %vm2132_vm5 = vmor %vm2130_vm4, %vm2131_vm3  ;;  %v2399_v60 = vpop.xlane.xlu0 %2398  ;;  %v2472_v33 = vsel %vm2204_vm12, %v2387_v27, 0.0 }
 0x2be   : > { %2306 = vadd.xlane.f32.xlu2 %v2305_v17  ;;  %v2127_v12 = vsub.f32 1.0, %v2126_v56  ;;  %2530 = vst.msk [vmem:[%s4692_s23 + $0x70] sm:$0xff] %vm2515_vm14, %v2280_v24  ;;  %v2475_v50 = vsel %vm2204_vm12, %v2388_v32, 0.0 }
 0x2bf   : > { %v2849_v2 = vclamps-f32 %v2099_v49, 1.0  ;;  %2549 = vst.msk [vmem:[%s4700_s26 + $0x10] sm:$0xff] %vm2515_vm14, %v2399_v60 }
 0x2c0   : > { %v2128_v14 = vmul.f32 %v2940_v39, %v2127_v12 }
 0x2c1   : > { %v2171_v53 = vadd.f32 1.0, %v2849_v2 }
 0x2c2   : > { %2464 = vadd.xlane.f32.xlu1 %v2463_v13  ;;  %2470 = vadd.xlane.f32.xlu0 %v2469_v29  ;;  %v2129_v4 = vadd.f32 %v2940_v39, %v2128_v14 }
 0x2c3   : > { %v2202_v23 = vmul.f32 %v2171_v53, %v869_v63 }
 0x2c4   : > { %v2133_v34 = vsel %vm2132_vm5, %v2940_v39, %v2129_v4  ;;  %v2244_v22 = vpop.xlane.xlu1 %2243  ;;  %v2250_v44 = vpop.xlane.xlu2 %2249 }
 0x2c5   : > { %2234 = vst.msk [vmem:[%s3486_s20 + $0xe8] sm:$0xff] %vm2204_vm12, %v2202_v23  ;;  %v2138_v41 = vsel %vm2135_vm6, %v2137_v54, %v2133_v34  ;;  %v2435_v5 = vpop.xlane.xlu0 %2434  ;;  %v2323_v58 = vsel %vm2204_vm12, %v2202_v23, 0.0  ;;  %v2389_v7 = vmul.f32 %v2202_v23, %v2202_v23 }
 0x2c6   : > { %2467 = vadd.xlane.f32.xlu2 %v2466_v38  ;;  %v2139_v10 = vmul.f32 %v2138_v41, %v2114_v48  ;;  %2518 = vst.msk [vmem:[%s4692_s23 + $0x10] sm:$0xff] %vm2515_vm14, %v2244_v22 }
 0x2c7   : > { %2520 = vst.msk [vmem:[%s4692_s23 + $0x20] sm:$0xff] %vm2515_vm14, %v2250_v44  ;;  %v2478_v46 = vsel %vm2204_vm12, %v2389_v7, 0.0 }
 0x2c8   : > { %v2850_v26 = vclamps-f32 %v2139_v10, 1.0  ;;  %2561 = vst.msk [vmem:[%s4700_s26 + $0x70] sm:$0xff] %vm2515_vm14, %v2435_v5 }
 0x2ca   : > { %2312 = vadd.xlane.f32.xlu1 %v2311_v42  ;;  %2318 = vadd.xlane.f32.xlu0 %v2317_v11  ;;  %v2172_v25 = vadd.f32 1.0, %v2850_v26 }
 0x2cc   : > { %v2203_v40 = vmul.f32 %v2172_v25, %v870_v62  ;;  %v2247_v57 = vpop.xlane.xlu1 %2246  ;;  %v2405_v47 = vpop.xlane.xlu2 %2404 }
 0x2cd   : > { %2519 = vst.msk [vmem:[%s4692_s23 + $0x18] sm:$0xff] %vm2515_vm14, %v2247_v57  ;;  %v2283_v28 = vpop.xlane.xlu0 %2282 }
 0x2ce   : > { %2315 = vadd.xlane.f32.xlu2 %v2314_v21  ;;  %2235 = vst.msk [vmem:[%s3486_s20 + $0xf0] sm:$0xff] %vm2204_vm12, %v2203_v40  ;;  %v2326_v36 = vsel %vm2204_vm12, %v2203_v40, 0.0  ;;  %v2390_v37 = vmul.f32 %v2203_v40, %v2203_v40 }
 0x2cf   : > { %2551 = vst.msk [vmem:[%s4700_s26 + $0x20] sm:$0xff] %vm2515_vm14, %v2405_v47 }
 0x2d0   : > { %2531 = vst.msk [vmem:[%s4692_s23 + $0x78] sm:$0xff] %vm2515_vm14, %v2283_v28  ;;  %v2481_v8 = vsel %vm2204_vm12, %v2390_v37, 0.0 }
 0x2d2   : > { %2473 = vadd.xlane.f32.xlu1 %v2472_v33  ;;  %2327 = vadd.xlane.f32.xlu0 %v2326_v36 }
 0x2d4   : > { %v2402_v1 = vpop.xlane.xlu1 %2401  ;;  %v2253_v15 = vpop.xlane.xlu2 %2252 }
 0x2d5   : > { %2550 = vst.msk [vmem:[%s4700_s26 + $0x18] sm:$0xff] %vm2515_vm14, %v2402_v1  ;;  %v2408_v35 = vpop.xlane.xlu0 %2407 }
 0x2d6   : > { %2324 = vadd.xlane.f32.xlu2 %v2323_v58  ;;  %2521 = vst.msk [vmem:[%s4692_s23 + $0x28] sm:$0xff] %vm2515_vm14, %v2253_v15 }
 0x2d7   : > { %2552 = vst.msk [vmem:[%s4700_s26 + $0x28] sm:$0xff] %vm2515_vm14, %v2408_v35 }
 0x2da   : > { %2321 = vadd.xlane.f32.xlu1 %v2320_v6  ;;  %2479 = vadd.xlane.f32.xlu0 %v2478_v46 }
 0x2dc   : > { %v2438_v0 = vpop.xlane.xlu1 %2437  ;;  %v2441_v43 = vpop.xlane.xlu2 %2440 }
 0x2dd   : > { %2562 = vst.msk [vmem:[%s4700_s26 + $0x78] sm:$0xff] %vm2515_vm14, %v2438_v0  ;;  %v2256_v19 = vpop.xlane.xlu0 %2255 }
 0x2de   : > { %2476 = vadd.xlane.f32.xlu2 %v2475_v50  ;;  %2563 = vst.msk [vmem:[%s4700_s26 + $0x80] sm:$0xff] %vm2515_vm14, %v2441_v43 }
 0x2df   : > { %2522 = vst.msk [vmem:[%s4692_s23 + $0x30] sm:$0xff] %vm2515_vm14, %v2256_v19 }
 0x2e2   : > { %2482 = vadd.xlane.f32.xlu1 %v2481_v8 }
 0x2e4   : > { %v2286_v59 = vpop.xlane.xlu1 %2285  ;;  %v2289_v18 = vpop.xlane.xlu2 %2288 }
 0x2e5   : > { %2532 = vst.msk [vmem:[%s4692_s23 + $0x80] sm:$0xff] %vm2515_vm14, %v2286_v59  ;;  %v2444_v55 = vpop.xlane.xlu0 %2443 }
 0x2e6   : > { %2533 = vst.msk [vmem:[%s4692_s23 + $0x88] sm:$0xff] %vm2515_vm14, %v2289_v18 }
 0x2e7   : > { %2564 = vst.msk [vmem:[%s4700_s26 + $0x88] sm:$0xff] %vm2515_vm14, %v2444_v55 }
 0x2ec   : > { %v2411_v52 = vpop.xlane.xlu1 %2410 }
 0x2ed   : > { %2553 = vst.msk [vmem:[%s4700_s26 + $0x30] sm:$0xff] %vm2515_vm14, %v2411_v52  ;;  %v2292_v51 = vpop.xlane.xlu0 %2291 }
 0x2ee   : > { %2534 = vst.msk [vmem:[%s4692_s23 + $0x90] sm:$0xff] %vm2515_vm14, %v2292_v51 }
 0x2f1   : > { %v2414_v39 = vpop.xlane.xlu2 %2413 }
 0x2f2   : > { %2554 = vst.msk [vmem:[%s4700_s26 + $0x38] sm:$0xff] %vm2515_vm14, %v2414_v39 }
 0x2f4   : > { %v2259_v61 = vpop.xlane.xlu1 %2258 }
 0x2f5   : > { %2523 = vst.msk [vmem:[%s4692_s23 + $0x38] sm:$0xff] %vm2515_vm14, %v2259_v61  ;;  %v2417_v49 = vpop.xlane.xlu0 %2416 }
 0x2f6   : > { %2555 = vst.msk [vmem:[%s4700_s26 + $0x40] sm:$0xff] %vm2515_vm14, %v2417_v49 }
 0x2f9   : > { %v2262_v16 = vpop.xlane.xlu2 %2261 }
 0x2fa   : > { %2524 = vst.msk [vmem:[%s4692_s23 + $0x40] sm:$0xff] %vm2515_vm14, %v2262_v16 }
 0x2fc   : > { %v2447_v56 = vpop.xlane.xlu1 %2446 }
 0x2fd   : > { %2565 = vst.msk [vmem:[%s4700_s26 + $0x90] sm:$0xff] %vm2515_vm14, %v2447_v56 }
 0x301   : > { %v2265_v63 = vpop.xlane.xlu0 %2264 }
 0x302   : > { %2525 = vst.msk [vmem:[%s4692_s23 + $0x48] sm:$0xff] %vm2515_vm14, %v2265_v63 }
 0x304   : > { %v2295_v2 = vpop.xlane.xlu1 %2294 }
 0x305   : > { %v2450_v17 = vpop.xlane.xlu2 %2449  ;;  %2535 = vst.msk [vmem:[%s4692_s23 + $0x98] sm:$0xff] %vm2515_vm14, %v2295_v2 }
 0x306   : > { %2566 = vst.msk [vmem:[%s4700_s26 + $0x98] sm:$0xff] %vm2515_vm14, %v2450_v17 }
 0x309   : > { %v2453_v12 = vpop.xlane.xlu0 %2452 }
 0x30a   : > { %2567 = vst.msk [vmem:[%s4700_s26 + $0xa0] sm:$0xff] %vm2515_vm14, %v2453_v12 }
 0x30e   : > { %v2298_v9 = vpop.xlane.xlu2 %2297 }
 0x30f   : > { %2536 = vst.msk [vmem:[%s4692_s23 + $0xa0] sm:$0xff] %vm2515_vm14, %v2298_v9 }
 0x315   : > { %v2420_v20 = vpop.xlane.xlu1 %2419  ;;  %v2301_v45 = vpop.xlane.xlu0 %2300 }
 0x316   : > { %2556 = vst.msk [vmem:[%s4700_s26 + $0x48] sm:$0xff] %vm2515_vm14, %v2420_v20 }
 0x317   : > { %2537 = vst.msk [vmem:[%s4692_s23 + $0xa8] sm:$0xff] %vm2515_vm14, %v2301_v45 }
 0x319   : > { %v2423_v3 = vpop.xlane.xlu2 %2422 }
 0x31a   : > { %2557 = vst.msk [vmem:[%s4700_s26 + $0x50] sm:$0xff] %vm2515_vm14, %v2423_v3 }
 0x31d   : > { %v2268_v13 = vpop.xlane.xlu1 %2267  ;;  %v2426_v29 = vpop.xlane.xlu0 %2425 }
 0x31e   : > { %2526 = vst.msk [vmem:[%s4692_s23 + $0x50] sm:$0xff] %vm2515_vm14, %v2268_v13 }
 0x31f   : > { %2558 = vst.msk [vmem:[%s4700_s26 + $0x58] sm:$0xff] %vm2515_vm14, %v2426_v29 }
 0x321   : > { %v2271_v31 = vpop.xlane.xlu2 %2270 }
 0x322   : > { %2527 = vst.msk [vmem:[%s4692_s23 + $0x58] sm:$0xff] %vm2515_vm14, %v2271_v31 }
 0x325   : > { %v2456_v24 = vpop.xlane.xlu1 %2455  ;;  %v2462_v53 = vpop.xlane.xlu0 %2461 }
 0x326   : > { %2568 = vst.msk [vmem:[%s4700_s26 + $0xa8] sm:$0xff] %vm2515_vm14, %v2456_v24 }
 0x327   : > { %2570 = vst.msk [vmem:[%s4700_s26 + $0xb8] sm:$0xff] %vm2515_vm14, %v2462_v53 }
 0x329   : > { %v2459_v14 = vpop.xlane.xlu2 %2458 }
 0x32a   : > { %2569 = vst.msk [vmem:[%s4700_s26 + $0xb0] sm:$0xff] %vm2515_vm14, %v2459_v14 }
 0x32d   : > { %v2304_v30 = vpop.xlane.xlu1 %2303  ;;  %v2310_v23 = vpop.xlane.xlu0 %2309 }
 0x32e   : > { %2538 = vst.msk [vmem:[%s4692_s23 + $0xb0] sm:$0xff] %vm2515_vm14, %v2304_v30 }
 0x32f   : > { %2540 = vst.msk [vmem:[%s4692_s23 + $0xc0] sm:$0xff] %vm2515_vm14, %v2310_v23 }
 0x331   : > { %v2307_v4 = vpop.xlane.xlu2 %2306 }
 0x332   : > { %2539 = vst.msk [vmem:[%s4692_s23 + $0xb8] sm:$0xff] %vm2515_vm14, %v2307_v4 }
 0x335   : > { %v2465_v54 = vpop.xlane.xlu1 %2464  ;;  %v2471_v48 = vpop.xlane.xlu0 %2470 }
 0x336   : > { %2571 = vst.msk [vmem:[%s4700_s26 + $0xc0] sm:$0xff] %vm2515_vm14, %v2465_v54 }
 0x337   : > { %2573 = vst.msk [vmem:[%s4700_s26 + $0xd0] sm:$0xff] %vm2515_vm14, %v2471_v48 }
 0x339   : > { %v2468_v34 = vpop.xlane.xlu2 %2467 }
 0x33a   : > { %2572 = vst.msk [vmem:[%s4700_s26 + $0xc8] sm:$0xff] %vm2515_vm14, %v2468_v34 }
 0x33d   : > { %v2313_v38 = vpop.xlane.xlu1 %2312  ;;  %v2319_v41 = vpop.xlane.xlu0 %2318 }
 0x33e   : > { %2541 = vst.msk [vmem:[%s4692_s23 + $0xc8] sm:$0xff] %vm2515_vm14, %v2313_v38 }
 0x33f   : > { %2543 = vst.msk [vmem:[%s4692_s23 + $0xd8] sm:$0xff] %vm2515_vm14, %v2319_v41 }
 0x341   : > { %v2316_v10 = vpop.xlane.xlu2 %2315 }
 0x342   : > { %2542 = vst.msk [vmem:[%s4692_s23 + $0xd0] sm:$0xff] %vm2515_vm14, %v2316_v10 }
 0x345   : > { %v2474_v60 = vpop.xlane.xlu1 %2473  ;;  %v2328_v22 = vpop.xlane.xlu0 %2327 }
 0x346   : > { %2574 = vst.msk [vmem:[%s4700_s26 + $0xd8] sm:$0xff] %vm2515_vm14, %v2474_v60 }
 0x347   : > { %2546 = vst.msk [vmem:[%s4692_s23 + $0xf0] sm:$0xff] %vm2515_vm14, %v2328_v22 }
 0x349   : > { %v2325_v44 = vpop.xlane.xlu2 %2324 }
 0x34a   : > { %2545 = vst.msk [vmem:[%s4692_s23 + $0xe8] sm:$0xff] %vm2515_vm14, %v2325_v44 }
 0x34d   : > { %v2322_v26 = vpop.xlane.xlu1 %2321  ;;  %v2480_v42 = vpop.xlane.xlu0 %2479 }
 0x34e   : > { %2544 = vst.msk [vmem:[%s4692_s23 + $0xe0] sm:$0xff] %vm2515_vm14, %v2322_v26 }
 0x34f   : > { %2576 = vst.msk [vmem:[%s4700_s26 + $0xe8] sm:$0xff] %vm2515_vm14, %v2480_v42 }
 0x351   : > { %v2477_v11 = vpop.xlane.xlu2 %2476 }
 0x352   : > { %2575 = vst.msk [vmem:[%s4700_s26 + $0xe0] sm:$0xff] %vm2515_vm14, %v2477_v11 }
 0x355   : > { %v2483_v62 = vpop.xlane.xlu1 %2482 }
 0x356   : > { %2577 = vst.msk [vmem:[%s4700_s26 + $0xf0] sm:$0xff] %vm2515_vm14, %v2483_v62 }
 0x357 PF: > { %s16_s18 = sadd.s32 1, %s2947_s18  }
 0x358   : > { %p13_p4 = scmp.ge.s32.totalorder %s16_s18, 4  }
 0x35a   :  { %15 = sbr.rel (!%p13_p4) target bundleno = 1 (0x1), region = 88 }

</bundles_post_ra>
